<compile_context>
chip_gen: v6e
topology: v6e:2x2x1
jax: 0.10.0
libtpu: 0.0.40
codegen_flags: <defaults>
</compile_context>

<pallas_src>
import jax
import jax.numpy as jnp
from jax import lax
from jax.experimental import pallas as pl
from jax.experimental.pallas import tpu as pltpu

LEAKY_SLOPE = 0.01            # nn.LeakyReLU default negative_slope
BN_EPS = 1e-5                 # nn.BatchNorm2d default eps
MXU_DTYPE = jnp.bfloat16      # matmul-operand dtype (f32 accumulation);
                              # set to jnp.float32 for bit-faithful numerics.

_VMEM_LIMIT = None


def _vmem_limit_bytes():
    # Generation-aware scoped-VMEM limit: ~70% of physical, clamped to
    # [32 MiB, 96 MiB].  Falls back to a v7x-safe 64 MiB capacity guess.
    global _VMEM_LIMIT
    if _VMEM_LIMIT is None:
        cap = 64 * 1024 * 1024
        try:
            cap = int(pltpu.get_tpu_info().vmem_capacity_bytes)
        except Exception:
            pass
        _VMEM_LIMIT = max(32 * 1024 * 1024,
                          min(96 * 1024 * 1024, (cap * 7) // 10))
    return _VMEM_LIMIT


def _cparams(n_axes):
    return pltpu.CompilerParams(
        dimension_semantics=("parallel",) * n_axes,
        vmem_limit_bytes=_vmem_limit_bytes())


def _leaky_relu(x):
    return jnp.where(x >= 0.0, x, LEAKY_SLOPE * x)


def _pixel_tile(p, max_tile):
    # Largest lane-aligned (multiple of 128) tile dividing p, capped at max_tile.
    if p <= max_tile:
        return p
    t = (max_tile // 128) * 128
    while t >= 128:
        if p % t == 0:
            return t
        t -= 128
    return p


# ----------------------------- Pallas kernels -----------------------------

def _conv1x1_bn_lrelu_kernel(x_ref, w_ref, scale_ref, shift_ref, o_ref):
    # x: (1, Cin, TP)  w: (Cout, Cin)  scale/shift: (Cout, 1)
    y = jnp.dot(w_ref[...].astype(MXU_DTYPE), x_ref[0].astype(MXU_DTYPE),
                preferred_element_type=jnp.float32)
    y = y * scale_ref[...] + shift_ref[...]
    o_ref[0] = _leaky_relu(y)


def _down_up_kernel(x_ref, w_ref, scale_ref, shift_ref, up_ref, o_ref):
    # down_h (1x1 conv + BN + LeakyReLU) fused with bilinear upsample
    # (align_corners=True) as one matmul against the precomputed kron(row,col)
    # interpolation matrix.  Output is lane-flattened (1, C, H*W).
    # TODO(synk): for large images use the separable form
    # ((C*Hh,Wh)@cmat_t then einshape + (H,Hh)@(Hh,C*W)) to avoid the
    # O(Ph*P) interpolation matrix.
    y = jnp.dot(w_ref[...].astype(MXU_DTYPE), x_ref[0].astype(MXU_DTYPE),
                preferred_element_type=jnp.float32)          # (C, Hh*Wh)
    y = _leaky_relu(y * scale_ref[...] + shift_ref[...])
    o_ref[0] = jnp.dot(y, up_ref[...],
                       preferred_element_type=jnp.float32)   # (C, H*W)


def _fill_slab(slab_ref, x, lm, rm, tap_cin, ch_off, width, p):
    # Writes the 9 shifted/masked taps of x (Cin, P) into the K-packed patch
    # slab (9*tap_cin, P) at channel offset ch_off inside each tap block.
    # Vertical halo is handled by the pre-zeroed slab (clipped stores);
    # horizontal row-wrap is killed by the left/right column masks.
    cin = x.shape[0]
    for k in range(9):
        dy, dx = k // 3, k % 3
        off = (dy - 1) * width + (dx - 1)
        lo = max(0, -off)
        hi = p - max(0, off)
        patch = x[:, lo + off:hi + off]
        if dx == 0:
            patch = patch * lm[:, lo:hi]
        elif dx == 2:
            patch = patch * rm[:, lo:hi]
        r0 = k * tap_cin + ch_off
        slab_ref[r0:r0 + cin, lo:hi] = patch


def _make_flow_conv_kernel(c, width, p):
    # delta_gen1 + delta_gen2 fused: one K-packed 3x3 conv over the virtual
    # concat([high_up, low_d]) (never materialized in HBM); 4 stacked flow
    # channels out.  K = 9 * 2C.
    cin2 = 2 * c

    def kernel(hi_ref, lo_ref, w_ref, lm_ref, rm_ref, o_ref, slab_ref):
        lm = lm_ref[...]
        rm = rm_ref[...]
        slab_ref[...] = jnp.zeros_like(slab_ref)
        _fill_slab(slab_ref, hi_ref[0], lm, rm, cin2, 0, width, p)
        _fill_slab(slab_ref, lo_ref[0], lm, rm, cin2, c, width, p)
        o_ref[0] = jnp.dot(w_ref[...].astype(MXU_DTYPE),
                           slab_ref[...].astype(MXU_DTYPE),
                           preferred_element_type=jnp.float32)   # (4, P)
    return kernel


def _make_conv3x3_bn_lrelu_kernel(c, width, p):
    # weight_conv[0]: K-packed 3x3 conv + BN + LeakyReLU.
    # TODO(synk): pixel-band tiling (overlapping window DMA) for v7x VMEM /
    # second-core scaling at production image sizes.
    def kernel(x_ref, w_ref, scale_ref, shift_ref, lm_ref, rm_ref,
               o_ref, slab_ref):
        slab_ref[...] = jnp.zeros_like(slab_ref)
        _fill_slab(slab_ref, x_ref[0], lm_ref[...], rm_ref[...], c, 0, width, p)
        acc = jnp.dot(w_ref[...].astype(MXU_DTYPE),
                      slab_ref[...].astype(MXU_DTYPE),
                      preferred_element_type=jnp.float32)        # (C, P)
        o_ref[0] = _leaky_relu(acc * scale_ref[...] + shift_ref[...])
    return kernel


def _make_conv3x3_sigmoid_fuse_kernel(c, width, p):
    # weight_conv[2] 3x3 conv -> sigmoid -> final fuse in one pass:
    #   fea_wei*h + h + (1-fea_wei)*l + l  ==  h*(1+w) + l*(2-w).
    def kernel(t_ref, h_ref, l_ref, w_ref, lm_ref, rm_ref, o_ref, slab_ref):
        slab_ref[...] = jnp.zeros_like(slab_ref)
        _fill_slab(slab_ref, t_ref[0], lm_ref[...], rm_ref[...], c, 0, width, p)
        acc = jnp.dot(w_ref[...].astype(MXU_DTYPE),
                      slab_ref[...].astype(MXU_DTYPE),
                      preferred_element_type=jnp.float32)        # (1, P)
        wei = jax.nn.sigmoid(acc)
        o_ref[0] = h_ref[0] * (1.0 + wei) + l_ref[0] * (2.0 - wei)
    return kernel


def _make_dual_warp_kernel(c, hs_h, ws_h, hs_l, ws_l, hout, wout, tp):
    # grid_sample(bilinear, zeros padding, align_corners=True) for BOTH warps,
    # tiled over output pixels.  One one-hot per warp (floor corner); the
    # other three corners are lane-rotations of the source stacked into a
    # single (4C, IW) @ (IW, TP) matmul; per-corner bilinear weight and
    # zero-padding validity are folded on the (C, TP) output in f32.
    # TODO(synk): row-block the source / one-hot for very large source images
    # (keeps the (IW, TP) slab inside v7x's 64 MiB VMEM).
    iwh = hs_h * ws_h
    iwl = hs_l * ws_l

    def rot(src, s):
        # src[:, j] -> src[:, (j + s) mod IW]
        return jnp.concatenate([src[:, s:], src[:, :s]], axis=1)

    def gather(src, fx, fy, hs, ws, iw, gxb, gyb):
        gx = gxb + fx * (1.0 / float(wout))
        gy = gyb + fy * (1.0 / float(hout))
        ix = (gx + 1.0) * (0.5 * (ws - 1))
        iy = (gy + 1.0) * (0.5 * (hs - 1))
        x0 = jnp.floor(ix)
        y0 = jnp.floor(iy)
        x1 = x0 + 1.0
        y1 = y0 + 1.0
        wx1 = ix - x0
        wx0 = 1.0 - wx1
        wy1 = iy - y0
        wy0 = 1.0 - wy1
        vx0 = (x0 >= 0.0) & (x0 <= ws - 1.0)
        vx1 = (x1 >= 0.0) & (x1 <= ws - 1.0)
        vy0 = (y0 >= 0.0) & (y0 <= hs - 1.0)
        vy1 = (y1 >= 0.0) & (y1 <= hs - 1.0)
        w00 = jnp.where(vy0 & vx0, wy0 * wx0, 0.0)
        w01 = jnp.where(vy0 & vx1, wy0 * wx1, 0.0)
        w10 = jnp.where(vy1 & vx0, wy1 * wx0, 0.0)
        w11 = jnp.where(vy1 & vx1, wy1 * wx1, 0.0)
        # Base (floor) corner index, wrapped into range when it is one step
        # left/above the image (the only negative cases whose neighbours can
        # still be valid).  Any aliased gather is killed by its zero weight.
        idx0 = y0.astype(jnp.int32) * ws + x0.astype(jnp.int32)     # (1, TP)
        idx0 = jnp.where(idx0 < 0, idx0 + iw, idx0)
        qi = lax.broadcasted_iota(jnp.int32, (iw, tp), 0)
        onehot = (qi == idx0).astype(MXU_DTYPE)                      # (IW, TP)
        stacked = jnp.concatenate(
            [src, rot(src, 1), rot(src, ws), rot(src, ws + 1)],
            axis=0).astype(MXU_DTYPE)                                # (4C, IW)
        g = jnp.dot(stacked, onehot, preferred_element_type=jnp.float32)
        return (g[0 * c:1 * c] * w00 + g[1 * c:2 * c] * w01
                + g[2 * c:3 * c] * w10 + g[3 * c:4 * c] * w11)

    def kernel(flow_ref, gxb_ref, gyb_ref, hsrc_ref, lsrc_ref,
               hwarp_ref, lwarp_ref, diff_ref):
        fl = flow_ref[0]                   # (4, TP): [fx_h, fy_h, fx_l, fy_l]
        gxb = gxb_ref[...]                 # (1, TP) constant base grid x
        gyb = gyb_ref[...]                 # (1, TP) constant base grid y
        hw = gather(hsrc_ref[0], fl[0:1, :], fl[1:2, :], hs_h, ws_h, iwh,
                    gxb, gyb)
        lw = gather(lsrc_ref[0], fl[2:3, :], fl[3:4, :], hs_l, ws_l, iwl,
                    gxb, gyb)
        hwarp_ref[0] = hw
        lwarp_ref[0] = lw
        diff_ref[0] = hw - lw
    return kernel


# ------------------------------ JAX wrappers ------------------------------

def conv1x1_bn_lrelu(x_cf, w_t, scale, shift):
    n, cin, p = x_cf.shape
    cout = w_t.shape[0]
    tp = _pixel_tile(p, 4096)
    grid = (n, p // tp)
    return pl.pallas_call(
        _conv1x1_bn_lrelu_kernel,
        out_shape=jax.ShapeDtypeStruct((n, cout, p), jnp.float32),
        grid=grid,
        in_specs=[
            pl.BlockSpec((1, cin, tp), lambda b, t: (b, 0, t)),
            pl.BlockSpec((cout, cin), lambda b, t: (0, 0)),
            pl.BlockSpec((cout, 1), lambda b, t: (0, 0)),
            pl.BlockSpec((cout, 1), lambda b, t: (0, 0)),
        ],
        out_specs=pl.BlockSpec((1, cout, tp), lambda b, t: (b, 0, t)),
        compiler_params=_cparams(2),
    )(x_cf, w_t, scale, shift)


def down_h_and_upsample(high_cf, w_t, scale, shift, upmat):
    n, c, ph = high_cf.shape
    p = upmat.shape[1]
    return pl.pallas_call(
        _down_up_kernel,
        out_shape=jax.ShapeDtypeStruct((n, c, p), jnp.float32),
        grid=(n,),
        in_specs=[
            pl.BlockSpec((1, c, ph), lambda b: (b, 0, 0)),
            pl.BlockSpec((c, c), lambda b: (0, 0)),
            pl.BlockSpec((c, 1), lambda b: (0, 0)),
            pl.BlockSpec((c, 1), lambda b: (0, 0)),
            pl.BlockSpec((ph, p), lambda b: (0, 0)),
        ],
        out_specs=pl.BlockSpec((1, c, p), lambda b: (b, 0, 0)),
        compiler_params=_cparams(1),
    )(high_cf, w_t, scale, shift, upmat)


def flow_conv(hi, lo, w_pack, left_mask, right_mask, width, p):
    n, c, _ = hi.shape
    cin2 = 2 * c
    kernel = _make_flow_conv_kernel(c, width, p)
    return pl.pallas_call(
        kernel,
        out_shape=jax.ShapeDtypeStruct((n, 4, p), jnp.float32),
        grid=(n,),
        in_specs=[
            pl.BlockSpec((1, c, p), lambda b: (b, 0, 0)),
            pl.BlockSpec((1, c, p), lambda b: (b, 0, 0)),
            pl.BlockSpec((4, 9 * cin2), lambda b: (0, 0)),
            pl.BlockSpec((1, p), lambda b: (0, 0)),
            pl.BlockSpec((1, p), lambda b: (0, 0)),
        ],
        out_specs=pl.BlockSpec((1, 4, p), lambda b: (b, 0, 0)),
        scratch_shapes=[pltpu.VMEM((9 * cin2, p), jnp.float32)],
        compiler_params=_cparams(1),
    )(hi, lo, w_pack, left_mask, right_mask)


def dual_warp(flows, gx_base, gy_base, high_cf, low_cf, hh, wh, h, w):
    n, c, iwl = low_cf.shape
    iwh = high_cf.shape[2]
    p = h * w
    tp = _pixel_tile(p, 1024)
    grid = (n, p // tp)
    kernel = _make_dual_warp_kernel(c, hh, wh, h, w, h, w, tp)
    out_shape = tuple(jax.ShapeDtypeStruct((n, c, p), jnp.float32)
                      for _ in range(3))
    # TODO(synk): the hsrc/lsrc blocks are grid-invariant along the pixel
    # axis; single-buffer them (pl.Buffered(1)) to reclaim VMEM on v7x.
    return pl.pallas_call(
        kernel,
        out_shape=out_shape,
        grid=grid,
        in_specs=[
            pl.BlockSpec((1, 4, tp), lambda b, t: (b, 0, t)),
            pl.BlockSpec((1, tp), lambda b, t: (0, t)),
            pl.BlockSpec((1, tp), lambda b, t: (0, t)),
            pl.BlockSpec((1, c, iwh), lambda b, t: (b, 0, 0)),
            pl.BlockSpec((1, c, iwl), lambda b, t: (b, 0, 0)),
        ],
        out_specs=[
            pl.BlockSpec((1, c, tp), lambda b, t: (b, 0, t)),
            pl.BlockSpec((1, c, tp), lambda b, t: (b, 0, t)),
            pl.BlockSpec((1, c, tp), lambda b, t: (b, 0, t)),
        ],
        compiler_params=_cparams(2),
    )(flows, gx_base, gy_base, high_cf, low_cf)


def conv3x3_bn_lrelu(x, w_pack, scale, shift, left_mask, right_mask, width, p):
    n, c, _ = x.shape
    cout = w_pack.shape[0]
    kernel = _make_conv3x3_bn_lrelu_kernel(c, width, p)
    return pl.pallas_call(
        kernel,
        out_shape=jax.ShapeDtypeStruct((n, cout, p), jnp.float32),
        grid=(n,),
        in_specs=[
            pl.BlockSpec((1, c, p), lambda b: (b, 0, 0)),
            pl.BlockSpec((cout, 9 * c), lambda b: (0, 0)),
            pl.BlockSpec((cout, 1), lambda b: (0, 0)),
            pl.BlockSpec((cout, 1), lambda b: (0, 0)),
            pl.BlockSpec((1, p), lambda b: (0, 0)),
            pl.BlockSpec((1, p), lambda b: (0, 0)),
        ],
        out_specs=pl.BlockSpec((1, cout, p), lambda b: (b, 0, 0)),
        scratch_shapes=[pltpu.VMEM((9 * c, p), jnp.float32)],
        compiler_params=_cparams(1),
    )(x, w_pack, scale, shift, left_mask, right_mask)


def conv3x3_sigmoid_fuse(t, h_warp, l_warp, w_pack, left_mask, right_mask,
                         width, p):
    n, c, _ = t.shape
    cw = h_warp.shape[1]
    kernel = _make_conv3x3_sigmoid_fuse_kernel(c, width, p)
    return pl.pallas_call(
        kernel,
        out_shape=jax.ShapeDtypeStruct((n, cw, p), jnp.float32),
        grid=(n,),
        in_specs=[
            pl.BlockSpec((1, c, p), lambda b: (b, 0, 0)),
            pl.BlockSpec((1, cw, p), lambda b: (b, 0, 0)),
            pl.BlockSpec((1, cw, p), lambda b: (b, 0, 0)),
            pl.BlockSpec((1, 9 * c), lambda b: (0, 0)),
            pl.BlockSpec((1, p), lambda b: (0, 0)),
            pl.BlockSpec((1, p), lambda b: (0, 0)),
        ],
        out_specs=pl.BlockSpec((1, cw, p), lambda b: (b, 0, 0)),
        scratch_shapes=[pltpu.VMEM((9 * c, p), jnp.float32)],
        compiler_params=_cparams(1),
    )(t, h_warp, l_warp, w_pack, left_mask, right_mask)


# --------------------------- constants / params ---------------------------

def interp_matrix(s_out, s_in):
    # Bilinear, align_corners=True interpolation matrix: out = M @ in.
    if s_out == 1:
        src = jnp.zeros((1,), jnp.float32)
    else:
        src = jnp.arange(s_out, dtype=jnp.float32) * (
            float(s_in - 1) / float(s_out - 1))
    i0 = jnp.clip(jnp.floor(src), 0.0, float(s_in - 1))
    i1 = jnp.clip(i0 + 1.0, 0.0, float(s_in - 1))
    w1 = src - i0
    w0 = 1.0 - w1
    cols = jnp.arange(s_in, dtype=jnp.float32)
    return (w0[:, None] * (cols[None, :] == i0[:, None]).astype(jnp.float32)
            + w1[:, None] * (cols[None, :] == i1[:, None]).astype(jnp.float32))


def init_params(key, c):
    ks = jax.random.split(key, 10)

    def bn(kg, kb, ch):
        gamma = jax.random.uniform(kg, (ch,), jnp.float32, 0.5, 1.5)
        beta = 0.1 * jax.random.normal(kb, (ch,), jnp.float32)
        # eval-mode BN with fresh running stats (mean=0, var=1) -> scale/shift
        return gamma / jnp.sqrt(1.0 + BN_EPS), beta

    p = {}
    p["w_dl"] = 0.2 * jax.random.normal(ks[0], (c, c), jnp.float32)   # (Cin,Cout)
    p["scale_dl"], p["shift_dl"] = bn(ks[1], ks[2], c)
    p["w_dh"] = 0.2 * jax.random.normal(ks[3], (c, c), jnp.float32)
    p["scale_dh"], p["shift_dh"] = bn(ks[4], ks[5], c)
    p["w_d1"] = 0.1 * jax.random.normal(ks[6], (3, 3, 2 * c, 2), jnp.float32)
    p["w_d2"] = 0.1 * jax.random.normal(ks[7], (3, 3, 2 * c, 2), jnp.float32)
    p["w_wc1"] = 0.1 * jax.random.normal(ks[8], (3, 3, c, c), jnp.float32)
    kwc = jax.random.split(ks[9], 3)
    p["scale_wc1"], p["shift_wc1"] = bn(kwc[0], kwc[1], c)
    p["w_wc2"] = 0.1 * jax.random.normal(kwc[2], (3, 3, c, 1), jnp.float32)
    return p


# --------------------------------- forward --------------------------------

def aligned_module_forward(low_nchw, high_nchw, p):
    n, c, h, w = low_nchw.shape
    _, _, hh, wh = high_nchw.shape
    pix = h * w
    pix_h = hh * wh

    low_cf = low_nchw.reshape(n, c, pix)        # pixels on the lane dim
    high_cf = high_nchw.reshape(n, c, pix_h)

    # constants (built once in XLA; tiny at these sizes)
    rmat = interp_matrix(h, hh)                               # (H, Hh)
    cmat = interp_matrix(w, wh)                               # (W, Wh)
    upmat = (rmat.T[:, None, :, None] * cmat.T[None, :, None, :]
             ).reshape(pix_h, pix)                            # (Hh*Wh, H*W)
    col = (jnp.arange(pix, dtype=jnp.int32) % w).astype(jnp.float32)
    row = (jnp.arange(pix, dtype=jnp.int32) // w).astype(jnp.float32)
    gx_base = (2.0 * col / float(max(w - 1, 1)) - 1.0).reshape(1, pix)
    gy_base = (2.0 * row / float(max(h - 1, 1)) - 1.0).reshape(1, pix)
    left_mask = (col >= 1.0).astype(jnp.float32).reshape(1, pix)
    right_mask = (col <= float(w - 2)).astype(jnp.float32).reshape(1, pix)

    # parameter plumbing (tiny)
    scale_dl = p["scale_dl"].reshape(c, 1)
    shift_dl = p["shift_dl"].reshape(c, 1)
    scale_dh = p["scale_dh"].reshape(c, 1)
    shift_dh = p["shift_dh"].reshape(c, 1)
    scale_w1 = p["scale_wc1"].reshape(c, 1)
    shift_w1 = p["shift_wc1"].reshape(c, 1)
    w_dl_t = p["w_dl"].T                                               # (Cout,Cin)
    w_dh_t = p["w_dh"].T
    w_delta = jnp.concatenate([p["w_d1"], p["w_d2"]], axis=-1)         # (3,3,2C,4)
    w_flow = w_delta.reshape(9, 2 * c, 4).transpose(2, 0, 1)           # (4,9,2C)
    w_flow = w_flow.reshape(4, 9 * 2 * c)                              # K-packed
    w_wc1 = p["w_wc1"].reshape(9, c, c).transpose(2, 0, 1).reshape(c, 9 * c)
    w_wc2 = p["w_wc2"].reshape(9, c, 1).transpose(2, 0, 1).reshape(1, 9 * c)

    # down_l: 1x1 conv + BN + LeakyReLU (pixel-tiled, megacore-parallel)
    low_d = conv1x1_bn_lrelu(low_cf, w_dl_t, scale_dl, shift_dl)       # (N,C,P)
    # down_h + bilinear upsample fused; high_d never hits HBM
    high_up = down_h_and_upsample(high_cf, w_dh_t, scale_dh, shift_dh,
                                  upmat)                               # (N,C,P)

    # delta_gen1 + delta_gen2 fused, K-packed (Dropout2d == identity in eval)
    flows = flow_conv(high_up, low_d, w_flow, left_mask, right_mask,
                      w, pix)                                          # (N,4,P)

    # grid_sample warps of the ORIGINAL features + diff, fused & pixel-tiled
    h_warp, l_warp, diff = dual_warp(flows, gx_base, gy_base,
                                     high_cf, low_cf, hh, wh, h, w)

    # weight_conv[0]: 3x3 conv + BN + LeakyReLU (K-packed, halo in VMEM)
    t = conv3x3_bn_lrelu(diff, w_wc1, scale_w1, shift_w1,
                         left_mask, right_mask, w, pix)                # (N,C,P)
    # weight_conv[2] + sigmoid + final fuse (fea_wei never hits HBM)
    out = conv3x3_sigmoid_fuse(t, h_warp, l_warp, w_wc2,
                               left_mask, right_mask, w, pix)          # (N,C,P)
    return out.reshape(n, c, h, w)                                     # NCHW


if __name__ == "__main__":
    key = jax.random.PRNGKey(0)
    k_low, k_high, k_par = jax.random.split(key, 3)
    N, C, H, W = 2, 4, 16, 16     # low_feature (high-resolution branch)
    Hh, Wh = 8, 8                 # h_feature (low-resolution branch)
    low_feature = jax.random.normal(k_low, (N, C, H, W), jnp.float32)
    h_feature = jax.random.normal(k_high, (N, C, Hh, Wh), jnp.float32)
    params = init_params(k_par, C)

    fwd = jax.jit(aligned_module_forward)
    out = jax.block_until_ready(fwd(low_feature, h_feature, params))
    assert out.shape == (N, C, H, W) and out.dtype == jnp.float32
    print("KERNEL_OK")
</pallas_src>

<mosaic_0001>
module attributes {stable_mosaic.version = 11 : i64} {
  func.func @_down_up_kernel(%arg0: i32, %arg1: memref<1x4x64xf32, #tpu.memory_space<vmem>>, %arg2: memref<4x4xf32, #tpu.memory_space<vmem>>, %arg3: memref<4x1xf32, #tpu.memory_space<vmem>>, %arg4: memref<4x1xf32, #tpu.memory_space<vmem>>, %arg5: memref<64x256xf32, #tpu.memory_space<vmem>>, %arg6: memref<1x4x256xf32, #tpu.memory_space<vmem>>) attributes {dimension_semantics = [#tpu.dimension_semantics<parallel>], iteration_bounds = array<i64: 2>, scalar_prefetch = 0 : i64, scratch_operands = 0 : i64, tpu.core_type = #tpu.core_type<tc>, window_params = [{transform_indices = @transform_0, window_bounds = array<i64: 1, 4, 64>}, {pipeline_mode = #tpu.pipeline_mode<synchronous>, transform_indices = @transform_1, window_bounds = array<i64: 4, 4>}, {pipeline_mode = #tpu.pipeline_mode<synchronous>, transform_indices = @transform_2, window_bounds = array<i64: 4, 1>}, {pipeline_mode = #tpu.pipeline_mode<synchronous>, transform_indices = @transform_3, window_bounds = array<i64: 4, 1>}, {pipeline_mode = #tpu.pipeline_mode<synchronous>, transform_indices = @transform_4, window_bounds = array<i64: 64, 256>}, {transform_indices = @transform_5, window_bounds = array<i64: 1, 4, 256>}]} {
    %c0 = arith.constant 0 : index
    %c0_0 = arith.constant 0 : index
    %0 = vector.load %arg2[%c0, %c0_0] : memref<4x4xf32, #tpu.memory_space<vmem>>, vector<4x4xf32>
    %1 = arith.truncf %0 : vector<4x4xf32> to vector<4x4xbf16>
    %c0_1 = arith.constant 0 : index
    %c0_2 = arith.constant 0 : index
    %c0_3 = arith.constant 0 : index
    %2 = vector.load %arg1[%c0_1, %c0_2, %c0_3] : memref<1x4x64xf32, #tpu.memory_space<vmem>>, vector<1x4x64xf32>
    %3 = vector.shape_cast %2 : vector<1x4x64xf32> to vector<4x64xf32>
    %4 = arith.truncf %3 : vector<4x64xf32> to vector<4x64xbf16>
    %cst = arith.constant dense<0.000000e+00> : vector<4x64xf32>
    %5 = tpu.matmul %1, %4, %cst {dimension_numbers = #tpu.dot_dimension_numbers<[1], [0], [0], [1], [0, 0, 1, 1], [], []>} : vector<4x4xbf16>, vector<4x64xbf16>, vector<4x64xf32> -> vector<4x64xf32>
    %c0_4 = arith.constant 0 : index
    %c0_5 = arith.constant 0 : index
    %6 = vector.load %arg3[%c0_4, %c0_5] : memref<4x1xf32, #tpu.memory_space<vmem>>, vector<4x1xf32>
    %7 = vector.broadcast %6 : vector<4x1xf32> to vector<4x64xf32>
    %8 = arith.mulf %5, %7 : vector<4x64xf32>
    %c0_6 = arith.constant 0 : index
    %c0_7 = arith.constant 0 : index
    %9 = vector.load %arg4[%c0_6, %c0_7] : memref<4x1xf32, #tpu.memory_space<vmem>>, vector<4x1xf32>
    %10 = vector.broadcast %9 : vector<4x1xf32> to vector<4x64xf32>
    %11 = arith.addf %8, %10 : vector<4x64xf32>
    %cst_8 = arith.constant 0.000000e+00 : f32
    %12 = vector.broadcast %cst_8 : f32 to vector<4x64xf32>
    %13 = arith.cmpf oge, %11, %12 : vector<4x64xf32>
    %cst_9 = arith.constant 0.00999999977 : f32
    %14 = vector.broadcast %cst_9 : f32 to vector<4x64xf32>
    %15 = arith.mulf %14, %11 : vector<4x64xf32>
    %16 = arith.select %13, %11, %15 : vector<4x64xi1>, vector<4x64xf32>
    %c0_10 = arith.constant 0 : index
    %c0_11 = arith.constant 0 : index
    %17 = vector.load %arg5[%c0_10, %c0_11] : memref<64x256xf32, #tpu.memory_space<vmem>>, vector<64x256xf32>
    %cst_12 = arith.constant dense<0.000000e+00> : vector<4x256xf32>
    %18 = tpu.matmul %16, %17, %cst_12 {dimension_numbers = #tpu.dot_dimension_numbers<[1], [0], [0], [1], [0, 0, 1, 1], [], []>} : vector<4x64xf32>, vector<64x256xf32>, vector<4x256xf32> -> vector<4x256xf32>
    %c0_13 = arith.constant 0 : index
    %c0_14 = arith.constant 0 : index
    %c0_15 = arith.constant 0 : index
    %19 = vector.load %arg6[%c0_13, %c0_14, %c0_15] : memref<1x4x256xf32, #tpu.memory_space<vmem>>, vector<1x4x256xf32>
    %20 = vector.shape_cast %19 : vector<1x4x256xf32> to vector<4x256xf32>
    %21 = vector.shape_cast %18 : vector<4x256xf32> to vector<1x4x256xf32>
    tpu.vector_store %arg6[%c0_13, %c0_14, %c0_15], %21 {strides = array<i32>} : memref<1x4x256xf32, #tpu.memory_space<vmem>>, vector<1x4x256xf32>,
    return
  }
  func.func @transform_0(%arg0: i32) -> (i32, i32, i32) {
    %c0_i32 = arith.constant 0 : i32
    %c0_i32_0 = arith.constant 0 : i32
    %c0_i32_1 = arith.constant 0 : i32
    return %arg0, %c0_i32, %c0_i32_0 : i32, i32, i32
  }
  func.func @transform_1(%arg0: i32) -> (i32, i32) {
    %c0_i32 = arith.constant 0 : i32
    %c0_i32_0 = arith.constant 0 : i32
    %c0_i32_1 = arith.constant 0 : i32
    return %c0_i32, %c0_i32_0 : i32, i32
  }
  func.func @transform_2(%arg0: i32) -> (i32, i32) {
    %c0_i32 = arith.constant 0 : i32
    %c0_i32_0 = arith.constant 0 : i32
    %c0_i32_1 = arith.constant 0 : i32
    return %c0_i32, %c0_i32_0 : i32, i32
  }
  func.func @transform_3(%arg0: i32) -> (i32, i32) {
    %c0_i32 = arith.constant 0 : i32
    %c0_i32_0 = arith.constant 0 : i32
    %c0_i32_1 = arith.constant 0 : i32
    return %c0_i32, %c0_i32_0 : i32, i32
  }
  func.func @transform_4(%arg0: i32) -> (i32, i32) {
    %c0_i32 = arith.constant 0 : i32
    %c0_i32_0 = arith.constant 0 : i32
    %c0_i32_1 = arith.constant 0 : i32
    return %c0_i32, %c0_i32_0 : i32, i32
  }
  func.func @transform_5(%arg0: i32) -> (i32, i32, i32) {
    %c0_i32 = arith.constant 0 : i32
    %c0_i32_0 = arith.constant 0 : i32
    %c0_i32_1 = arith.constant 0 : i32
    return %arg0, %c0_i32, %c0_i32_0 : i32, i32, i32
  }
}

module attributes {stable_mosaic.version = 11 : i64} {
  func.func @_conv1x1_bn_lrelu_kernel(%arg0: i32, %arg1: i32, %arg2: memref<1x4x256xf32, #tpu.memory_space<vmem>>, %arg3: memref<4x4xf32, #tpu.memory_space<vmem>>, %arg4: memref<4x1xf32, #tpu.memory_space<vmem>>, %arg5: memref<4x1xf32, #tpu.memory_space<vmem>>, %arg6: memref<1x4x256xf32, #tpu.memory_space<vmem>>) attributes {dimension_semantics = [#tpu.dimension_semantics<parallel>, #tpu.dimension_semantics<parallel>], iteration_bounds = array<i64: 2, 1>, scalar_prefetch = 0 : i64, scratch_operands = 0 : i64, tpu.core_type = #tpu.core_type<tc>, window_params = [{transform_indices = @transform_0, window_bounds = array<i64: 1, 4, 256>}, {pipeline_mode = #tpu.pipeline_mode<synchronous>, transform_indices = @transform_1, window_bounds = array<i64: 4, 4>}, {pipeline_mode = #tpu.pipeline_mode<synchronous>, transform_indices = @transform_2, window_bounds = array<i64: 4, 1>}, {pipeline_mode = #tpu.pipeline_mode<synchronous>, transform_indices = @transform_3, window_bounds = array<i64: 4, 1>}, {transform_indices = @transform_4, window_bounds = array<i64: 1, 4, 256>}]} {
    %c0 = arith.constant 0 : index
    %c0_0 = arith.constant 0 : index
    %0 = vector.load %arg3[%c0, %c0_0] : memref<4x4xf32, #tpu.memory_space<vmem>>, vector<4x4xf32>
    %1 = arith.truncf %0 : vector<4x4xf32> to vector<4x4xbf16>
    %c0_1 = arith.constant 0 : index
    %c0_2 = arith.constant 0 : index
    %c0_3 = arith.constant 0 : index
    %2 = vector.load %arg2[%c0_1, %c0_2, %c0_3] : memref<1x4x256xf32, #tpu.memory_space<vmem>>, vector<1x4x256xf32>
    %3 = vector.shape_cast %2 : vector<1x4x256xf32> to vector<4x256xf32>
    %4 = arith.truncf %3 : vector<4x256xf32> to vector<4x256xbf16>
    %cst = arith.constant dense<0.000000e+00> : vector<4x256xf32>
    %5 = tpu.matmul %1, %4, %cst {dimension_numbers = #tpu.dot_dimension_numbers<[1], [0], [0], [1], [0, 0, 1, 1], [], []>} : vector<4x4xbf16>, vector<4x256xbf16>, vector<4x256xf32> -> vector<4x256xf32>
    %c0_4 = arith.constant 0 : index
    %c0_5 = arith.constant 0 : index
    %6 = vector.load %arg4[%c0_4, %c0_5] : memref<4x1xf32, #tpu.memory_space<vmem>>, vector<4x1xf32>
    %7 = vector.broadcast %6 : vector<4x1xf32> to vector<4x256xf32>
    %8 = arith.mulf %5, %7 : vector<4x256xf32>
    %c0_6 = arith.constant 0 : index
    %c0_7 = arith.constant 0 : index
    %9 = vector.load %arg5[%c0_6, %c0_7] : memref<4x1xf32, #tpu.memory_space<vmem>>, vector<4x1xf32>
    %10 = vector.broadcast %9 : vector<4x1xf32> to vector<4x256xf32>
    %11 = arith.addf %8, %10 : vector<4x256xf32>
    %cst_8 = arith.constant 0.000000e+00 : f32
    %12 = vector.broadcast %cst_8 : f32 to vector<4x256xf32>
    %13 = arith.cmpf oge, %11, %12 : vector<4x256xf32>
    %cst_9 = arith.constant 0.00999999977 : f32
    %14 = vector.broadcast %cst_9 : f32 to vector<4x256xf32>
    %15 = arith.mulf %14, %11 : vector<4x256xf32>
    %16 = arith.select %13, %11, %15 : vector<4x256xi1>, vector<4x256xf32>
    %c0_10 = arith.constant 0 : index
    %c0_11 = arith.constant 0 : index
    %c0_12 = arith.constant 0 : index
    %17 = vector.load %arg6[%c0_10, %c0_11, %c0_12] : memref<1x4x256xf32, #tpu.memory_space<vmem>>, vector<1x4x256xf32>
    %18 = vector.shape_cast %17 : vector<1x4x256xf32> to vector<4x256xf32>
    %19 = vector.shape_cast %16 : vector<4x256xf32> to vector<1x4x256xf32>
    tpu.vector_store %arg6[%c0_10, %c0_11, %c0_12], %19 {strides = array<i32>} : memref<1x4x256xf32, #tpu.memory_space<vmem>>, vector<1x4x256xf32>,
    return
  }
  func.func @transform_0(%arg0: i32, %arg1: i32) -> (i32, i32, i32) {
    %c0_i32 = arith.constant 0 : i32
    %c0_i32_0 = arith.constant 0 : i32
    return %arg0, %c0_i32, %arg1 : i32, i32, i32
  }
  func.func @transform_1(%arg0: i32, %arg1: i32) -> (i32, i32) {
    %c0_i32 = arith.constant 0 : i32
    %c0_i32_0 = arith.constant 0 : i32
    %c0_i32_1 = arith.constant 0 : i32
    return %c0_i32, %c0_i32_0 : i32, i32
  }
  func.func @transform_2(%arg0: i32, %arg1: i32) -> (i32, i32) {
    %c0_i32 = arith.constant 0 : i32
    %c0_i32_0 = arith.constant 0 : i32
    %c0_i32_1 = arith.constant 0 : i32
    return %c0_i32, %c0_i32_0 : i32, i32
  }
  func.func @transform_3(%arg0: i32, %arg1: i32) -> (i32, i32) {
    %c0_i32 = arith.constant 0 : i32
    %c0_i32_0 = arith.constant 0 : i32
    %c0_i32_1 = arith.constant 0 : i32
    return %c0_i32, %c0_i32_0 : i32, i32
  }
  func.func @transform_4(%arg0: i32, %arg1: i32) -> (i32, i32, i32) {
    %c0_i32 = arith.constant 0 : i32
    %c0_i32_0 = arith.constant 0 : i32
    return %arg0, %c0_i32, %arg1 : i32, i32, i32
  }
}

module attributes {stable_mosaic.version = 11 : i64} {
  func.func @kernel(%arg0: i32, %arg1: memref<1x4x256xf32, #tpu.memory_space<vmem>>, %arg2: memref<1x4x256xf32, #tpu.memory_space<vmem>>, %arg3: memref<4x72xf32, #tpu.memory_space<vmem>>, %arg4: memref<1x256xf32, #tpu.memory_space<vmem>>, %arg5: memref<1x256xf32, #tpu.memory_space<vmem>>, %arg6: memref<1x4x256xf32, #tpu.memory_space<vmem>>, %arg7: memref<72x256xf32, #tpu.memory_space<vmem>>) attributes {dimension_semantics = [#tpu.dimension_semantics<parallel>], iteration_bounds = array<i64: 2>, scalar_prefetch = 0 : i64, scratch_operands = 1 : i64, tpu.core_type = #tpu.core_type<tc>, window_params = [{transform_indices = @transform_0, window_bounds = array<i64: 1, 4, 256>}, {transform_indices = @transform_1, window_bounds = array<i64: 1, 4, 256>}, {pipeline_mode = #tpu.pipeline_mode<synchronous>, transform_indices = @transform_2, window_bounds = array<i64: 4, 72>}, {pipeline_mode = #tpu.pipeline_mode<synchronous>, transform_indices = @transform_3, window_bounds = array<i64: 1, 256>}, {pipeline_mode = #tpu.pipeline_mode<synchronous>, transform_indices = @transform_4, window_bounds = array<i64: 1, 256>}, {transform_indices = @transform_5, window_bounds = array<i64: 1, 4, 256>}]} {
    %c0 = arith.constant 0 : index
    %c0_0 = arith.constant 0 : index
    %0 = vector.load %arg4[%c0, %c0_0] : memref<1x256xf32, #tpu.memory_space<vmem>>, vector<1x256xf32>
    %c0_1 = arith.constant 0 : index
    %c0_2 = arith.constant 0 : index
    %1 = vector.load %arg5[%c0_1, %c0_2] : memref<1x256xf32, #tpu.memory_space<vmem>>, vector<1x256xf32>
    %cst = arith.constant 0.000000e+00 : f32
    %2 = vector.broadcast %cst : f32 to vector<72x256xf32>
    %c0_3 = arith.constant 0 : index
    %c0_4 = arith.constant 0 : index
    %3 = vector.load %arg7[%c0_3, %c0_4] : memref<72x256xf32, #tpu.memory_space<vmem>>, vector<72x256xf32>
    tpu.vector_store %arg7[%c0_3, %c0_4], %2 {strides = array<i32>} : memref<72x256xf32, #tpu.memory_space<vmem>>, vector<72x256xf32>,
    %c0_5 = arith.constant 0 : index
    %c0_6 = arith.constant 0 : index
    %c0_7 = arith.constant 0 : index
    %4 = vector.load %arg1[%c0_5, %c0_6, %c0_7] : memref<1x4x256xf32, #tpu.memory_space<vmem>>, vector<1x4x256xf32>
    %5 = vector.shape_cast %4 : vector<1x4x256xf32> to vector<4x256xf32>
    %6 = vector.extract_strided_slice %5 {offsets = [0, 0], sizes = [4, 239], strides = [1, 1]} : vector<4x256xf32> to vector<4x239xf32>
    %7 = vector.extract_strided_slice %0 {offsets = [0, 17], sizes = [1, 239], strides = [1, 1]} : vector<1x256xf32> to vector<1x239xf32>
    %8 = vector.broadcast %7 : vector<1x239xf32> to vector<4x239xf32>
    %9 = arith.mulf %6, %8 : vector<4x239xf32>
    %c0_8 = arith.constant 0 : index
    %c17 = arith.constant 17 : index
    %10 = vector.load %arg7[%c0_8, %c17] : memref<72x256xf32, #tpu.memory_space<vmem>>, vector<4x239xf32>
    tpu.vector_store %arg7[%c0_8, %c17], %9 {strides = array<i32>} : memref<72x256xf32, #tpu.memory_space<vmem>>, vector<4x239xf32>,
    %11 = vector.extract_strided_slice %5 {offsets = [0, 0], sizes = [4, 240], strides = [1, 1]} : vector<4x256xf32> to vector<4x240xf32>
    %c8 = arith.constant 8 : index
    %c16 = arith.constant 16 : index
    %12 = vector.load %arg7[%c8, %c16] : memref<72x256xf32, #tpu.memory_space<vmem>>, vector<4x240xf32>
    tpu.vector_store %arg7[%c8, %c16], %11 {strides = array<i32>} : memref<72x256xf32, #tpu.memory_space<vmem>>, vector<4x240xf32>,
    %13 = vector.extract_strided_slice %5 {offsets = [0, 0], sizes = [4, 241], strides = [1, 1]} : vector<4x256xf32> to vector<4x241xf32>
    %14 = vector.extract_strided_slice %1 {offsets = [0, 15], sizes = [1, 241], strides = [1, 1]} : vector<1x256xf32> to vector<1x241xf32>
    %15 = vector.broadcast %14 : vector<1x241xf32> to vector<4x241xf32>
    %16 = arith.mulf %13, %15 : vector<4x241xf32>
    %c16_9 = arith.constant 16 : index
    %c15 = arith.constant 15 : index
    %17 = vector.load %arg7[%c16_9, %c15] : memref<72x256xf32, #tpu.memory_space<vmem>>, vector<4x241xf32>
    tpu.vector_store %arg7[%c16_9, %c15], %16 {strides = array<i32>} : memref<72x256xf32, #tpu.memory_space<vmem>>, vector<4x241xf32>,
    %18 = vector.extract_strided_slice %5 {offsets = [0, 0], sizes = [4, 255], strides = [1, 1]} : vector<4x256xf32> to vector<4x255xf32>
    %19 = vector.extract_strided_slice %0 {offsets = [0, 1], sizes = [1, 255], strides = [1, 1]} : vector<1x256xf32> to vector<1x255xf32>
    %20 = vector.broadcast %19 : vector<1x255xf32> to vector<4x255xf32>
    %21 = arith.mulf %18, %20 : vector<4x255xf32>
    %c24 = arith.constant 24 : index
    %c1 = arith.constant 1 : index
    %22 = vector.load %arg7[%c24, %c1] : memref<72x256xf32, #tpu.memory_space<vmem>>, vector<4x255xf32>
    tpu.vector_store %arg7[%c24, %c1], %21 {strides = array<i32>} : memref<72x256xf32, #tpu.memory_space<vmem>>, vector<4x255xf32>,
    %c32 = arith.constant 32 : index
    %c0_10 = arith.constant 0 : index
    %23 = vector.load %arg7[%c32, %c0_10] : memref<72x256xf32, #tpu.memory_space<vmem>>, vector<4x256xf32>
    tpu.vector_store %arg7[%c32, %c0_10], %5 {strides = array<i32>} : memref<72x256xf32, #tpu.memory_space<vmem>>, vector<4x256xf32>,
    %24 = vector.extract_strided_slice %5 {offsets = [0, 1], sizes = [4, 255], strides = [1, 1]} : vector<4x256xf32> to vector<4x255xf32>
    %25 = vector.extract_strided_slice %1 {offsets = [0, 0], sizes = [1, 255], strides = [1, 1]} : vector<1x256xf32> to vector<1x255xf32>
    %26 = vector.broadcast %25 : vector<1x255xf32> to vector<4x255xf32>
    %27 = arith.mulf %24, %26 : vector<4x255xf32>
    %c40 = arith.constant 40 : index
    %c0_11 = arith.constant 0 : index
    %28 = vector.load %arg7[%c40, %c0_11] : memref<72x256xf32, #tpu.memory_space<vmem>>, vector<4x255xf32>
    tpu.vector_store %arg7[%c40, %c0_11], %27 {strides = array<i32>} : memref<72x256xf32, #tpu.memory_space<vmem>>, vector<4x255xf32>,
    %29 = vector.extract_strided_slice %5 {offsets = [0, 15], sizes = [4, 241], strides = [1, 1]} : vector<4x256xf32> to vector<4x241xf32>
    %30 = vector.extract_strided_slice %0 {offsets = [0, 0], sizes = [1, 241], strides = [1, 1]} : vector<1x256xf32> to vector<1x241xf32>
    %31 = vector.broadcast %30 : vector<1x241xf32> to vector<4x241xf32>
    %32 = arith.mulf %29, %31 : vector<4x241xf32>
    %c48 = arith.constant 48 : index
    %c0_12 = arith.constant 0 : index
    %33 = vector.load %arg7[%c48, %c0_12] : memref<72x256xf32, #tpu.memory_space<vmem>>, vector<4x241xf32>
    tpu.vector_store %arg7[%c48, %c0_12], %32 {strides = array<i32>} : memref<72x256xf32, #tpu.memory_space<vmem>>, vector<4x241xf32>,
    %34 = vector.extract_strided_slice %5 {offsets = [0, 16], sizes = [4, 240], strides = [1, 1]} : vector<4x256xf32> to vector<4x240xf32>
    %c56 = arith.constant 56 : index
    %c0_13 = arith.constant 0 : index
    %35 = vector.load %arg7[%c56, %c0_13] : memref<72x256xf32, #tpu.memory_space<vmem>>, vector<4x240xf32>
    tpu.vector_store %arg7[%c56, %c0_13], %34 {strides = array<i32>} : memref<72x256xf32, #tpu.memory_space<vmem>>, vector<4x240xf32>,
    %36 = vector.extract_strided_slice %5 {offsets = [0, 17], sizes = [4, 239], strides = [1, 1]} : vector<4x256xf32> to vector<4x239xf32>
    %37 = vector.extract_strided_slice %1 {offsets = [0, 0], sizes = [1, 239], strides = [1, 1]} : vector<1x256xf32> to vector<1x239xf32>
    %38 = vector.broadcast %37 : vector<1x239xf32> to vector<4x239xf32>
    %39 = arith.mulf %36, %38 : vector<4x239xf32>
    %c64 = arith.constant 64 : index
    %c0_14 = arith.constant 0 : index
    %40 = vector.load %arg7[%c64, %c0_14] : memref<72x256xf32, #tpu.memory_space<vmem>>, vector<4x239xf32>
    tpu.vector_store %arg7[%c64, %c0_14], %39 {strides = array<i32>} : memref<72x256xf32, #tpu.memory_space<vmem>>, vector<4x239xf32>,
    %c0_15 = arith.constant 0 : index
    %c0_16 = arith.constant 0 : index
    %c0_17 = arith.constant 0 : index
    %41 = vector.load %arg2[%c0_15, %c0_16, %c0_17] : memref<1x4x256xf32, #tpu.memory_space<vmem>>, vector<1x4x256xf32>
    %42 = vector.shape_cast %41 : vector<1x4x256xf32> to vector<4x256xf32>
    %43 = vector.extract_strided_slice %42 {offsets = [0, 0], sizes = [4, 239], strides = [1, 1]} : vector<4x256xf32> to vector<4x239xf32>
    %44 = vector.extract_strided_slice %0 {offsets = [0, 17], sizes = [1, 239], strides = [1, 1]} : vector<1x256xf32> to vector<1x239xf32>
    %45 = vector.broadcast %44 : vector<1x239xf32> to vector<4x239xf32>
    %46 = arith.mulf %43, %45 : vector<4x239xf32>
    %c4 = arith.constant 4 : index
    %c17_18 = arith.constant 17 : index
    %47 = vector.load %arg7[%c4, %c17_18] : memref<72x256xf32, #tpu.memory_space<vmem>>, vector<4x239xf32>
    tpu.vector_store %arg7[%c4, %c17_18], %46 {strides = array<i32>} : memref<72x256xf32, #tpu.memory_space<vmem>>, vector<4x239xf32>,
    %48 = vector.extract_strided_slice %42 {offsets = [0, 0], sizes = [4, 240], strides = [1, 1]} : vector<4x256xf32> to vector<4x240xf32>
    %c12 = arith.constant 12 : index
    %c16_19 = arith.constant 16 : index
    %49 = vector.load %arg7[%c12, %c16_19] : memref<72x256xf32, #tpu.memory_space<vmem>>, vector<4x240xf32>
    tpu.vector_store %arg7[%c12, %c16_19], %48 {strides = array<i32>} : memref<72x256xf32, #tpu.memory_space<vmem>>, vector<4x240xf32>,
    %50 = vector.extract_strided_slice %42 {offsets = [0, 0], sizes = [4, 241], strides = [1, 1]} : vector<4x256xf32> to vector<4x241xf32>
    %51 = vector.extract_strided_slice %1 {offsets = [0, 15], sizes = [1, 241], strides = [1, 1]} : vector<1x256xf32> to vector<1x241xf32>
    %52 = vector.broadcast %51 : vector<1x241xf32> to vector<4x241xf32>
    %53 = arith.mulf %50, %52 : vector<4x241xf32>
    %c20 = arith.constant 20 : index
    %c15_20 = arith.constant 15 : index
    %54 = vector.load %arg7[%c20, %c15_20] : memref<72x256xf32, #tpu.memory_space<vmem>>, vector<4x241xf32>
    tpu.vector_store %arg7[%c20, %c15_20], %53 {strides = array<i32>} : memref<72x256xf32, #tpu.memory_space<vmem>>, vector<4x241xf32>,
    %55 = vector.extract_strided_slice %42 {offsets = [0, 0], sizes = [4, 255], strides = [1, 1]} : vector<4x256xf32> to vector<4x255xf32>
    %56 = vector.extract_strided_slice %0 {offsets = [0, 1], sizes = [1, 255], strides = [1, 1]} : vector<1x256xf32> to vector<1x255xf32>
    %57 = vector.broadcast %56 : vector<1x255xf32> to vector<4x255xf32>
    %58 = arith.mulf %55, %57 : vector<4x255xf32>
    %c28 = arith.constant 28 : index
    %c1_21 = arith.constant 1 : index
    %59 = vector.load %arg7[%c28, %c1_21] : memref<72x256xf32, #tpu.memory_space<vmem>>, vector<4x255xf32>
    tpu.vector_store %arg7[%c28, %c1_21], %58 {strides = array<i32>} : memref<72x256xf32, #tpu.memory_space<vmem>>, vector<4x255xf32>,
    %c36 = arith.constant 36 : index
    %c0_22 = arith.constant 0 : index
    %60 = vector.load %arg7[%c36, %c0_22] : memref<72x256xf32, #tpu.memory_space<vmem>>, vector<4x256xf32>
    tpu.vector_store %arg7[%c36, %c0_22], %42 {strides = array<i32>} : memref<72x256xf32, #tpu.memory_space<vmem>>, vector<4x256xf32>,
    %61 = vector.extract_strided_slice %42 {offsets = [0, 1], sizes = [4, 255], strides = [1, 1]} : vector<4x256xf32> to vector<4x255xf32>
    %62 = vector.extract_strided_slice %1 {offsets = [0, 0], sizes = [1, 255], strides = [1, 1]} : vector<1x256xf32> to vector<1x255xf32>
    %63 = vector.broadcast %62 : vector<1x255xf32> to vector<4x255xf32>
    %64 = arith.mulf %61, %63 : vector<4x255xf32>
    %c44 = arith.constant 44 : index
    %c0_23 = arith.constant 0 : index
    %65 = vector.load %arg7[%c44, %c0_23] : memref<72x256xf32, #tpu.memory_space<vmem>>, vector<4x255xf32>
    tpu.vector_store %arg7[%c44, %c0_23], %64 {strides = array<i32>} : memref<72x256xf32, #tpu.memory_space<vmem>>, vector<4x255xf32>,
    %66 = vector.extract_strided_slice %42 {offsets = [0, 15], sizes = [4, 241], strides = [1, 1]} : vector<4x256xf32> to vector<4x241xf32>
    %67 = vector.extract_strided_slice %0 {offsets = [0, 0], sizes = [1, 241], strides = [1, 1]} : vector<1x256xf32> to vector<1x241xf32>
    %68 = vector.broadcast %67 : vector<1x241xf32> to vector<4x241xf32>
    %69 = arith.mulf %66, %68 : vector<4x241xf32>
    %c52 = arith.constant 52 : index
    %c0_24 = arith.constant 0 : index
    %70 = vector.load %arg7[%c52, %c0_24] : memref<72x256xf32, #tpu.memory_space<vmem>>, vector<4x241xf32>
    tpu.vector_store %arg7[%c52, %c0_24], %69 {strides = array<i32>} : memref<72x256xf32, #tpu.memory_space<vmem>>, vector<4x241xf32>,
    %71 = vector.extract_strided_slice %42 {offsets = [0, 16], sizes = [4, 240], strides = [1, 1]} : vector<4x256xf32> to vector<4x240xf32>
    %c60 = arith.constant 60 : index
    %c0_25 = arith.constant 0 : index
    %72 = vector.load %arg7[%c60, %c0_25] : memref<72x256xf32, #tpu.memory_space<vmem>>, vector<4x240xf32>
    tpu.vector_store %arg7[%c60, %c0_25], %71 {strides = array<i32>} : memref<72x256xf32, #tpu.memory_space<vmem>>, vector<4x240xf32>,
    %73 = vector.extract_strided_slice %42 {offsets = [0, 17], sizes = [4, 239], strides = [1, 1]} : vector<4x256xf32> to vector<4x239xf32>
    %74 = vector.extract_strided_slice %1 {offsets = [0, 0], sizes = [1, 239], strides = [1, 1]} : vector<1x256xf32> to vector<1x239xf32>
    %75 = vector.broadcast %74 : vector<1x239xf32> to vector<4x239xf32>
    %76 = arith.mulf %73, %75 : vector<4x239xf32>
    %c68 = arith.constant 68 : index
    %c0_26 = arith.constant 0 : index
    %77 = vector.load %arg7[%c68, %c0_26] : memref<72x256xf32, #tpu.memory_space<vmem>>, vector<4x239xf32>
    tpu.vector_store %arg7[%c68, %c0_26], %76 {strides = array<i32>} : memref<72x256xf32, #tpu.memory_space<vmem>>, vector<4x239xf32>,
    %c0_27 = arith.constant 0 : index
    %c0_28 = arith.constant 0 : index
    %78 = vector.load %arg3[%c0_27, %c0_28] : memref<4x72xf32, #tpu.memory_space<vmem>>, vector<4x72xf32>
    %79 = arith.truncf %78 : vector<4x72xf32> to vector<4x72xbf16>
    %c0_29 = arith.constant 0 : index
    %c0_30 = arith.constant 0 : index
    %80 = vector.load %arg7[%c0_29, %c0_30] : memref<72x256xf32, #tpu.memory_space<vmem>>, vector<72x256xf32>
    %81 = arith.truncf %80 : vector<72x256xf32> to vector<72x256xbf16>
    %cst_31 = arith.constant dense<0.000000e+00> : vector<4x256xf32>
    %82 = tpu.matmul %79, %81, %cst_31 {dimension_numbers = #tpu.dot_dimension_numbers<[1], [0], [0], [1], [0, 0, 1, 1], [], []>} : vector<4x72xbf16>, vector<72x256xbf16>, vector<4x256xf32> -> vector<4x256xf32>
    %c0_32 = arith.constant 0 : index
    %c0_33 = arith.constant 0 : index
    %c0_34 = arith.constant 0 : index
    %83 = vector.load %arg6[%c0_32, %c0_33, %c0_34] : memref<1x4x256xf32, #tpu.memory_space<vmem>>, vector<1x4x256xf32>
    %84 = vector.shape_cast %83 : vector<1x4x256xf32> to vector<4x256xf32>
    %85 = vector.shape_cast %82 : vector<4x256xf32> to vector<1x4x256xf32>
    tpu.vector_store %arg6[%c0_32, %c0_33, %c0_34], %85 {strides = array<i32>} : memref<1x4x256xf32, #tpu.memory_space<vmem>>, vector<1x4x256xf32>,
    return
  }
  func.func @transform_0(%arg0: i32) -> (i32, i32, i32) {
    %c0_i32 = arith.constant 0 : i32
    %c0_i32_0 = arith.constant 0 : i32
    %c0_i32_1 = arith.constant 0 : i32
    return %arg0, %c0_i32, %c0_i32_0 : i32, i32, i32
  }
  func.func @transform_1(%arg0: i32) -> (i32, i32, i32) {
    %c0_i32 = arith.constant 0 : i32
    %c0_i32_0 = arith.constant 0 : i32
    %c0_i32_1 = arith.constant 0 : i32
    return %arg0, %c0_i32, %c0_i32_0 : i32, i32, i32
  }
  func.func @transform_2(%arg0: i32) -> (i32, i32) {
    %c0_i32 = arith.constant 0 : i32
    %c0_i32_0 = arith.constant 0 : i32
    %c0_i32_1 = arith.constant 0 : i32
    return %c0_i32, %c0_i32_0 : i32, i32
  }
  func.func @transform_3(%arg0: i32) -> (i32, i32) {
    %c0_i32 = arith.constant 0 : i32
    %c0_i32_0 = arith.constant 0 : i32
    %c0_i32_1 = arith.constant 0 : i32
    return %c0_i32, %c0_i32_0 : i32, i32
  }
  func.func @transform_4(%arg0: i32) -> (i32, i32) {
    %c0_i32 = arith.constant 0 : i32
    %c0_i32_0 = arith.constant 0 : i32
    %c0_i32_1 = arith.constant 0 : i32
    return %c0_i32, %c0_i32_0 : i32, i32
  }
  func.func @transform_5(%arg0: i32) -> (i32, i32, i32) {
    %c0_i32 = arith.constant 0 : i32
    %c0_i32_0 = arith.constant 0 : i32
    %c0_i32_1 = arith.constant 0 : i32
    return %arg0, %c0_i32, %c0_i32_0 : i32, i32, i32
  }
}

module attributes {stable_mosaic.version = 11 : i64} {
  func.func @kernel(%arg0: i32, %arg1: i32, %arg2: memref<1x4x256xf32, #tpu.memory_space<vmem>>, %arg3: memref<1x256xf32, #tpu.memory_space<vmem>>, %arg4: memref<1x256xf32, #tpu.memory_space<vmem>>, %arg5: memref<1x4x64xf32, #tpu.memory_space<vmem>>, %arg6: memref<1x4x256xf32, #tpu.memory_space<vmem>>, %arg7: memref<1x4x256xf32, #tpu.memory_space<vmem>>, %arg8: memref<1x4x256xf32, #tpu.memory_space<vmem>>, %arg9: memref<1x4x256xf32, #tpu.memory_space<vmem>>) attributes {dimension_semantics = [#tpu.dimension_semantics<parallel>, #tpu.dimension_semantics<parallel>], iteration_bounds = array<i64: 2, 1>, scalar_prefetch = 0 : i64, scratch_operands = 0 : i64, tpu.core_type = #tpu.core_type<tc>, window_params = [{transform_indices = @transform_0, window_bounds = array<i64: 1, 4, 256>}, {transform_indices = @transform_1, window_bounds = array<i64: 1, 256>}, {transform_indices = @transform_2, window_bounds = array<i64: 1, 256>}, {transform_indices = @transform_3, window_bounds = array<i64: 1, 4, 64>}, {transform_indices = @transform_4, window_bounds = array<i64: 1, 4, 256>}, {transform_indices = @transform_5, window_bounds = array<i64: 1, 4, 256>}, {transform_indices = @transform_6, window_bounds = array<i64: 1, 4, 256>}, {transform_indices = @transform_7, window_bounds = array<i64: 1, 4, 256>}]} {
    %c0 = arith.constant 0 : index
    %c0_0 = arith.constant 0 : index
    %c0_1 = arith.constant 0 : index
    %0 = vector.load %arg2[%c0, %c0_0, %c0_1] : memref<1x4x256xf32, #tpu.memory_space<vmem>>, vector<1x4x256xf32>
    %1 = vector.shape_cast %0 : vector<1x4x256xf32> to vector<4x256xf32>
    %c0_2 = arith.constant 0 : index
    %c0_3 = arith.constant 0 : index
    %2 = vector.load %arg3[%c0_2, %c0_3] : memref<1x256xf32, #tpu.memory_space<vmem>>, vector<1x256xf32>
    %c0_4 = arith.constant 0 : index
    %c0_5 = arith.constant 0 : index
    %3 = vector.load %arg4[%c0_4, %c0_5] : memref<1x256xf32, #tpu.memory_space<vmem>>, vector<1x256xf32>
    %c0_6 = arith.constant 0 : index
    %c0_7 = arith.constant 0 : index
    %c0_8 = arith.constant 0 : index
    %4 = vector.load %arg5[%c0_6, %c0_7, %c0_8] : memref<1x4x64xf32, #tpu.memory_space<vmem>>, vector<1x4x64xf32>
    %5 = vector.shape_cast %4 : vector<1x4x64xf32> to vector<4x64xf32>
    %6 = vector.extract_strided_slice %1 {offsets = [0, 0], sizes = [1, 256], strides = [1, 1]} : vector<4x256xf32> to vector<1x256xf32>
    %7 = vector.extract_strided_slice %1 {offsets = [1, 0], sizes = [1, 256], strides = [1, 1]} : vector<4x256xf32> to vector<1x256xf32>
    %cst = arith.constant 6.250000e-02 : f32
    %8 = vector.broadcast %cst : f32 to vector<1x256xf32>
    %9 = arith.mulf %6, %8 : vector<1x256xf32>
    %10 = arith.addf %2, %9 : vector<1x256xf32>
    %cst_9 = arith.constant 6.250000e-02 : f32
    %11 = vector.broadcast %cst_9 : f32 to vector<1x256xf32>
    %12 = arith.mulf %7, %11 : vector<1x256xf32>
    %13 = arith.addf %3, %12 : vector<1x256xf32>
    %cst_10 = arith.constant 1.000000e+00 : f32
    %14 = vector.broadcast %cst_10 : f32 to vector<1x256xf32>
    %15 = arith.addf %10, %14 : vector<1x256xf32>
    %cst_11 = arith.constant 3.500000e+00 : f32
    %16 = vector.broadcast %cst_11 : f32 to vector<1x256xf32>
    %17 = arith.mulf %15, %16 : vector<1x256xf32>
    %cst_12 = arith.constant 1.000000e+00 : f32
    %18 = vector.broadcast %cst_12 : f32 to vector<1x256xf32>
    %19 = arith.addf %13, %18 : vector<1x256xf32>
    %cst_13 = arith.constant 3.500000e+00 : f32
    %20 = vector.broadcast %cst_13 : f32 to vector<1x256xf32>
    %21 = arith.mulf %19, %20 : vector<1x256xf32>
    %22 = math.floor %17 : vector<1x256xf32>
    %23 = math.floor %21 : vector<1x256xf32>
    %cst_14 = arith.constant 1.000000e+00 : f32
    %24 = vector.broadcast %cst_14 : f32 to vector<1x256xf32>
    %25 = arith.addf %22, %24 : vector<1x256xf32>
    %cst_15 = arith.constant 1.000000e+00 : f32
    %26 = vector.broadcast %cst_15 : f32 to vector<1x256xf32>
    %27 = arith.addf %23, %26 : vector<1x256xf32>
    %28 = arith.subf %17, %22 : vector<1x256xf32>
    %cst_16 = arith.constant 1.000000e+00 : f32
    %29 = vector.broadcast %cst_16 : f32 to vector<1x256xf32>
    %30 = arith.subf %29, %28 : vector<1x256xf32>
    %31 = arith.subf %21, %23 : vector<1x256xf32>
    %cst_17 = arith.constant 1.000000e+00 : f32
    %32 = vector.broadcast %cst_17 : f32 to vector<1x256xf32>
    %33 = arith.subf %32, %31 : vector<1x256xf32>
    %cst_18 = arith.constant 0.000000e+00 : f32
    %34 = vector.broadcast %cst_18 : f32 to vector<1x256xf32>
    %35 = arith.cmpf oge, %22, %34 : vector<1x256xf32>
    %cst_19 = arith.constant 7.000000e+00 : f32
    %36 = vector.broadcast %cst_19 : f32 to vector<1x256xf32>
    %37 = arith.cmpf ole, %22, %36 : vector<1x256xf32>
    %38 = arith.andi %35, %37 : vector<1x256xi1>
    %cst_20 = arith.constant 0.000000e+00 : f32
    %39 = vector.broadcast %cst_20 : f32 to vector<1x256xf32>
    %40 = arith.cmpf oge, %25, %39 : vector<1x256xf32>
    %cst_21 = arith.constant 7.000000e+00 : f32
    %41 = vector.broadcast %cst_21 : f32 to vector<1x256xf32>
    %42 = arith.cmpf ole, %25, %41 : vector<1x256xf32>
    %43 = arith.andi %40, %42 : vector<1x256xi1>
    %cst_22 = arith.constant 0.000000e+00 : f32
    %44 = vector.broadcast %cst_22 : f32 to vector<1x256xf32>
    %45 = arith.cmpf oge, %23, %44 : vector<1x256xf32>
    %cst_23 = arith.constant 7.000000e+00 : f32
    %46 = vector.broadcast %cst_23 : f32 to vector<1x256xf32>
    %47 = arith.cmpf ole, %23, %46 : vector<1x256xf32>
    %48 = arith.andi %45, %47 : vector<1x256xi1>
    %cst_24 = arith.constant 0.000000e+00 : f32
    %49 = vector.broadcast %cst_24 : f32 to vector<1x256xf32>
    %50 = arith.cmpf oge, %27, %49 : vector<1x256xf32>
    %cst_25 = arith.constant 7.000000e+00 : f32
    %51 = vector.broadcast %cst_25 : f32 to vector<1x256xf32>
    %52 = arith.cmpf ole, %27, %51 : vector<1x256xf32>
    %53 = arith.andi %50, %52 : vector<1x256xi1>
    %54 = arith.andi %48, %38 : vector<1x256xi1>
    %55 = arith.mulf %33, %30 : vector<1x256xf32>
    %cst_26 = arith.constant 0.000000e+00 : f32
    %56 = vector.broadcast %cst_26 : f32 to vector<1x256xf32>
    %57 = arith.select %54, %55, %56 : vector<1x256xi1>, vector<1x256xf32>
    %58 = arith.andi %48, %43 : vector<1x256xi1>
    %59 = arith.mulf %33, %28 : vector<1x256xf32>
    %cst_27 = arith.constant 0.000000e+00 : f32
    %60 = vector.broadcast %cst_27 : f32 to vector<1x256xf32>
    %61 = arith.select %58, %59, %60 : vector<1x256xi1>, vector<1x256xf32>
    %62 = arith.andi %53, %38 : vector<1x256xi1>
    %63 = arith.mulf %31, %30 : vector<1x256xf32>
    %cst_28 = arith.constant 0.000000e+00 : f32
    %64 = vector.broadcast %cst_28 : f32 to vector<1x256xf32>
    %65 = arith.select %62, %63, %64 : vector<1x256xi1>, vector<1x256xf32>
    %66 = arith.andi %53, %43 : vector<1x256xi1>
    %67 = arith.mulf %31, %28 : vector<1x256xf32>
    %cst_29 = arith.constant 0.000000e+00 : f32
    %68 = vector.broadcast %cst_29 : f32 to vector<1x256xf32>
    %69 = arith.select %66, %67, %68 : vector<1x256xi1>, vector<1x256xf32>
    %70 = arith.fptosi %23 : vector<1x256xf32> to vector<1x256xi32>
    %c8_i32 = arith.constant 8 : i32
    %71 = vector.broadcast %c8_i32 : i32 to vector<1x256xi32>
    %72 = arith.muli %70, %71 : vector<1x256xi32>
    %73 = arith.fptosi %22 : vector<1x256xf32> to vector<1x256xi32>
    %74 = arith.addi %72, %73 : vector<1x256xi32>
    %c0_i32 = arith.constant 0 : i32
    %75 = vector.broadcast %c0_i32 : i32 to vector<1x256xi32>
    %76 = arith.cmpi slt, %74, %75 : vector<1x256xi32>
    %c64_i32 = arith.constant 64 : i32
    %77 = vector.broadcast %c64_i32 : i32 to vector<1x256xi32>
    %78 = arith.addi %74, %77 : vector<1x256xi32>
    %79 = arith.select %76, %78, %74 : vector<1x256xi1>, vector<1x256xi32>
    %80 = tpu.iota {dimensions = array<i32: 0>} : vector<64x256xi32>
    %81 = vector.broadcast %79 : vector<1x256xi32> to vector<64x256xi32>
    %82 = arith.cmpi eq, %80, %81 : vector<64x256xi32>
    %83 = arith.extui %82 : vector<64x256xi1> to vector<64x256xi32>
    %84 = arith.sitofp %83 : vector<64x256xi32> to vector<64x256xf32>
    %85 = arith.truncf %84 : vector<64x256xf32> to vector<64x256xbf16>
    %86 = vector.extract_strided_slice %5 {offsets = [0, 1], sizes = [4, 63], strides = [1, 1]} : vector<4x64xf32> to vector<4x63xf32>
    %87 = vector.extract_strided_slice %5 {offsets = [0, 0], sizes = [4, 1], strides = [1, 1]} : vector<4x64xf32> to vector<4x1xf32>
    %88 = tpu.concatenate %86, %87 in 1 : vector<4x63xf32>, vector<4x1xf32> -> vector<4x64xf32>
    %89 = vector.extract_strided_slice %5 {offsets = [0, 8], sizes = [4, 56], strides = [1, 1]} : vector<4x64xf32> to vector<4x56xf32>
    %90 = vector.extract_strided_slice %5 {offsets = [0, 0], sizes = [4, 8], strides = [1, 1]} : vector<4x64xf32> to vector<4x8xf32>
    %91 = tpu.concatenate %89, %90 in 1 : vector<4x56xf32>, vector<4x8xf32> -> vector<4x64xf32>
    %92 = vector.extract_strided_slice %5 {offsets = [0, 9], sizes = [4, 55], strides = [1, 1]} : vector<4x64xf32> to vector<4x55xf32>
    %93 = vector.extract_strided_slice %5 {offsets = [0, 0], sizes = [4, 9], strides = [1, 1]} : vector<4x64xf32> to vector<4x9xf32>
    %94 = tpu.concatenate %92, %93 in 1 : vector<4x55xf32>, vector<4x9xf32> -> vector<4x64xf32>
    %95 = tpu.concatenate %5, %88, %91, %94 in 0 : vector<4x64xf32>, vector<4x64xf32>, vector<4x64xf32>, vector<4x64xf32> -> vector<16x64xf32>
    %96 = arith.truncf %95 : vector<16x64xf32> to vector<16x64xbf16>
    %cst_30 = arith.constant dense<0.000000e+00> : vector<16x256xf32>
    %97 = tpu.matmul %96, %85, %cst_30 {dimension_numbers = #tpu.dot_dimension_numbers<[1], [0], [0], [1], [0, 0, 1, 1], [], []>} : vector<16x64xbf16>, vector<64x256xbf16>, vector<16x256xf32> -> vector<16x256xf32>
    %98 = vector.extract_strided_slice %97 {offsets = [0, 0], sizes = [4, 256], strides = [1, 1]} : vector<16x256xf32> to vector<4x256xf32>
    %99 = vector.broadcast %57 : vector<1x256xf32> to vector<4x256xf32>
    %100 = arith.mulf %98, %99 : vector<4x256xf32>
    %101 = vector.extract_strided_slice %97 {offsets = [4, 0], sizes = [4, 256], strides = [1, 1]} : vector<16x256xf32> to vector<4x256xf32>
    %102 = vector.broadcast %61 : vector<1x256xf32> to vector<4x256xf32>
    %103 = arith.mulf %101, %102 : vector<4x256xf32>
    %104 = arith.addf %100, %103 : vector<4x256xf32>
    %105 = vector.extract_strided_slice %97 {offsets = [8, 0], sizes = [4, 256], strides = [1, 1]} : vector<16x256xf32> to vector<4x256xf32>
    %106 = vector.broadcast %65 : vector<1x256xf32> to vector<4x256xf32>
    %107 = arith.mulf %105, %106 : vector<4x256xf32>
    %108 = arith.addf %104, %107 : vector<4x256xf32>
    %109 = vector.extract_strided_slice %97 {offsets = [12, 0], sizes = [4, 256], strides = [1, 1]} : vector<16x256xf32> to vector<4x256xf32>
    %110 = vector.broadcast %69 : vector<1x256xf32> to vector<4x256xf32>
    %111 = arith.mulf %109, %110 : vector<4x256xf32>
    %112 = arith.addf %108, %111 : vector<4x256xf32>
    %c0_31 = arith.constant 0 : index
    %c0_32 = arith.constant 0 : index
    %c0_33 = arith.constant 0 : index
    %113 = vector.load %arg6[%c0_31, %c0_32, %c0_33] : memref<1x4x256xf32, #tpu.memory_space<vmem>>, vector<1x4x256xf32>
    %114 = vector.shape_cast %113 : vector<1x4x256xf32> to vector<4x256xf32>
    %115 = vector.extract_strided_slice %1 {offsets = [2, 0], sizes = [1, 256], strides = [1, 1]} : vector<4x256xf32> to vector<1x256xf32>
    %116 = vector.extract_strided_slice %1 {offsets = [3, 0], sizes = [1, 256], strides = [1, 1]} : vector<4x256xf32> to vector<1x256xf32>
    %cst_34 = arith.constant 6.250000e-02 : f32
    %117 = vector.broadcast %cst_34 : f32 to vector<1x256xf32>
    %118 = arith.mulf %115, %117 : vector<1x256xf32>
    %119 = arith.addf %2, %118 : vector<1x256xf32>
    %cst_35 = arith.constant 6.250000e-02 : f32
    %120 = vector.broadcast %cst_35 : f32 to vector<1x256xf32>
    %121 = arith.mulf %116, %120 : vector<1x256xf32>
    %122 = arith.addf %3, %121 : vector<1x256xf32>
    %cst_36 = arith.constant 1.000000e+00 : f32
    %123 = vector.broadcast %cst_36 : f32 to vector<1x256xf32>
    %124 = arith.addf %119, %123 : vector<1x256xf32>
    %cst_37 = arith.constant 7.500000e+00 : f32
    %125 = vector.broadcast %cst_37 : f32 to vector<1x256xf32>
    %126 = arith.mulf %124, %125 : vector<1x256xf32>
    %cst_38 = arith.constant 1.000000e+00 : f32
    %127 = vector.broadcast %cst_38 : f32 to vector<1x256xf32>
    %128 = arith.addf %122, %127 : vector<1x256xf32>
    %cst_39 = arith.constant 7.500000e+00 : f32
    %129 = vector.broadcast %cst_39 : f32 to vector<1x256xf32>
    %130 = arith.mulf %128, %129 : vector<1x256xf32>
    %131 = math.floor %126 : vector<1x256xf32>
    %132 = math.floor %130 : vector<1x256xf32>
    %cst_40 = arith.constant 1.000000e+00 : f32
    %133 = vector.broadcast %cst_40 : f32 to vector<1x256xf32>
    %134 = arith.addf %131, %133 : vector<1x256xf32>
    %cst_41 = arith.constant 1.000000e+00 : f32
    %135 = vector.broadcast %cst_41 : f32 to vector<1x256xf32>
    %136 = arith.addf %132, %135 : vector<1x256xf32>
    %137 = arith.subf %126, %131 : vector<1x256xf32>
    %cst_42 = arith.constant 1.000000e+00 : f32
    %138 = vector.broadcast %cst_42 : f32 to vector<1x256xf32>
    %139 = arith.subf %138, %137 : vector<1x256xf32>
    %140 = arith.subf %130, %132 : vector<1x256xf32>
    %cst_43 = arith.constant 1.000000e+00 : f32
    %141 = vector.broadcast %cst_43 : f32 to vector<1x256xf32>
    %142 = arith.subf %141, %140 : vector<1x256xf32>
    %cst_44 = arith.constant 0.000000e+00 : f32
    %143 = vector.broadcast %cst_44 : f32 to vector<1x256xf32>
    %144 = arith.cmpf oge, %131, %143 : vector<1x256xf32>
    %cst_45 = arith.constant 1.500000e+01 : f32
    %145 = vector.broadcast %cst_45 : f32 to vector<1x256xf32>
    %146 = arith.cmpf ole, %131, %145 : vector<1x256xf32>
    %147 = arith.andi %144, %146 : vector<1x256xi1>
    %cst_46 = arith.constant 0.000000e+00 : f32
    %148 = vector.broadcast %cst_46 : f32 to vector<1x256xf32>
    %149 = arith.cmpf oge, %134, %148 : vector<1x256xf32>
    %cst_47 = arith.constant 1.500000e+01 : f32
    %150 = vector.broadcast %cst_47 : f32 to vector<1x256xf32>
    %151 = arith.cmpf ole, %134, %150 : vector<1x256xf32>
    %152 = arith.andi %149, %151 : vector<1x256xi1>
    %cst_48 = arith.constant 0.000000e+00 : f32
    %153 = vector.broadcast %cst_48 : f32 to vector<1x256xf32>
    %154 = arith.cmpf oge, %132, %153 : vector<1x256xf32>
    %cst_49 = arith.constant 1.500000e+01 : f32
    %155 = vector.broadcast %cst_49 : f32 to vector<1x256xf32>
    %156 = arith.cmpf ole, %132, %155 : vector<1x256xf32>
    %157 = arith.andi %154, %156 : vector<1x256xi1>
    %cst_50 = arith.constant 0.000000e+00 : f32
    %158 = vector.broadcast %cst_50 : f32 to vector<1x256xf32>
    %159 = arith.cmpf oge, %136, %158 : vector<1x256xf32>
    %cst_51 = arith.constant 1.500000e+01 : f32
    %160 = vector.broadcast %cst_51 : f32 to vector<1x256xf32>
    %161 = arith.cmpf ole, %136, %160 : vector<1x256xf32>
    %162 = arith.andi %159, %161 : vector<1x256xi1>
    %163 = arith.andi %157, %147 : vector<1x256xi1>
    %164 = arith.mulf %142, %139 : vector<1x256xf32>
    %cst_52 = arith.constant 0.000000e+00 : f32
    %165 = vector.broadcast %cst_52 : f32 to vector<1x256xf32>
    %166 = arith.select %163, %164, %165 : vector<1x256xi1>, vector<1x256xf32>
    %167 = arith.andi %157, %152 : vector<1x256xi1>
    %168 = arith.mulf %142, %137 : vector<1x256xf32>
    %cst_53 = arith.constant 0.000000e+00 : f32
    %169 = vector.broadcast %cst_53 : f32 to vector<1x256xf32>
    %170 = arith.select %167, %168, %169 : vector<1x256xi1>, vector<1x256xf32>
    %171 = arith.andi %162, %147 : vector<1x256xi1>
    %172 = arith.mulf %140, %139 : vector<1x256xf32>
    %cst_54 = arith.constant 0.000000e+00 : f32
    %173 = vector.broadcast %cst_54 : f32 to vector<1x256xf32>
    %174 = arith.select %171, %172, %173 : vector<1x256xi1>, vector<1x256xf32>
    %175 = arith.andi %162, %152 : vector<1x256xi1>
    %176 = arith.mulf %140, %137 : vector<1x256xf32>
    %cst_55 = arith.constant 0.000000e+00 : f32
    %177 = vector.broadcast %cst_55 : f32 to vector<1x256xf32>
    %178 = arith.select %175, %176, %177 : vector<1x256xi1>, vector<1x256xf32>
    %179 = arith.fptosi %132 : vector<1x256xf32> to vector<1x256xi32>
    %c16_i32 = arith.constant 16 : i32
    %180 = vector.broadcast %c16_i32 : i32 to vector<1x256xi32>
    %181 = arith.muli %179, %180 : vector<1x256xi32>
    %182 = arith.fptosi %131 : vector<1x256xf32> to vector<1x256xi32>
    %183 = arith.addi %181, %182 : vector<1x256xi32>
    %c0_i32_56 = arith.constant 0 : i32
    %184 = vector.broadcast %c0_i32_56 : i32 to vector<1x256xi32>
    %185 = arith.cmpi slt, %183, %184 : vector<1x256xi32>
    %c256_i32 = arith.constant 256 : i32
    %186 = vector.broadcast %c256_i32 : i32 to vector<1x256xi32>
    %187 = arith.addi %183, %186 : vector<1x256xi32>
    %188 = arith.select %185, %187, %183 : vector<1x256xi1>, vector<1x256xi32>
    %189 = tpu.iota {dimensions = array<i32: 0>} : vector<256x256xi32>
    %190 = vector.broadcast %188 : vector<1x256xi32> to vector<256x256xi32>
    %191 = arith.cmpi eq, %189, %190 : vector<256x256xi32>
    %192 = arith.extui %191 : vector<256x256xi1> to vector<256x256xi32>
    %193 = arith.sitofp %192 : vector<256x256xi32> to vector<256x256xf32>
    %194 = arith.truncf %193 : vector<256x256xf32> to vector<256x256xbf16>
    %195 = vector.extract_strided_slice %114 {offsets = [0, 1], sizes = [4, 255], strides = [1, 1]} : vector<4x256xf32> to vector<4x255xf32>
    %196 = vector.extract_strided_slice %114 {offsets = [0, 0], sizes = [4, 1], strides = [1, 1]} : vector<4x256xf32> to vector<4x1xf32>
    %197 = tpu.concatenate %195, %196 in 1 : vector<4x255xf32>, vector<4x1xf32> -> vector<4x256xf32>
    %198 = vector.extract_strided_slice %114 {offsets = [0, 16], sizes = [4, 240], strides = [1, 1]} : vector<4x256xf32> to vector<4x240xf32>
    %199 = vector.extract_strided_slice %114 {offsets = [0, 0], sizes = [4, 16], strides = [1, 1]} : vector<4x256xf32> to vector<4x16xf32>
    %200 = tpu.concatenate %198, %199 in 1 : vector<4x240xf32>, vector<4x16xf32> -> vector<4x256xf32>
    %201 = vector.extract_strided_slice %114 {offsets = [0, 17], sizes = [4, 239], strides = [1, 1]} : vector<4x256xf32> to vector<4x239xf32>
    %202 = vector.extract_strided_slice %114 {offsets = [0, 0], sizes = [4, 17], strides = [1, 1]} : vector<4x256xf32> to vector<4x17xf32>
    %203 = tpu.concatenate %201, %202 in 1 : vector<4x239xf32>, vector<4x17xf32> -> vector<4x256xf32>
    %204 = tpu.concatenate %114, %197, %200, %203 in 0 : vector<4x256xf32>, vector<4x256xf32>, vector<4x256xf32>, vector<4x256xf32> -> vector<16x256xf32>
    %205 = arith.truncf %204 : vector<16x256xf32> to vector<16x256xbf16>
    %cst_57 = arith.constant dense<0.000000e+00> : vector<16x256xf32>
    %206 = tpu.matmul %205, %194, %cst_57 {dimension_numbers = #tpu.dot_dimension_numbers<[1], [0], [0], [1], [0, 0, 1, 1], [], []>} : vector<16x256xbf16>, vector<256x256xbf16>, vector<16x256xf32> -> vector<16x256xf32>
    %207 = vector.extract_strided_slice %206 {offsets = [0, 0], sizes = [4, 256], strides = [1, 1]} : vector<16x256xf32> to vector<4x256xf32>
    %208 = vector.broadcast %166 : vector<1x256xf32> to vector<4x256xf32>
    %209 = arith.mulf %207, %208 : vector<4x256xf32>
    %210 = vector.extract_strided_slice %206 {offsets = [4, 0], sizes = [4, 256], strides = [1, 1]} : vector<16x256xf32> to vector<4x256xf32>
    %211 = vector.broadcast %170 : vector<1x256xf32> to vector<4x256xf32>
    %212 = arith.mulf %210, %211 : vector<4x256xf32>
    %213 = arith.addf %209, %212 : vector<4x256xf32>
    %214 = vector.extract_strided_slice %206 {offsets = [8, 0], sizes = [4, 256], strides = [1, 1]} : vector<16x256xf32> to vector<4x256xf32>
    %215 = vector.broadcast %174 : vector<1x256xf32> to vector<4x256xf32>
    %216 = arith.mulf %214, %215 : vector<4x256xf32>
    %217 = arith.addf %213, %216 : vector<4x256xf32>
    %218 = vector.extract_strided_slice %206 {offsets = [12, 0], sizes = [4, 256], strides = [1, 1]} : vector<16x256xf32> to vector<4x256xf32>
    %219 = vector.broadcast %178 : vector<1x256xf32> to vector<4x256xf32>
    %220 = arith.mulf %218, %219 : vector<4x256xf32>
    %221 = arith.addf %217, %220 : vector<4x256xf32>
    %c0_58 = arith.constant 0 : index
    %c0_59 = arith.constant 0 : index
    %c0_60 = arith.constant 0 : index
    %222 = vector.load %arg7[%c0_58, %c0_59, %c0_60] : memref<1x4x256xf32, #tpu.memory_space<vmem>>, vector<1x4x256xf32>
    %223 = vector.shape_cast %222 : vector<1x4x256xf32> to vector<4x256xf32>
    %224 = vector.shape_cast %112 : vector<4x256xf32> to vector<1x4x256xf32>
    tpu.vector_store %arg7[%c0_58, %c0_59, %c0_60], %224 {strides = array<i32>} : memref<1x4x256xf32, #tpu.memory_space<vmem>>, vector<1x4x256xf32>,
    %c0_61 = arith.constant 0 : index
    %c0_62 = arith.constant 0 : index
    %c0_63 = arith.constant 0 : index
    %225 = vector.load %arg8[%c0_61, %c0_62, %c0_63] : memref<1x4x256xf32, #tpu.memory_space<vmem>>, vector<1x4x256xf32>
    %226 = vector.shape_cast %225 : vector<1x4x256xf32> to vector<4x256xf32>
    %227 = vector.shape_cast %221 : vector<4x256xf32> to vector<1x4x256xf32>
    tpu.vector_store %arg8[%c0_61, %c0_62, %c0_63], %227 {strides = array<i32>} : memref<1x4x256xf32, #tpu.memory_space<vmem>>, vector<1x4x256xf32>,
    %228 = arith.subf %112, %221 : vector<4x256xf32>
    %c0_64 = arith.constant 0 : index
    %c0_65 = arith.constant 0 : index
    %c0_66 = arith.constant 0 : index
    %229 = vector.load %arg9[%c0_64, %c0_65, %c0_66] : memref<1x4x256xf32, #tpu.memory_space<vmem>>, vector<1x4x256xf32>
    %230 = vector.shape_cast %229 : vector<1x4x256xf32> to vector<4x256xf32>
    %231 = vector.shape_cast %228 : vector<4x256xf32> to vector<1x4x256xf32>
    tpu.vector_store %arg9[%c0_64, %c0_65, %c0_66], %231 {strides = array<i32>} : memref<1x4x256xf32, #tpu.memory_space<vmem>>, vector<1x4x256xf32>,
    return
  }
  func.func @transform_0(%arg0: i32, %arg1: i32) -> (i32, i32, i32) {
    %c0_i32 = arith.constant 0 : i32
    %c0_i32_0 = arith.constant 0 : i32
    return %arg0, %c0_i32, %arg1 : i32, i32, i32
  }
  func.func @transform_1(%arg0: i32, %arg1: i32) -> (i32, i32) {
    %c0_i32 = arith.constant 0 : i32
    %c0_i32_0 = arith.constant 0 : i32
    return %c0_i32, %arg1 : i32, i32
  }
  func.func @transform_2(%arg0: i32, %arg1: i32) -> (i32, i32) {
    %c0_i32 = arith.constant 0 : i32
    %c0_i32_0 = arith.constant 0 : i32
    return %c0_i32, %arg1 : i32, i32
  }
  func.func @transform_3(%arg0: i32, %arg1: i32) -> (i32, i32, i32) {
    %c0_i32 = arith.constant 0 : i32
    %c0_i32_0 = arith.constant 0 : i32
    %c0_i32_1 = arith.constant 0 : i32
    return %arg0, %c0_i32, %c0_i32_0 : i32, i32, i32
  }
  func.func @transform_4(%arg0: i32, %arg1: i32) -> (i32, i32, i32) {
    %c0_i32 = arith.constant 0 : i32
    %c0_i32_0 = arith.constant 0 : i32
    %c0_i32_1 = arith.constant 0 : i32
    return %arg0, %c0_i32, %c0_i32_0 : i32, i32, i32
  }
  func.func @transform_5(%arg0: i32, %arg1: i32) -> (i32, i32, i32) {
    %c0_i32 = arith.constant 0 : i32
    %c0_i32_0 = arith.constant 0 : i32
    return %arg0, %c0_i32, %arg1 : i32, i32, i32
  }
  func.func @transform_6(%arg0: i32, %arg1: i32) -> (i32, i32, i32) {
    %c0_i32 = arith.constant 0 : i32
    %c0_i32_0 = arith.constant 0 : i32
    return %arg0, %c0_i32, %arg1 : i32, i32, i32
  }
  func.func @transform_7(%arg0: i32, %arg1: i32) -> (i32, i32, i32) {
    %c0_i32 = arith.constant 0 : i32
    %c0_i32_0 = arith.constant 0 : i32
    return %arg0, %c0_i32, %arg1 : i32, i32, i32
  }
}

module attributes {stable_mosaic.version = 11 : i64} {
  func.func @kernel(%arg0: i32, %arg1: memref<1x4x256xf32, #tpu.memory_space<vmem>>, %arg2: memref<4x36xf32, #tpu.memory_space<vmem>>, %arg3: memref<4x1xf32, #tpu.memory_space<vmem>>, %arg4: memref<4x1xf32, #tpu.memory_space<vmem>>, %arg5: memref<1x256xf32, #tpu.memory_space<vmem>>, %arg6: memref<1x256xf32, #tpu.memory_space<vmem>>, %arg7: memref<1x4x256xf32, #tpu.memory_space<vmem>>, %arg8: memref<36x256xf32, #tpu.memory_space<vmem>>) attributes {dimension_semantics = [#tpu.dimension_semantics<parallel>], iteration_bounds = array<i64: 2>, scalar_prefetch = 0 : i64, scratch_operands = 1 : i64, tpu.core_type = #tpu.core_type<tc>, window_params = [{transform_indices = @transform_0, window_bounds = array<i64: 1, 4, 256>}, {pipeline_mode = #tpu.pipeline_mode<synchronous>, transform_indices = @transform_1, window_bounds = array<i64: 4, 36>}, {pipeline_mode = #tpu.pipeline_mode<synchronous>, transform_indices = @transform_2, window_bounds = array<i64: 4, 1>}, {pipeline_mode = #tpu.pipeline_mode<synchronous>, transform_indices = @transform_3, window_bounds = array<i64: 4, 1>}, {pipeline_mode = #tpu.pipeline_mode<synchronous>, transform_indices = @transform_4, window_bounds = array<i64: 1, 256>}, {pipeline_mode = #tpu.pipeline_mode<synchronous>, transform_indices = @transform_5, window_bounds = array<i64: 1, 256>}, {transform_indices = @transform_6, window_bounds = array<i64: 1, 4, 256>}]} {
    %cst = arith.constant 0.000000e+00 : f32
    %0 = vector.broadcast %cst : f32 to vector<36x256xf32>
    %c0 = arith.constant 0 : index
    %c0_0 = arith.constant 0 : index
    %1 = vector.load %arg8[%c0, %c0_0] : memref<36x256xf32, #tpu.memory_space<vmem>>, vector<36x256xf32>
    tpu.vector_store %arg8[%c0, %c0_0], %0 {strides = array<i32>} : memref<36x256xf32, #tpu.memory_space<vmem>>, vector<36x256xf32>,
    %c0_1 = arith.constant 0 : index
    %c0_2 = arith.constant 0 : index
    %c0_3 = arith.constant 0 : index
    %2 = vector.load %arg1[%c0_1, %c0_2, %c0_3] : memref<1x4x256xf32, #tpu.memory_space<vmem>>, vector<1x4x256xf32>
    %3 = vector.shape_cast %2 : vector<1x4x256xf32> to vector<4x256xf32>
    %c0_4 = arith.constant 0 : index
    %c0_5 = arith.constant 0 : index
    %4 = vector.load %arg5[%c0_4, %c0_5] : memref<1x256xf32, #tpu.memory_space<vmem>>, vector<1x256xf32>
    %c0_6 = arith.constant 0 : index
    %c0_7 = arith.constant 0 : index
    %5 = vector.load %arg6[%c0_6, %c0_7] : memref<1x256xf32, #tpu.memory_space<vmem>>, vector<1x256xf32>
    %6 = vector.extract_strided_slice %3 {offsets = [0, 0], sizes = [4, 239], strides = [1, 1]} : vector<4x256xf32> to vector<4x239xf32>
    %7 = vector.extract_strided_slice %4 {offsets = [0, 17], sizes = [1, 239], strides = [1, 1]} : vector<1x256xf32> to vector<1x239xf32>
    %8 = vector.broadcast %7 : vector<1x239xf32> to vector<4x239xf32>
    %9 = arith.mulf %6, %8 : vector<4x239xf32>
    %c0_8 = arith.constant 0 : index
    %c17 = arith.constant 17 : index
    %10 = vector.load %arg8[%c0_8, %c17] : memref<36x256xf32, #tpu.memory_space<vmem>>, vector<4x239xf32>
    tpu.vector_store %arg8[%c0_8, %c17], %9 {strides = array<i32>} : memref<36x256xf32, #tpu.memory_space<vmem>>, vector<4x239xf32>,
    %11 = vector.extract_strided_slice %3 {offsets = [0, 0], sizes = [4, 240], strides = [1, 1]} : vector<4x256xf32> to vector<4x240xf32>
    %c4 = arith.constant 4 : index
    %c16 = arith.constant 16 : index
    %12 = vector.load %arg8[%c4, %c16] : memref<36x256xf32, #tpu.memory_space<vmem>>, vector<4x240xf32>
    tpu.vector_store %arg8[%c4, %c16], %11 {strides = array<i32>} : memref<36x256xf32, #tpu.memory_space<vmem>>, vector<4x240xf32>,
    %13 = vector.extract_strided_slice %3 {offsets = [0, 0], sizes = [4, 241], strides = [1, 1]} : vector<4x256xf32> to vector<4x241xf32>
    %14 = vector.extract_strided_slice %5 {offsets = [0, 15], sizes = [1, 241], strides = [1, 1]} : vector<1x256xf32> to vector<1x241xf32>
    %15 = vector.broadcast %14 : vector<1x241xf32> to vector<4x241xf32>
    %16 = arith.mulf %13, %15 : vector<4x241xf32>
    %c8 = arith.constant 8 : index
    %c15 = arith.constant 15 : index
    %17 = vector.load %arg8[%c8, %c15] : memref<36x256xf32, #tpu.memory_space<vmem>>, vector<4x241xf32>
    tpu.vector_store %arg8[%c8, %c15], %16 {strides = array<i32>} : memref<36x256xf32, #tpu.memory_space<vmem>>, vector<4x241xf32>,
    %18 = vector.extract_strided_slice %3 {offsets = [0, 0], sizes = [4, 255], strides = [1, 1]} : vector<4x256xf32> to vector<4x255xf32>
    %19 = vector.extract_strided_slice %4 {offsets = [0, 1], sizes = [1, 255], strides = [1, 1]} : vector<1x256xf32> to vector<1x255xf32>
    %20 = vector.broadcast %19 : vector<1x255xf32> to vector<4x255xf32>
    %21 = arith.mulf %18, %20 : vector<4x255xf32>
    %c12 = arith.constant 12 : index
    %c1 = arith.constant 1 : index
    %22 = vector.load %arg8[%c12, %c1] : memref<36x256xf32, #tpu.memory_space<vmem>>, vector<4x255xf32>
    tpu.vector_store %arg8[%c12, %c1], %21 {strides = array<i32>} : memref<36x256xf32, #tpu.memory_space<vmem>>, vector<4x255xf32>,
    %c16_9 = arith.constant 16 : index
    %c0_10 = arith.constant 0 : index
    %23 = vector.load %arg8[%c16_9, %c0_10] : memref<36x256xf32, #tpu.memory_space<vmem>>, vector<4x256xf32>
    tpu.vector_store %arg8[%c16_9, %c0_10], %3 {strides = array<i32>} : memref<36x256xf32, #tpu.memory_space<vmem>>, vector<4x256xf32>,
    %24 = vector.extract_strided_slice %3 {offsets = [0, 1], sizes = [4, 255], strides = [1, 1]} : vector<4x256xf32> to vector<4x255xf32>
    %25 = vector.extract_strided_slice %5 {offsets = [0, 0], sizes = [1, 255], strides = [1, 1]} : vector<1x256xf32> to vector<1x255xf32>
    %26 = vector.broadcast %25 : vector<1x255xf32> to vector<4x255xf32>
    %27 = arith.mulf %24, %26 : vector<4x255xf32>
    %c20 = arith.constant 20 : index
    %c0_11 = arith.constant 0 : index
    %28 = vector.load %arg8[%c20, %c0_11] : memref<36x256xf32, #tpu.memory_space<vmem>>, vector<4x255xf32>
    tpu.vector_store %arg8[%c20, %c0_11], %27 {strides = array<i32>} : memref<36x256xf32, #tpu.memory_space<vmem>>, vector<4x255xf32>,
    %29 = vector.extract_strided_slice %3 {offsets = [0, 15], sizes = [4, 241], strides = [1, 1]} : vector<4x256xf32> to vector<4x241xf32>
    %30 = vector.extract_strided_slice %4 {offsets = [0, 0], sizes = [1, 241], strides = [1, 1]} : vector<1x256xf32> to vector<1x241xf32>
    %31 = vector.broadcast %30 : vector<1x241xf32> to vector<4x241xf32>
    %32 = arith.mulf %29, %31 : vector<4x241xf32>
    %c24 = arith.constant 24 : index
    %c0_12 = arith.constant 0 : index
    %33 = vector.load %arg8[%c24, %c0_12] : memref<36x256xf32, #tpu.memory_space<vmem>>, vector<4x241xf32>
    tpu.vector_store %arg8[%c24, %c0_12], %32 {strides = array<i32>} : memref<36x256xf32, #tpu.memory_space<vmem>>, vector<4x241xf32>,
    %34 = vector.extract_strided_slice %3 {offsets = [0, 16], sizes = [4, 240], strides = [1, 1]} : vector<4x256xf32> to vector<4x240xf32>
    %c28 = arith.constant 28 : index
    %c0_13 = arith.constant 0 : index
    %35 = vector.load %arg8[%c28, %c0_13] : memref<36x256xf32, #tpu.memory_space<vmem>>, vector<4x240xf32>
    tpu.vector_store %arg8[%c28, %c0_13], %34 {strides = array<i32>} : memref<36x256xf32, #tpu.memory_space<vmem>>, vector<4x240xf32>,
    %36 = vector.extract_strided_slice %3 {offsets = [0, 17], sizes = [4, 239], strides = [1, 1]} : vector<4x256xf32> to vector<4x239xf32>
    %37 = vector.extract_strided_slice %5 {offsets = [0, 0], sizes = [1, 239], strides = [1, 1]} : vector<1x256xf32> to vector<1x239xf32>
    %38 = vector.broadcast %37 : vector<1x239xf32> to vector<4x239xf32>
    %39 = arith.mulf %36, %38 : vector<4x239xf32>
    %c32 = arith.constant 32 : index
    %c0_14 = arith.constant 0 : index
    %40 = vector.load %arg8[%c32, %c0_14] : memref<36x256xf32, #tpu.memory_space<vmem>>, vector<4x239xf32>
    tpu.vector_store %arg8[%c32, %c0_14], %39 {strides = array<i32>} : memref<36x256xf32, #tpu.memory_space<vmem>>, vector<4x239xf32>,
    %c0_15 = arith.constant 0 : index
    %c0_16 = arith.constant 0 : index
    %41 = vector.load %arg2[%c0_15, %c0_16] : memref<4x36xf32, #tpu.memory_space<vmem>>, vector<4x36xf32>
    %42 = arith.truncf %41 : vector<4x36xf32> to vector<4x36xbf16>
    %c0_17 = arith.constant 0 : index
    %c0_18 = arith.constant 0 : index
    %43 = vector.load %arg8[%c0_17, %c0_18] : memref<36x256xf32, #tpu.memory_space<vmem>>, vector<36x256xf32>
    %44 = arith.truncf %43 : vector<36x256xf32> to vector<36x256xbf16>
    %cst_19 = arith.constant dense<0.000000e+00> : vector<4x256xf32>
    %45 = tpu.matmul %42, %44, %cst_19 {dimension_numbers = #tpu.dot_dimension_numbers<[1], [0], [0], [1], [0, 0, 1, 1], [], []>} : vector<4x36xbf16>, vector<36x256xbf16>, vector<4x256xf32> -> vector<4x256xf32>
    %c0_20 = arith.constant 0 : index
    %c0_21 = arith.constant 0 : index
    %46 = vector.load %arg3[%c0_20, %c0_21] : memref<4x1xf32, #tpu.memory_space<vmem>>, vector<4x1xf32>
    %47 = vector.broadcast %46 : vector<4x1xf32> to vector<4x256xf32>
    %48 = arith.mulf %45, %47 : vector<4x256xf32>
    %c0_22 = arith.constant 0 : index
    %c0_23 = arith.constant 0 : index
    %49 = vector.load %arg4[%c0_22, %c0_23] : memref<4x1xf32, #tpu.memory_space<vmem>>, vector<4x1xf32>
    %50 = vector.broadcast %49 : vector<4x1xf32> to vector<4x256xf32>
    %51 = arith.addf %48, %50 : vector<4x256xf32>
    %cst_24 = arith.constant 0.000000e+00 : f32
    %52 = vector.broadcast %cst_24 : f32 to vector<4x256xf32>
    %53 = arith.cmpf oge, %51, %52 : vector<4x256xf32>
    %cst_25 = arith.constant 0.00999999977 : f32
    %54 = vector.broadcast %cst_25 : f32 to vector<4x256xf32>
    %55 = arith.mulf %54, %51 : vector<4x256xf32>
    %56 = arith.select %53, %51, %55 : vector<4x256xi1>, vector<4x256xf32>
    %c0_26 = arith.constant 0 : index
    %c0_27 = arith.constant 0 : index
    %c0_28 = arith.constant 0 : index
    %57 = vector.load %arg7[%c0_26, %c0_27, %c0_28] : memref<1x4x256xf32, #tpu.memory_space<vmem>>, vector<1x4x256xf32>
    %58 = vector.shape_cast %57 : vector<1x4x256xf32> to vector<4x256xf32>
    %59 = vector.shape_cast %56 : vector<4x256xf32> to vector<1x4x256xf32>
    tpu.vector_store %arg7[%c0_26, %c0_27, %c0_28], %59 {strides = array<i32>} : memref<1x4x256xf32, #tpu.memory_space<vmem>>, vector<1x4x256xf32>,
    return
  }
  func.func @transform_0(%arg0: i32) -> (i32, i32, i32) {
    %c0_i32 = arith.constant 0 : i32
    %c0_i32_0 = arith.constant 0 : i32
    %c0_i32_1 = arith.constant 0 : i32
    return %arg0, %c0_i32, %c0_i32_0 : i32, i32, i32
  }
  func.func @transform_1(%arg0: i32) -> (i32, i32) {
    %c0_i32 = arith.constant 0 : i32
    %c0_i32_0 = arith.constant 0 : i32
    %c0_i32_1 = arith.constant 0 : i32
    return %c0_i32, %c0_i32_0 : i32, i32
  }
  func.func @transform_2(%arg0: i32) -> (i32, i32) {
    %c0_i32 = arith.constant 0 : i32
    %c0_i32_0 = arith.constant 0 : i32
    %c0_i32_1 = arith.constant 0 : i32
    return %c0_i32, %c0_i32_0 : i32, i32
  }
  func.func @transform_3(%arg0: i32) -> (i32, i32) {
    %c0_i32 = arith.constant 0 : i32
    %c0_i32_0 = arith.constant 0 : i32
    %c0_i32_1 = arith.constant 0 : i32
    return %c0_i32, %c0_i32_0 : i32, i32
  }
  func.func @transform_4(%arg0: i32) -> (i32, i32) {
    %c0_i32 = arith.constant 0 : i32
    %c0_i32_0 = arith.constant 0 : i32
    %c0_i32_1 = arith.constant 0 : i32
    return %c0_i32, %c0_i32_0 : i32, i32
  }
  func.func @transform_5(%arg0: i32) -> (i32, i32) {
    %c0_i32 = arith.constant 0 : i32
    %c0_i32_0 = arith.constant 0 : i32
    %c0_i32_1 = arith.constant 0 : i32
    return %c0_i32, %c0_i32_0 : i32, i32
  }
  func.func @transform_6(%arg0: i32) -> (i32, i32, i32) {
    %c0_i32 = arith.constant 0 : i32
    %c0_i32_0 = arith.constant 0 : i32
    %c0_i32_1 = arith.constant 0 : i32
    return %arg0, %c0_i32, %c0_i32_0 : i32, i32, i32
  }
}

module attributes {stable_mosaic.version = 11 : i64} {
  func.func @kernel(%arg0: i32, %arg1: memref<1x4x256xf32, #tpu.memory_space<vmem>>, %arg2: memref<1x4x256xf32, #tpu.memory_space<vmem>>, %arg3: memref<1x4x256xf32, #tpu.memory_space<vmem>>, %arg4: memref<1x36xf32, #tpu.memory_space<vmem>>, %arg5: memref<1x256xf32, #tpu.memory_space<vmem>>, %arg6: memref<1x256xf32, #tpu.memory_space<vmem>>, %arg7: memref<1x4x256xf32, #tpu.memory_space<vmem>>, %arg8: memref<36x256xf32, #tpu.memory_space<vmem>>) attributes {dimension_semantics = [#tpu.dimension_semantics<parallel>], iteration_bounds = array<i64: 2>, scalar_prefetch = 0 : i64, scratch_operands = 1 : i64, tpu.core_type = #tpu.core_type<tc>, window_params = [{transform_indices = @transform_0, window_bounds = array<i64: 1, 4, 256>}, {transform_indices = @transform_1, window_bounds = array<i64: 1, 4, 256>}, {transform_indices = @transform_2, window_bounds = array<i64: 1, 4, 256>}, {pipeline_mode = #tpu.pipeline_mode<synchronous>, transform_indices = @transform_3, window_bounds = array<i64: 1, 36>}, {pipeline_mode = #tpu.pipeline_mode<synchronous>, transform_indices = @transform_4, window_bounds = array<i64: 1, 256>}, {pipeline_mode = #tpu.pipeline_mode<synchronous>, transform_indices = @transform_5, window_bounds = array<i64: 1, 256>}, {transform_indices = @transform_6, window_bounds = array<i64: 1, 4, 256>}]} {
    %cst = arith.constant 0.000000e+00 : f32
    %0 = vector.broadcast %cst : f32 to vector<36x256xf32>
    %c0 = arith.constant 0 : index
    %c0_0 = arith.constant 0 : index
    %1 = vector.load %arg8[%c0, %c0_0] : memref<36x256xf32, #tpu.memory_space<vmem>>, vector<36x256xf32>
    tpu.vector_store %arg8[%c0, %c0_0], %0 {strides = array<i32>} : memref<36x256xf32, #tpu.memory_space<vmem>>, vector<36x256xf32>,
    %c0_1 = arith.constant 0 : index
    %c0_2 = arith.constant 0 : index
    %c0_3 = arith.constant 0 : index
    %2 = vector.load %arg1[%c0_1, %c0_2, %c0_3] : memref<1x4x256xf32, #tpu.memory_space<vmem>>, vector<1x4x256xf32>
    %3 = vector.shape_cast %2 : vector<1x4x256xf32> to vector<4x256xf32>
    %c0_4 = arith.constant 0 : index
    %c0_5 = arith.constant 0 : index
    %4 = vector.load %arg5[%c0_4, %c0_5] : memref<1x256xf32, #tpu.memory_space<vmem>>, vector<1x256xf32>
    %c0_6 = arith.constant 0 : index
    %c0_7 = arith.constant 0 : index
    %5 = vector.load %arg6[%c0_6, %c0_7] : memref<1x256xf32, #tpu.memory_space<vmem>>, vector<1x256xf32>
    %6 = vector.extract_strided_slice %3 {offsets = [0, 0], sizes = [4, 239], strides = [1, 1]} : vector<4x256xf32> to vector<4x239xf32>
    %7 = vector.extract_strided_slice %4 {offsets = [0, 17], sizes = [1, 239], strides = [1, 1]} : vector<1x256xf32> to vector<1x239xf32>
    %8 = vector.broadcast %7 : vector<1x239xf32> to vector<4x239xf32>
    %9 = arith.mulf %6, %8 : vector<4x239xf32>
    %c0_8 = arith.constant 0 : index
    %c17 = arith.constant 17 : index
    %10 = vector.load %arg8[%c0_8, %c17] : memref<36x256xf32, #tpu.memory_space<vmem>>, vector<4x239xf32>
    tpu.vector_store %arg8[%c0_8, %c17], %9 {strides = array<i32>} : memref<36x256xf32, #tpu.memory_space<vmem>>, vector<4x239xf32>,
    %11 = vector.extract_strided_slice %3 {offsets = [0, 0], sizes = [4, 240], strides = [1, 1]} : vector<4x256xf32> to vector<4x240xf32>
    %c4 = arith.constant 4 : index
    %c16 = arith.constant 16 : index
    %12 = vector.load %arg8[%c4, %c16] : memref<36x256xf32, #tpu.memory_space<vmem>>, vector<4x240xf32>
    tpu.vector_store %arg8[%c4, %c16], %11 {strides = array<i32>} : memref<36x256xf32, #tpu.memory_space<vmem>>, vector<4x240xf32>,
    %13 = vector.extract_strided_slice %3 {offsets = [0, 0], sizes = [4, 241], strides = [1, 1]} : vector<4x256xf32> to vector<4x241xf32>
    %14 = vector.extract_strided_slice %5 {offsets = [0, 15], sizes = [1, 241], strides = [1, 1]} : vector<1x256xf32> to vector<1x241xf32>
    %15 = vector.broadcast %14 : vector<1x241xf32> to vector<4x241xf32>
    %16 = arith.mulf %13, %15 : vector<4x241xf32>
    %c8 = arith.constant 8 : index
    %c15 = arith.constant 15 : index
    %17 = vector.load %arg8[%c8, %c15] : memref<36x256xf32, #tpu.memory_space<vmem>>, vector<4x241xf32>
    tpu.vector_store %arg8[%c8, %c15], %16 {strides = array<i32>} : memref<36x256xf32, #tpu.memory_space<vmem>>, vector<4x241xf32>,
    %18 = vector.extract_strided_slice %3 {offsets = [0, 0], sizes = [4, 255], strides = [1, 1]} : vector<4x256xf32> to vector<4x255xf32>
    %19 = vector.extract_strided_slice %4 {offsets = [0, 1], sizes = [1, 255], strides = [1, 1]} : vector<1x256xf32> to vector<1x255xf32>
    %20 = vector.broadcast %19 : vector<1x255xf32> to vector<4x255xf32>
    %21 = arith.mulf %18, %20 : vector<4x255xf32>
    %c12 = arith.constant 12 : index
    %c1 = arith.constant 1 : index
    %22 = vector.load %arg8[%c12, %c1] : memref<36x256xf32, #tpu.memory_space<vmem>>, vector<4x255xf32>
    tpu.vector_store %arg8[%c12, %c1], %21 {strides = array<i32>} : memref<36x256xf32, #tpu.memory_space<vmem>>, vector<4x255xf32>,
    %c16_9 = arith.constant 16 : index
    %c0_10 = arith.constant 0 : index
    %23 = vector.load %arg8[%c16_9, %c0_10] : memref<36x256xf32, #tpu.memory_space<vmem>>, vector<4x256xf32>
    tpu.vector_store %arg8[%c16_9, %c0_10], %3 {strides = array<i32>} : memref<36x256xf32, #tpu.memory_space<vmem>>, vector<4x256xf32>,
    %24 = vector.extract_strided_slice %3 {offsets = [0, 1], sizes = [4, 255], strides = [1, 1]} : vector<4x256xf32> to vector<4x255xf32>
    %25 = vector.extract_strided_slice %5 {offsets = [0, 0], sizes = [1, 255], strides = [1, 1]} : vector<1x256xf32> to vector<1x255xf32>
    %26 = vector.broadcast %25 : vector<1x255xf32> to vector<4x255xf32>
    %27 = arith.mulf %24, %26 : vector<4x255xf32>
    %c20 = arith.constant 20 : index
    %c0_11 = arith.constant 0 : index
    %28 = vector.load %arg8[%c20, %c0_11] : memref<36x256xf32, #tpu.memory_space<vmem>>, vector<4x255xf32>
    tpu.vector_store %arg8[%c20, %c0_11], %27 {strides = array<i32>} : memref<36x256xf32, #tpu.memory_space<vmem>>, vector<4x255xf32>,
    %29 = vector.extract_strided_slice %3 {offsets = [0, 15], sizes = [4, 241], strides = [1, 1]} : vector<4x256xf32> to vector<4x241xf32>
    %30 = vector.extract_strided_slice %4 {offsets = [0, 0], sizes = [1, 241], strides = [1, 1]} : vector<1x256xf32> to vector<1x241xf32>
    %31 = vector.broadcast %30 : vector<1x241xf32> to vector<4x241xf32>
    %32 = arith.mulf %29, %31 : vector<4x241xf32>
    %c24 = arith.constant 24 : index
    %c0_12 = arith.constant 0 : index
    %33 = vector.load %arg8[%c24, %c0_12] : memref<36x256xf32, #tpu.memory_space<vmem>>, vector<4x241xf32>
    tpu.vector_store %arg8[%c24, %c0_12], %32 {strides = array<i32>} : memref<36x256xf32, #tpu.memory_space<vmem>>, vector<4x241xf32>,
    %34 = vector.extract_strided_slice %3 {offsets = [0, 16], sizes = [4, 240], strides = [1, 1]} : vector<4x256xf32> to vector<4x240xf32>
    %c28 = arith.constant 28 : index
    %c0_13 = arith.constant 0 : index
    %35 = vector.load %arg8[%c28, %c0_13] : memref<36x256xf32, #tpu.memory_space<vmem>>, vector<4x240xf32>
    tpu.vector_store %arg8[%c28, %c0_13], %34 {strides = array<i32>} : memref<36x256xf32, #tpu.memory_space<vmem>>, vector<4x240xf32>,
    %36 = vector.extract_strided_slice %3 {offsets = [0, 17], sizes = [4, 239], strides = [1, 1]} : vector<4x256xf32> to vector<4x239xf32>
    %37 = vector.extract_strided_slice %5 {offsets = [0, 0], sizes = [1, 239], strides = [1, 1]} : vector<1x256xf32> to vector<1x239xf32>
    %38 = vector.broadcast %37 : vector<1x239xf32> to vector<4x239xf32>
    %39 = arith.mulf %36, %38 : vector<4x239xf32>
    %c32 = arith.constant 32 : index
    %c0_14 = arith.constant 0 : index
    %40 = vector.load %arg8[%c32, %c0_14] : memref<36x256xf32, #tpu.memory_space<vmem>>, vector<4x239xf32>
    tpu.vector_store %arg8[%c32, %c0_14], %39 {strides = array<i32>} : memref<36x256xf32, #tpu.memory_space<vmem>>, vector<4x239xf32>,
    %c0_15 = arith.constant 0 : index
    %c0_16 = arith.constant 0 : index
    %41 = vector.load %arg4[%c0_15, %c0_16] : memref<1x36xf32, #tpu.memory_space<vmem>>, vector<1x36xf32>
    %42 = arith.truncf %41 : vector<1x36xf32> to vector<1x36xbf16>
    %c0_17 = arith.constant 0 : index
    %c0_18 = arith.constant 0 : index
    %43 = vector.load %arg8[%c0_17, %c0_18] : memref<36x256xf32, #tpu.memory_space<vmem>>, vector<36x256xf32>
    %44 = arith.truncf %43 : vector<36x256xf32> to vector<36x256xbf16>
    %cst_19 = arith.constant dense<0.000000e+00> : vector<1x256xf32>
    %45 = tpu.matmul %42, %44, %cst_19 {dimension_numbers = #tpu.dot_dimension_numbers<[1], [0], [0], [1], [0, 0, 1, 1], [], []>} : vector<1x36xbf16>, vector<36x256xbf16>, vector<1x256xf32> -> vector<1x256xf32>
    %46 = arith.negf %45 : vector<1x256xf32>
    %47 = math.exp %46 : vector<1x256xf32>
    %cst_20 = arith.constant 1.000000e+00 : f32
    %48 = vector.broadcast %cst_20 : f32 to vector<1x256xf32>
    %49 = arith.addf %48, %47 : vector<1x256xf32>
    %50 = arith.divf %48, %49 : vector<1x256xf32>
    %c0_21 = arith.constant 0 : index
    %c0_22 = arith.constant 0 : index
    %c0_23 = arith.constant 0 : index
    %51 = vector.load %arg2[%c0_21, %c0_22, %c0_23] : memref<1x4x256xf32, #tpu.memory_space<vmem>>, vector<1x4x256xf32>
    %52 = vector.shape_cast %51 : vector<1x4x256xf32> to vector<4x256xf32>
    %cst_24 = arith.constant 1.000000e+00 : f32
    %53 = vector.broadcast %cst_24 : f32 to vector<1x256xf32>
    %54 = arith.addf %53, %50 : vector<1x256xf32>
    %55 = vector.broadcast %54 : vector<1x256xf32> to vector<4x256xf32>
    %56 = arith.mulf %52, %55 : vector<4x256xf32>
    %c0_25 = arith.constant 0 : index
    %c0_26 = arith.constant 0 : index
    %c0_27 = arith.constant 0 : index
    %57 = vector.load %arg3[%c0_25, %c0_26, %c0_27] : memref<1x4x256xf32, #tpu.memory_space<vmem>>, vector<1x4x256xf32>
    %58 = vector.shape_cast %57 : vector<1x4x256xf32> to vector<4x256xf32>
    %cst_28 = arith.constant 2.000000e+00 : f32
    %59 = vector.broadcast %cst_28 : f32 to vector<1x256xf32>
    %60 = arith.subf %59, %50 : vector<1x256xf32>
    %61 = vector.broadcast %60 : vector<1x256xf32> to vector<4x256xf32>
    %62 = arith.mulf %58, %61 : vector<4x256xf32>
    %63 = arith.addf %56, %62 : vector<4x256xf32>
    %c0_29 = arith.constant 0 : index
    %c0_30 = arith.constant 0 : index
    %c0_31 = arith.constant 0 : index
    %64 = vector.load %arg7[%c0_29, %c0_30, %c0_31] : memref<1x4x256xf32, #tpu.memory_space<vmem>>, vector<1x4x256xf32>
    %65 = vector.shape_cast %64 : vector<1x4x256xf32> to vector<4x256xf32>
    %66 = vector.shape_cast %63 : vector<4x256xf32> to vector<1x4x256xf32>
    tpu.vector_store %arg7[%c0_29, %c0_30, %c0_31], %66 {strides = array<i32>} : memref<1x4x256xf32, #tpu.memory_space<vmem>>, vector<1x4x256xf32>,
    return
  }
  func.func @transform_0(%arg0: i32) -> (i32, i32, i32) {
    %c0_i32 = arith.constant 0 : i32
    %c0_i32_0 = arith.constant 0 : i32
    %c0_i32_1 = arith.constant 0 : i32
    return %arg0, %c0_i32, %c0_i32_0 : i32, i32, i32
  }
  func.func @transform_1(%arg0: i32) -> (i32, i32, i32) {
    %c0_i32 = arith.constant 0 : i32
    %c0_i32_0 = arith.constant 0 : i32
    %c0_i32_1 = arith.constant 0 : i32
    return %arg0, %c0_i32, %c0_i32_0 : i32, i32, i32
  }
  func.func @transform_2(%arg0: i32) -> (i32, i32, i32) {
    %c0_i32 = arith.constant 0 : i32
    %c0_i32_0 = arith.constant 0 : i32
    %c0_i32_1 = arith.constant 0 : i32
    return %arg0, %c0_i32, %c0_i32_0 : i32, i32, i32
  }
  func.func @transform_3(%arg0: i32) -> (i32, i32) {
    %c0_i32 = arith.constant 0 : i32
    %c0_i32_0 = arith.constant 0 : i32
    %c0_i32_1 = arith.constant 0 : i32
    return %c0_i32, %c0_i32_0 : i32, i32
  }
  func.func @transform_4(%arg0: i32) -> (i32, i32) {
    %c0_i32 = arith.constant 0 : i32
    %c0_i32_0 = arith.constant 0 : i32
    %c0_i32_1 = arith.constant 0 : i32
    return %c0_i32, %c0_i32_0 : i32, i32
  }
  func.func @transform_5(%arg0: i32) -> (i32, i32) {
    %c0_i32 = arith.constant 0 : i32
    %c0_i32_0 = arith.constant 0 : i32
    %c0_i32_1 = arith.constant 0 : i32
    return %c0_i32, %c0_i32_0 : i32, i32
  }
  func.func @transform_6(%arg0: i32) -> (i32, i32, i32) {
    %c0_i32 = arith.constant 0 : i32
    %c0_i32_0 = arith.constant 0 : i32
    %c0_i32_1 = arith.constant 0 : i32
    return %arg0, %c0_i32, %c0_i32_0 : i32, i32, i32
  }
}

</mosaic_0001>

<bundles_post_ra>
// kernel: aligned_module_forward.7
= control target key start
LH: loop header
LB: loop body
LE: loop exit
PB: predicated region body
PF: predicated region fallthrough
CT: control target
= control target key end

     0   :  { %s517_s18 = smov 0   ;;  %s595_s0 = inlined_call_operand.vmem [shape: f32[2,4,64], index: 0, kind: input, shape index: {}]   ;;  %s596_s1 = inlined_call_operand.vmem [shape: f32[4,4], index: 1, kind: input, shape index: {}]   ;;  %s597_s2 = inlined_call_operand.vmem [shape: f32[4,1], index: 2, kind: input, shape index: {}]   ;;  %s598_s3 = inlined_call_operand.vmem [shape: f32[4,1], index: 3, kind: input, shape index: {}]   ;;  %s599_s4 = inlined_call_operand.vmem [shape: f32[64,256], index: 4, kind: input, shape index: {}]   ;;  %s600_s5 = inlined_call_operand.vmem [shape: f32[2,4,256], index: 5, kind: output, shape index: {}]  }
   0x1 LB: > { %s443_s19 = sadd.s32 4294967295, %s482_s18   ;;  %p447_p0 = scmp.ge.s32.totalorder %s482_s18, 1  ;;  %s482_s18 = sphi %s517_s18, %s15_s18  }
   0x2   : > { %p186_p1 = scmp.lt.s32.totalorder %s482_s18, 3 }
   0x4   : > { %p187_p2 = pnand %p447_p0, %p186_p1 }
   0x5   : > { %p213_p3 = scmp.lt.s32.totalorder (!%p187_p2), %s443_s19, 1 }
   0x6   : > { %190 = sbr.rel (%p187_p2) target bundleno = 420 (0x1a4), region = 40 }
   0xb   : > { %v484_v0 = vmov 0.0   ;;  %vm485_vm0 = vmmov 0   ;;  %v275_v1 = vld [vmem:[%s597_s2] sm:$0xf]  ;;  %s602_s19 = smov (!%p213_p3, %s443_s19), 1  ;;  %v486_v2 = vmov 0  }
   0xc   : > { %458 = vmatprep.subr.bf16.mxu0 %v484_v0  ;;  %460 = vmatprep.mubr.msk.bf16.mxu0 %vm485_vm0, %v484_v0  ;;  %v307_v3 = vld [vmem:[%s599_s4 + $0x78] sm:$0xff]  ;;  %v306_v4 = vld [vmem:[%s599_s4 + $0x70] sm:$0xff]  ;;  %v305_v5 = vld [vmem:[%s599_s4 + $0x68] sm:$0xff]  ;;  %s448_s30 = sshll.u32 %s602_s19, 2  ;;  %vm231_vm1 = vcmask 1041408   ;;  %vm227_vm2 = vcmask 31744  }
   0xd   : > { %475 = vset.pattern.permute.xlu0 %v486_v2  ;;  %376 = vmatprep.mubr.f32.mxu1 %v484_v0  ;;  %v304_v6 = vld [vmem:[%s599_s4 + $0x60] sm:$0xff]  ;;  %v303_v8 = vld [vmem:[%s599_s4 + $0x58] sm:$0xff]  ;;  %s216_s12 = scalar_lea.vmem %s595_s0, %s448_s30  ;;  %v302_v9 = vld [vmem:[%s599_s4 + $0x50] sm:$0xff]  ;;  %vm308_vm4 = vcmask 523264   ;;  %s455_s14 = sshll.u32 %s602_s19, 3 }
   0xe   : > { %278 = vperm.xlu0 %475, %v275_v1   ;;  %328 = vmatprep.subr.mxu1 %v307_v3  ;;  %v282_v7 = vld [vmem:[%s598_s3] sm:$0xf]  ;;  %v301_v12 = vld [vmem:[%s599_s4 + $0x48] sm:$0xff]  ;;  %v299_v17 = vld [vmem:[%s599_s4 + $0x38] sm:$0xff]  ;;  %s221_s17 = scalar_lea.vmem %s600_s5, %s455_s14 }
   0xf   : > { %329 = vmatpush1.msra.mxu1 %v306_v4  ;;  %v225_v10 = vld [vmem:[%s216_s12] sm:$0xf]  ;;  %v298_v18 = vld [vmem:[%s599_s4 + $0x30] sm:$0xff]  ;;  %v297_v19 = vld [vmem:[%s599_s4 + $0x28] sm:$0xff] }
  0x10   : > { %330 = vmatprep.subr.mxu1 %v305_v5  ;;  %v223_v11 = vld [vmem:[%s596_s1] sm:$0xf]  ;;  %v226_v13 = vpack.c.bf16 %v225_v10, %v225_v10  ;;  %v295_v21 = vld [vmem:[%s599_s4 + $0x18] sm:$0xff]  ;;  %v294_v22 = vld [vmem:[%s599_s4 + $0x10] sm:$0xff] }
  0x11   : > { %331 = vmatpush1.msra.mxu1 %v304_v6  ;;  %v300_v14 = vld [vmem:[%s599_s4 + $0x40] sm:$0xff]  ;;  %v224_v16 = vpack.c.bf16 %v223_v11, %v223_v11  ;;  %v293_v23 = vld [vmem:[%s599_s4 + $0x8] sm:$0xff] }
  0x12   : > { %285 = vperm.xlu0 %475, %v282_v7   ;;  %332 = vmatprep.subr.mxu1 %v303_v8  ;;  %v233_v15 = vsel %vm231_vm1, %v226_v13, 0  ;;  %v296_v20 = vld [vmem:[%s599_s4 + $0x20] sm:$0xff] }
  0x13   : > { %333 = vmatpush1.msra.mxu1 %v302_v9  ;;  %459 = vmatpush3.bf16.msra.mxu0 %v233_v15  ;;  %v292_v24 = vld [vmem:[%s599_s4] sm:$0xff] }
  0x14   : > { %334 = vmatprep.subr.mxu1 %v301_v12 }
  0x15   : > { %335 = vmatpush1.msra.mxu1 %v300_v14 }
  0x16   : > { %461 = vmatmul.mubr.msk.bf16.vlgmr.msra.gmra.mxu0 %vm227_vm2, %v224_v16  ;;  %336 = vmatprep.subr.mxu1 %v299_v17 }
  0x17   : > { %337 = vmatpush1.msra.mxu1 %v298_v18 }
  0x18   : > { %338 = vmatprep.subr.mxu1 %v297_v19 }
  0x19   : > { %339 = vmatpush1.msra.mxu1 %v296_v20 }
  0x1a   : > { %340 = vmatprep.subr.mxu1 %v295_v21 }
  0x1b   : > { %341 = vmatpush1.msra.mxu1 %v294_v22 }
  0x1c   : > { %342 = vmatprep.subr.mxu1 %v293_v23 }
  0x1d   : > { %343 = vmatpush1.msra.mxu1 %v292_v24 }
  0x89   : > { %v279_v25 = vpop.permute.xlu0 %278 }
  0x8d   : > { %v286_v28 = vpop.permute.xlu0 %285 }
  0xd6   : > { %v269_v26 = vpop.f32.mrf.mxu0 }
  0xd7   : > { %v281_v27 = vmul.f32 %v279_v25, %v269_v26 }
  0xd8   : > { %v462_v29 = vpop.f32.mrf.mxu0 }
  0xd9   : > { %v288_v30 = vadd.f32 %v286_v28, %v281_v27 }
  0xda   : > { %v272_v31 = vpop.f32.mrf.mxu0 }
  0xdb   : > { %v290_v32 = vmul.f32 0.01, %v288_v30  ;;  %vm289_vm3 = vcmp.ge.f32.partialorder %v288_v30, 0.0 }
  0xdc   : > { %v463_v33 = vpop.f32.mrf.mxu0 }
  0xdd   : > { %v291_v34 = vsel %vm289_vm3, %v288_v30, %v290_v32 }
  0xde   : > { %452 = vmatmul.mubr.msk.f32.vlgmr.msra.gmra.mxu1 %vm308_vm4, %v291_v34 }
 0x19e   : > { %v378_v35 = vpop.f32.mrf.mxu1 }
 0x1a0   : > { %v380_v36 = vpop.f32.mrf.mxu1 }
 0x1a1   : > { %v385_v37 = vcombine.low %v378_v35, %v380_v36 }
 0x1a3   : > { %387 = vst [vmem:[%s221_s17] sm:$0xff] %v385_v37 }
 0x1a4 PF: > { %s15_s18 = sadd.s32 1, %s482_s18  }
 0x1a5   : > { %p12_p4 = scmp.ge.s32.totalorder %s15_s18, 4  }
 0x1a7   :  { %14 = sbr.rel (!%p12_p4) target bundleno = 1 (0x1), region = 70 }

// kernel: aligned_module_forward.6
= control target key start
LH: loop header
LB: loop body
LE: loop exit
PB: predicated region body
PF: predicated region fallthrough
CT: control target
= control target key end

     0   :  { %s504_s15 = smov 0   ;;  %s506_s16 = smov 0   ;;  %s553_s0 = inlined_call_operand.vmem [shape: f32[2,4,256], index: 0, kind: input, shape index: {}]   ;;  %s554_s1 = inlined_call_operand.vmem [shape: f32[4,4], index: 1, kind: input, shape index: {}]   ;;  %s555_s2 = inlined_call_operand.vmem [shape: f32[4,1], index: 2, kind: input, shape index: {}]   ;;  %s556_s3 = inlined_call_operand.vmem [shape: f32[4,1], index: 3, kind: input, shape index: {}]   ;;  %s557_s4 = inlined_call_operand.vmem [shape: f32[2,4,256], index: 4, kind: output, shape index: {}]  }
   0x1   :  { %s508_s17 = smov 0  }
   0x2 LB: > { %s26_s18 = sadd.s32 1, %s472_s16  ;;  %p416_p0 = scmp.ge.s32.totalorder %s476_s17, 1  ;;  %s476_s17 = sphi %s508_s17, %s14_s17   ;;  %s472_s16 = sphi %s506_s16, %s559_s16   ;;  %s468_s15 = sphi %s504_s15, %s558_s15  }
   0x3   : > { %p28_p1 = scmp.ge.s32.totalorder %s26_s18, 2  ;;  %p183_p2 = scmp.lt.s32.totalorder %s476_s17, 3 }
   0x5   : > { %s561_s18 = smov (%p28_p1, %s26_s18), 0  ;;  %p184_p3 = pnand %p416_p0, %p183_p2 }
   0x6   : > { %p218_p4 = scmp.lt.s32.totalorder (!%p184_p3), %s468_s15, 1 }
   0x7   : > { %187 = sbr.rel (%p184_p3) target bundleno = 229 (0xe5), region = 36 }
   0xc   : > { %v478_v0 = vmov 0   ;;  %v298_v1 = vld [vmem:[%s555_s2] sm:$0xf]  ;;  %s563_s15 = smov (!%p218_p4, %s468_s15), 1  ;;  %vm250_vm0 = vcmask 1041408   ;;  %vm246_vm1 = vcmask 31744  }
   0xd   : > { %289 = vmatprep.mubr.bf16.mxu0 %v478_v0  ;;  %452 = vset.pattern.permute.xlu0 %v478_v0  ;;  %v306_v2 = vld [vmem:[%s556_s3] sm:$0xf]  ;;  %s425_s23 = sshll.u32 %s563_s15, 3 }
   0xe   : > { %301 = vperm.xlu0 %452, %v298_v1   ;;  %s225_s26 = scalar_lea.vmem %s553_s0, %s425_s23  ;;  %v238_v6 = vld [vmem:[%s554_s1] sm:$0xf]  ;;  %s235_s5 = scalar_lea.vmem %s557_s4, %s425_s23 }
   0xf   : > { %v240_v3 = vld [vmem:[%s225_s26] sm:$0xff]  ;;  %v239_v9 = vpack.c.bf16 %v238_v6, %v238_v6 }
  0x10   : > { %v242_v4 = vcombine.high %v240_v3, %v240_v3  ;;  %v244_v5 = vpack.c.bf16 %v240_v3, %v240_v3 }
  0x12   : > { %309 = vperm.xlu0 %452, %v306_v2   ;;  %v245_v7 = vpack.c.bf16 %v242_v4, %v242_v4  ;;  %v252_v8 = vsel %vm250_vm0, %v244_v5, 0 }
  0x14   : > { %421 = vmatprep.subr.msk.bf16.mxu0 %vm250_vm0, %v245_v7 }
  0x15   : > { %272 = vmatpush1.bf16.msra.mxu0 %v252_v8 }
  0x18   : > { %422 = vmatmul.mubr.msk.bf16.vlgmr.msra.gmra.mxu0 %vm246_vm1, %v239_v9 }
  0x89   : > { %v302_v10 = vpop.permute.xlu0 %301 }
  0x8d   : > { %v310_v13 = vpop.permute.xlu0 %309 }
  0xd8   : > { %v291_v11 = vpop.f32.mrf.mxu0 }
  0xd9   : > { %v304_v12 = vmul.f32 %v302_v10, %v291_v11 }
  0xda   : > { %v293_v14 = vpop.f32.mrf.mxu0 }
  0xdb   : > { %v312_v15 = vadd.f32 %v310_v13, %v304_v12  ;;  %v305_v16 = vmul.f32 %v302_v10, %v293_v14 }
  0xdc   : > { %v295_v17 = vpop.f32.mrf.mxu0 }
  0xdd   : > { %v316_v18 = vmul.f32 0.01, %v312_v15  ;;  %v313_v19 = vadd.f32 %v310_v13, %v305_v16  ;;  %vm314_vm2 = vcmp.ge.f32.partialorder %v312_v15, 0.0 }
  0xde   : > { %v296_v20 = vpop.f32.mrf.mxu0 }
  0xdf   : > { %vm315_vm3 = vcmp.ge.f32.partialorder %v313_v19, 0.0  ;;  %v317_v21 = vmul.f32 0.01, %v313_v19  ;;  %v318_v22 = vsel %vm314_vm2, %v312_v15, %v316_v18 }
  0xe1   : > { %v319_v23 = vsel %vm315_vm3, %v313_v19, %v317_v21 }
  0xe2   : > { %v322_v24 = vcombine.low %v318_v22, %v319_v23 }
  0xe4   : > { %324 = vst [vmem:[%s235_s5] sm:$0xff] %v322_v24 }
  0xe5 PF: > { %s14_s17 = sadd.s32 1, %s476_s17   ;;  %s558_s15 = smov %s472_s16 }
  0xe6   : > { %p11_p5 = scmp.ge.s32.totalorder %s14_s17, 4   ;;  %s559_s16 = smov %s561_s18 }
  0xe8   :  { %13 = sbr.rel (!%p11_p5) target bundleno = 2 (0x2), region = 66 }

// kernel: aligned_module_forward.8
= control target key start
LH: loop header
LB: loop body
LE: loop exit
PB: predicated region body
PF: predicated region fallthrough
CT: control target
= control target key end

     0   :  { %s772_s18 = smov 0   ;;  %s914_s0 = inlined_call_operand.vmem [shape: f32[2,4,256], index: 0, kind: input, shape index: {}]   ;;  %s915_s1 = inlined_call_operand.vmem [shape: f32[2,4,256], index: 1, kind: input, shape index: {}]   ;;  %s916_s2 = inlined_call_operand.vmem [shape: f32[4,72], index: 2, kind: input, shape index: {}]   ;;  %s917_s3 = inlined_call_operand.vmem [shape: f32[1,256], index: 3, kind: input, shape index: {}]   ;;  %s918_s4 = inlined_call_operand.vmem [shape: f32[1,256], index: 4, kind: input, shape index: {}]   ;;  %s919_s5 = inlined_call_operand.vmem [shape: f32[2,4,256], index: 5, kind: output, shape index: {}]  }
   0x1 LB: > { %s686_s19 = sadd.s32 4294967295, %s730_s18   ;;  %p690_p0 = scmp.ge.s32.totalorder %s730_s18, 1  ;;  %s730_s18 = sphi %s772_s18, %s15_s18  }
   0x2   : > { %p197_p1 = scmp.lt.s32.totalorder %s730_s18, 3 }
   0x4   : > { %p198_p2 = pnand %p690_p0, %p197_p1 }
   0x5   : > { %p230_p3 = scmp.lt.s32.totalorder (!%p198_p2), %s686_s19, 1  ;;  %s733_s6 = smov (!%p198_p2), 17  }
   0x6   : > { %201 = sbr.rel (%p198_p2) target bundleno = 518 (0x206), region = 40  ;;  %s734_s7 = smov (!%p198_p2), 1  }
   0x7   : > { %s735_s8 = smov (!%p198_p2), 15   ;;  %s736_s9 = smov (!%p198_p2), 113  }
   0x8   : > { %s737_s10 = smov (!%p198_p2), 127   ;;  %s738_s11 = smov (!%p198_p2), 111  }
   0x9   : > { %s739_s12 = smov (!%p198_p2), 112   ;;  %s740_s13 = smov (!%p198_p2), 16  }
   0xb   : > { %v268_v0 = vlaneseq  ;;  %v732_v2 = vmov 0.0   ;;  %v247_v3 = vld [vmem:[%s918_s4] sm:$0x3]  ;;  %s921_s19 = smov (!%p230_p3, %s686_s19), 1  ;;  %vm290_vm0 = vcmask 138240   ;;  %vm333_vm1 = vcmask 121856  }
   0xc   : > { %257 = vst [vmem:[#allocation2 + $0x48] sm:$0xff] %v732_v2  ;;  %248 = vst [vmem:[#allocation2] sm:$0xff] %v732_v2  ;;  %v246_v4 = vld [vmem:[%s917_s3] sm:$0x3]  ;;  %s790_s24 = sshll.u32 %s921_s19, 3  ;;  %vm353_vm2 = vcmask 7168  }
   0xd   : > { %v269_v1 = vshrl.u32 %v268_v0, 7  ;;  %249 = vst [vmem:[#allocation2 + $0x8] sm:$0xff] %v732_v2  ;;  %250 = vst [vmem:[#allocation2 + $0x10] sm:$0xff] %v732_v2  ;;  %s234_s27 = scalar_lea.vmem %s914_s0, %s790_s24  ;;  %s239_s30 = scalar_lea.vmem %s915_s1, %s790_s24  ;;  %vm323_vm3 = vcmask 924672   ;;  %vm403_vm4 = vcmask 916480   ;;  %vm408_vm5 = vcmask 912384  }
   0xe   : > { %251 = vst [vmem:[#allocation2 + $0x18] sm:$0xff] %v732_v2  ;;  %252 = vst [vmem:[#allocation2 + $0x20] sm:$0xff] %v732_v2  ;;  %v800_v12 = vld [vmem:[%s234_s27] sm:$0xff]  ;;  %vm343_vm6 = vcmask 1039360   ;;  %vm517_vm7 = vcmask 916484   ;;  %vm280_vm8 = vcmask 908288   ;;  %s244_s19 = scalar_lea.vmem %s919_s5, %s790_s24 }
   0xf   : > { %253 = vst [vmem:[#allocation2 + $0x28] sm:$0xff] %v732_v2  ;;  %254 = vst [vmem:[#allocation2 + $0x30] sm:$0xff] %v732_v2  ;;  %v270_v5 = vsub.s32 0, %v269_v1  ;;  %v274_v6 = vsub.s32 1, %v269_v1  ;;  %v802_v13 = vld [vmem:[%s239_s30] sm:$0xff]  ;;  %v298_v15 = vcombine.high %v800_v12, %v800_v12  ;;  %vm307_vm9 = vcmask 1043584  }
  0x10   : > { %255 = vst [vmem:[#allocation2 + $0x38] sm:$0xff] %v732_v2  ;;  %256 = vst [vmem:[#allocation2 + $0x40] sm:$0xff] %v732_v2  ;;  %v811_v16 = vcombine.low %v802_v13, %v802_v13  ;;  %vm303_vm10 = vcmask 130048   ;;  %vm530_vm11 = vcmask 908292   ;;  %vm507_vm12 = vcmask 924676  }
  0x11   : > { %258 = vst [vmem:[#allocation2 + $0x50] sm:$0xff] %v732_v2  ;;  %259 = vst [vmem:[#allocation2 + $0x58] sm:$0xff] %v732_v2  ;;  %v314_v7 = vrot.slane %v247_v3, %v270_v5  ;;  %v318_v8 = vrot.slane %v247_v3, %v274_v6  ;;  %v271_v9 = vrot.slane %v246_v4, %v270_v5  ;;  %vm494_vm13 = vcmask 1039364  }
  0x12   : > { %260 = vst [vmem:[#allocation2 + $0x60] sm:$0xff] %v732_v2  ;;  %261 = vst [vmem:[#allocation2 + $0x68] sm:$0xff] %v732_v2  ;;  %v275_v10 = vrot.slane %v246_v4, %v274_v6  ;;  %v741_v4 = vmov 0   ;;  %vm337_vm14 = vcmask 1043576   ;;  %vm357_vm15 = vcmask 1043464  }
  0x13   : > { %262 = vst [vmem:[#allocation2 + $0x70] sm:$0xff] %v732_v2  ;;  %263 = vst [vmem:[#allocation2 + $0x78] sm:$0xff] %v732_v2  ;;  %v319_v11 = vcombine.low %v314_v7, %v318_v8  ;;  %605 = vmatprep.mubr.bf16.mxu0 %v741_v4 }
  0x14   : > { %264 = vst [vmem:[#allocation2 + $0x80] sm:$0xff] %v732_v2  ;;  %265 = vst [vmem:[#allocation2 + $0x88] sm:$0xff] %v732_v2  ;;  %v276_v14 = vcombine.low %v271_v9, %v275_v10 }
  0x15   : > { %410 = vrot.lane.b32.xlu0 %v319_v11, %s733_s6  ;;  %363 = vrot.lane.b32.xlu1 %v319_v11, %s734_s7  ;;  %482 = vst [vmem:[#allocation2 + $0x48] sm:$0xf0] %v802_v13  ;;  %361 = vst [vmem:[#allocation2 + $0x40] sm:$0xf] %v800_v12 }
  0x16   : > { %362 = vst [vmem:[#allocation2 + $0x48] sm:$0xf] %v298_v15  ;;  %481 = vst [vmem:[#allocation2 + $0x40] sm:$0xf0] %v811_v16 }
  0x19   : > { %381 = vrot.lane.b32.xlu0 %v276_v14, %s735_s8  ;;  %320 = vrot.lane.b32.xlu1 %v319_v11, %s736_s9 }
  0x1d   : > { %340 = vrot.lane.b32.xlu0 %v276_v14, %s737_s10  ;;  %277 = vrot.lane.b32.xlu1 %v276_v14, %s738_s11 }
  0x21   : > { %399 = vrot.lane.b32.xlu0 %v800_v12, %s739_s12  ;;  %401 = vrot.lane.b32.xlu1 %v298_v15, %s739_s12 }
  0x25   : > { %509 = vrot.lane.b32.xlu0 %v811_v16, %s739_s12  ;;  %511 = vrot.lane.b32.xlu1 %v802_v13, %s739_s12 }
  0x29   : > { %299 = vrot.lane.b32.xlu0 %v800_v12, %s740_s13  ;;  %301 = vrot.lane.b32.xlu1 %v298_v15, %s740_s13 }
  0x87   : > { %v411_v17 = vpop.permute.xlu0 %410  ;;  %v364_v18 = vpop.permute.xlu1 %363 }
  0x88   : > { %v412_v19 = vrot.slane %v411_v17, 4  ;;  %v365_v26 = vrot.slane %v364_v18, 4 }
  0x8a   : > { %v413_v20 = vsel %vm290_vm0, %v412_v19, %v411_v17  ;;  %v366_v32 = vsel %vm353_vm2, %v365_v26, %v364_v18 }
  0x8b   : > { %v827_v21 = vmul.f32 %v413_v20, %v800_v12  ;;  %v830_v22 = vmul.f32 %v802_v13, %v413_v20  ;;  %v382_v23 = vpop.permute.xlu0 %381  ;;  %v321_v24 = vpop.permute.xlu1 %320  ;;  %v368_v34 = vmul.f32 %v366_v32, %v800_v12  ;;  %v483_v35 = vmul.f32 %v802_v13, %v366_v32 }
  0x8c   : > { %v383_v25 = vrot.slane %v382_v23, 4  ;;  %v322_v33 = vrot.slane %v321_v24, 4 }
  0x8d   : > { %418 = vrot.lane.b32.xlu0 %v827_v21, %s738_s11  ;;  %524 = vrot.lane.b32.xlu1 %v830_v22, %s738_s11  ;;  %v417_v56 = vcombine.high %v827_v21, %v827_v21  ;;  %v521_v57 = vcombine.low %v830_v22, %v830_v22  ;;  %v370_v60 = vcombine.high %v368_v34, %v368_v34 }
  0x8e   : > { %v384_v27 = vsel %vm333_vm1, %v383_v25, %v382_v23  ;;  %v324_v38 = vsel %vm323_vm3, %v321_v24, %v322_v33  ;;  %v485_v61 = vcombine.low %v483_v35, %v483_v35 }
  0x8f   : > { %v386_v28 = vmul.f32 %v384_v27, %v800_v12  ;;  %v496_v29 = vmul.f32 %v802_v13, %v384_v27  ;;  %v341_v30 = vpop.permute.xlu0 %340  ;;  %v278_v31 = vpop.permute.xlu1 %277  ;;  %v326_v41 = vmul.f32 %v324_v38, %v800_v12  ;;  %v454_v42 = vmul.f32 %v802_v13, %v324_v38 }
  0x90   : > { %v342_v39 = vrot.slane %v341_v30, 4  ;;  %v279_v46 = vrot.slane %v278_v31, 4 }
  0x91   : > { %389 = vrot.lane.b32.xlu0 %v386_v28, %s736_s9  ;;  %501 = vrot.lane.b32.xlu1 %v496_v29, %s736_s9  ;;  %v388_v58 = vcombine.high %v386_v28, %v386_v28  ;;  %v498_v59 = vcombine.low %v496_v29, %v496_v29  ;;  %v328_v62 = vcombine.high %v326_v41, %v326_v41 }
  0x92   : > { %v344_v45 = vsel %vm343_vm6, %v341_v30, %v342_v39  ;;  %v281_v52 = vsel %vm280_vm8, %v278_v31, %v279_v46  ;;  %v456_v63 = vcombine.low %v454_v42, %v454_v42 }
  0x93   : > { %v400_v36 = vpop.permute.xlu0 %399  ;;  %v402_v37 = vpop.permute.xlu1 %401  ;;  %v346_v48 = vmul.f32 %v344_v45, %v800_v12  ;;  %v467_v49 = vmul.f32 %v802_v13, %v344_v45  ;;  %v283_v54 = vmul.f32 %v281_v52, %v800_v12  ;;  %v429_v55 = vmul.f32 %v802_v13, %v281_v52  ;;  %v542_v45 = vld [vmem:[#allocation2 + $0x40] sm:$0xff] }
  0x94   : > { %v404_v40 = vsel %vm403_vm4, %v400_v36, %v402_v37  ;;  %409 = vst.msk [vmem:[#allocation2 + $0x78] sm:$0xf] %vm408_vm5, %v402_v37  ;;  %vm426_vm5 = vcmask 904192  }
  0x95   : > { %371 = vrot.lane.b32.xlu0 %v368_v34, %s737_s10  ;;  %488 = vrot.lane.b32.xlu1 %v483_v35, %s737_s10  ;;  %407 = vst [vmem:[#allocation2 + $0x70] sm:$0xf] %v404_v40  ;;  %v348_v0 = vcombine.high %v346_v48, %v346_v48  ;;  %v469_v1 = vcombine.low %v467_v49, %v467_v49 }
  0x96   : > { %v431_v2 = vcombine.low %v429_v55, %v429_v55  ;;  %v285_v3 = vcombine.high %v283_v54, %v283_v54 }
  0x97   : > { %v510_v43 = vpop.permute.xlu0 %509  ;;  %v512_v44 = vpop.permute.xlu1 %511 }
  0x98   : > { %v513_v47 = vsel %vm403_vm4, %v510_v43, %v512_v44  ;;  %518 = vst.msk [vmem:[#allocation2 + $0x78] sm:$0xf0] %vm517_vm7, %v512_v44  ;;  %vm294_vm4 = vcmask 1043592   ;;  %vm397_vm7 = vcmask 920576   ;;  %v543_v44 = vld [vmem:[#allocation2 + $0x48] sm:$0xff] }
  0x99   : > { %329 = vrot.lane.b32.xlu0 %v326_v41, %s735_s8  ;;  %459 = vrot.lane.b32.xlu1 %v454_v42, %s735_s8  ;;  %516 = vst [vmem:[#allocation2 + $0x70] sm:$0xf0] %v513_v47 }
  0x9b   : > { %v300_v50 = vpop.permute.xlu0 %299  ;;  %v302_v51 = vpop.permute.xlu1 %301 }
  0x9c   : > { %308 = vst.msk [vmem:[#allocation2 + $0x10] sm:$0xf] %vm307_vm9, %v300_v50  ;;  %v304_v53 = vsel %vm303_vm10, %v300_v50, %v302_v51  ;;  %vm379_vm9 = vcmask 1035264  }
  0x9d   : > { %349 = vrot.lane.b32.xlu0 %v346_v48, %s734_s7  ;;  %472 = vrot.lane.b32.xlu1 %v467_v49, %s734_s7  ;;  %309 = vst [vmem:[#allocation2 + $0x18] sm:$0xf] %v304_v53 }
  0x9f   : > { %v549_v37 = vld [vmem:[#allocation2 + $0x78] sm:$0xff] }
  0xa0   : > { %v548_v42 = vld [vmem:[#allocation2 + $0x70] sm:$0xff] }
  0xa1   : > { %434 = vrot.lane.b32.xlu1 %v429_v55, %s733_s6  ;;  %286 = vrot.lane.b32.xlu0 %v283_v54, %s733_s6 }
  0xa5   : > { %420 = vrot.lane.b32.xlu1 %v417_v56, %s738_s11  ;;  %522 = vrot.lane.b32.xlu0 %v521_v57, %s738_s11 }
  0xa9   : > { %391 = vrot.lane.b32.xlu1 %v388_v58, %s736_s9  ;;  %499 = vrot.lane.b32.xlu0 %v498_v59, %s736_s9 }
  0xad   : > { %373 = vrot.lane.b32.xlu1 %v370_v60, %s737_s10  ;;  %486 = vrot.lane.b32.xlu0 %v485_v61, %s737_s10 }
  0xb1   : > { %331 = vrot.lane.b32.xlu1 %v328_v62, %s735_s8  ;;  %457 = vrot.lane.b32.xlu0 %v456_v63, %s735_s8 }
  0xb5   : > { %351 = vrot.lane.b32.xlu1 %v348_v0, %s734_s7  ;;  %470 = vrot.lane.b32.xlu0 %v469_v1, %s734_s7 }
  0xb9   : > { %432 = vrot.lane.b32.xlu0 %v431_v2, %s733_s6  ;;  %288 = vrot.lane.b32.xlu1 %v285_v3, %s733_s6 }
  0xbd   : > { %444 = vrot.lane.b32.xlu0 %v811_v16, %s740_s13  ;;  %446 = vrot.lane.b32.xlu1 %v802_v13, %s740_s13 }
  0xff   : > { %v419_v5 = vpop.permute.xlu0 %418  ;;  %v525_v6 = vpop.permute.xlu1 %524 }
 0x100   : > { %531 = vst.msk [vmem:[#allocation2 + $0x88] sm:$0xf0] %vm530_vm11, %v525_v6  ;;  %vm566_vm11 = vcmask 1043456  }
 0x103   : > { %v390_v7 = vpop.permute.xlu0 %389  ;;  %v502_v8 = vpop.permute.xlu1 %501 }
 0x104   : > { %508 = vst.msk [vmem:[#allocation2 + $0x68] sm:$0xf0] %vm507_vm12, %v502_v8 }
 0x107   : > { %v372_v9 = vpop.permute.xlu0 %371  ;;  %v489_v10 = vpop.permute.xlu1 %488 }
 0x108   : > { %495 = vst.msk [vmem:[#allocation2 + $0x58] sm:$0xf0] %vm494_vm13, %v489_v10 }
 0x10b   : > { %v330_v11 = vpop.permute.xlu0 %329  ;;  %v460_v12 = vpop.permute.xlu1 %459 }
 0x10c   : > { %338 = vst.msk [vmem:[#allocation2 + $0x20] sm:$0xf] %vm337_vm14, %v330_v11 }
 0x10f   : > { %v350_v13 = vpop.permute.xlu0 %349  ;;  %v473_v14 = vpop.permute.xlu1 %472 }
 0x110   : > { %358 = vst.msk [vmem:[#allocation2 + $0x30] sm:$0xf] %vm357_vm15, %v350_v13 }
 0x113   : > { %v884_v15 = vpop.permute.xlu1 %434  ;;  %v886_v16 = vpop.permute.xlu0 %286 }
 0x114   : > { %295 = vst.msk [vmem:[#allocation2] sm:$0xf] %vm294_vm4, %v886_v16 }
 0x117   : > { %v421_v17 = vpop.permute.xlu1 %420  ;;  %v523_v18 = vpop.permute.xlu0 %522 }
 0x118   : > { %v422_v19 = vsel %vm280_vm8, %v419_v5, %v421_v17  ;;  %427 = vst.msk [vmem:[#allocation2 + $0x88] sm:$0xf] %vm426_vm5, %v421_v17  ;;  %v526_v20 = vsel %vm280_vm8, %v523_v18, %v525_v6  ;;  %vm464_vm8 = vcmask 1047676   ;;  %v532_v6 = vld [vmem:[%s916_s2] sm:$0xf] }
 0x119   : > { %425 = vst [vmem:[#allocation2 + $0x80] sm:$0xf] %v422_v19  ;;  %529 = vst [vmem:[#allocation2 + $0x80] sm:$0xf0] %v526_v20 }
 0x11b   : > { %v392_v21 = vpop.permute.xlu1 %391  ;;  %v500_v22 = vpop.permute.xlu0 %499 }
 0x11c   : > { %v393_v23 = vsel %vm323_vm3, %v390_v7, %v392_v21  ;;  %398 = vst.msk [vmem:[#allocation2 + $0x68] sm:$0xf] %vm397_vm7, %v392_v21  ;;  %v503_v24 = vsel %vm323_vm3, %v500_v22, %v502_v8  ;;  %vm477_vm3 = vcmask 1047564  }
 0x11d   : > { %396 = vst [vmem:[#allocation2 + $0x60] sm:$0xf] %v393_v23  ;;  %506 = vst [vmem:[#allocation2 + $0x60] sm:$0xf0] %v503_v24 }
 0x11f   : > { %v374_v25 = vpop.permute.xlu1 %373  ;;  %v487_v26 = vpop.permute.xlu0 %486  ;;  %v551_v27 = vld [vmem:[#allocation2 + $0x88] sm:$0xff] }
 0x120   : > { %v375_v28 = vsel %vm343_vm6, %v372_v9, %v374_v25  ;;  %380 = vst.msk [vmem:[#allocation2 + $0x58] sm:$0xf] %vm379_vm9, %v374_v25  ;;  %v490_v29 = vsel %vm343_vm6, %v487_v26, %v489_v10  ;;  %v561_v30 = vpack.c.bf16 %v551_v27, %v551_v27  ;;  %v550_v31 = vld [vmem:[#allocation2 + $0x80] sm:$0xff]  ;;  %v533_v10 = vpack.c.bf16 %v532_v6, %v532_v6 }
 0x121   : > { %378 = vst [vmem:[#allocation2 + $0x50] sm:$0xf] %v375_v28  ;;  %493 = vst [vmem:[#allocation2 + $0x50] sm:$0xf0] %v490_v29  ;;  %v560_v32 = vpack.c.bf16 %v550_v31, %v550_v31 }
 0x122   : > { %697 = vmatprep.subr.msk.bf16.mxu0 %vm566_vm11, %v561_v30 }
 0x123   : > { %v332_v33 = vpop.permute.xlu1 %331  ;;  %v458_v34 = vpop.permute.xlu0 %457  ;;  %v568_v35 = vsel %vm566_vm11, %v560_v32, 0  ;;  %v547_v36 = vld [vmem:[#allocation2 + $0x68] sm:$0xff] }
 0x124   : > { %v334_v38 = vsel %vm333_vm1, %v330_v11, %v332_v33  ;;  %v461_v39 = vsel %vm333_vm1, %v458_v34, %v460_v12  ;;  %465 = vst.msk [vmem:[#allocation2 + $0x20] sm:$0xf0] %vm464_vm8, %v458_v34  ;;  %580 = vmatpush1.bf16.msra.mxu0 %v568_v35  ;;  %v559_v40 = vpack.c.bf16 %v549_v37, %v547_v36  ;;  %v546_v41 = vld [vmem:[#allocation2 + $0x60] sm:$0xff]  ;;  %vm439_vm1 = vcmask 1047692  }
 0x125   : > { %339 = vst [vmem:[#allocation2 + $0x28] sm:$0xf] %v334_v38  ;;  %466 = vst [vmem:[#allocation2 + $0x28] sm:$0xf0] %v461_v39  ;;  %v558_v43 = vpack.c.bf16 %v548_v42, %v546_v41 }
 0x126   : > { %581 = vmatprep.subr.bf16.mxu0 %v559_v40 }
 0x127   : > { %v352_v46 = vpop.permute.xlu1 %351  ;;  %v471_v47 = vpop.permute.xlu0 %470  ;;  %v545_v48 = vld [vmem:[#allocation2 + $0x58] sm:$0xff] }
 0x128   : > { %v354_v49 = vsel %vm353_vm2, %v350_v13, %v352_v46  ;;  %v474_v50 = vsel %vm353_vm2, %v471_v47, %v473_v14  ;;  %478 = vst.msk [vmem:[#allocation2 + $0x30] sm:$0xf0] %vm477_vm3, %v471_v47  ;;  %582 = vmatpush1.bf16.msra.mxu0 %v558_v43  ;;  %v557_v51 = vpack.c.bf16 %v545_v48, %v543_v44  ;;  %v544_v52 = vld [vmem:[#allocation2 + $0x50] sm:$0xff]  ;;  %vm451_vm2 = vcmask 1047684  }
 0x129   : > { %359 = vst [vmem:[#allocation2 + $0x38] sm:$0xf] %v354_v49  ;;  %479 = vst [vmem:[#allocation2 + $0x38] sm:$0xf0] %v474_v50  ;;  %v556_v53 = vpack.c.bf16 %v544_v52, %v542_v45 }
 0x12a   : > { %583 = vmatprep.subr.bf16.mxu0 %v557_v51 }
 0x12b   : > { %v433_v54 = vpop.permute.xlu0 %432  ;;  %v289_v55 = vpop.permute.xlu1 %288  ;;  %v538_v1 = vld [vmem:[#allocation2 + $0x20] sm:$0xff] }
 0x12c   : > { %v436_v56 = vsel %vm290_vm0, %v433_v54, %v884_v15  ;;  %440 = vst.msk [vmem:[#allocation2] sm:$0xf0] %vm439_vm1, %v433_v54  ;;  %v291_v57 = vsel %vm290_vm0, %v886_v16, %v289_v55  ;;  %584 = vmatpush1.bf16.msra.mxu0 %v556_v53  ;;  %v539_v62 = vld [vmem:[#allocation2 + $0x28] sm:$0xff]  ;;  %vm562_vm0 = vcmask 588800  }
 0x12d   : > { %441 = vst [vmem:[#allocation2 + $0x8] sm:$0xf0] %v436_v56  ;;  %296 = vst [vmem:[#allocation2 + $0x8] sm:$0xf] %v291_v57 }
 0x12f   : > { %v445_v58 = vpop.permute.xlu0 %444  ;;  %v447_v59 = vpop.permute.xlu1 %446  ;;  %v540_v60 = vld [vmem:[#allocation2 + $0x30] sm:$0xff] }
 0x130   : > { %452 = vst.msk [vmem:[#allocation2 + $0x10] sm:$0xf0] %vm451_vm2, %v445_v58  ;;  %v448_v61 = vsel %vm303_vm10, %v445_v58, %v447_v59  ;;  %v541_v63 = vld [vmem:[#allocation2 + $0x38] sm:$0xff]  ;;  %v554_v2 = vpack.c.bf16 %v540_v60, %v538_v1 }
 0x131   : > { %453 = vst [vmem:[#allocation2 + $0x18] sm:$0xf0] %v448_v61  ;;  %v555_v0 = vpack.c.bf16 %v541_v63, %v539_v62 }
 0x133   : > { %585 = vmatprep.subr.bf16.mxu0 %v555_v0  ;;  %v534_v8 = vld [vmem:[#allocation2] sm:$0xff] }
 0x134   : > { %586 = vmatpush1.bf16.msra.mxu0 %v554_v2  ;;  %v535_v4 = vld [vmem:[#allocation2 + $0x8] sm:$0xff] }
 0x137   : > { %v536_v3 = vld [vmem:[#allocation2 + $0x10] sm:$0xff] }
 0x138   : > { %v537_v5 = vld [vmem:[#allocation2 + $0x18] sm:$0xff]  ;;  %v552_v9 = vpack.c.bf16 %v536_v3, %v534_v8 }
 0x139   : > { %v553_v7 = vpack.c.bf16 %v537_v5, %v535_v4 }
 0x13b   : > { %587 = vmatprep.subr.bf16.mxu0 %v553_v7 }
 0x13c   : > { %588 = vmatpush1.bf16.msra.mxu0 %v552_v9 }
 0x13f   : > { %698 = vmatmul.mubr.msk.bf16.vlgmr.msra.gmra.mxu0 %vm562_vm0, %v533_v10 }
 0x1ff   : > { %v607_v11 = vpop.f32.mrf.mxu0 }
 0x201   : > { %v609_v12 = vpop.f32.mrf.mxu0 }
 0x202   : > { %v616_v13 = vcombine.low %v607_v11, %v609_v12 }
 0x203   : > { %v611_v14 = vpop.f32.mrf.mxu0 }
 0x204   : > { %618 = vst [vmem:[%s244_s19] sm:$0xff] %v616_v13 }
 0x205   : > { %v612_v15 = vpop.f32.mrf.mxu0 }
 0x206 PF: > { %s15_s18 = sadd.s32 1, %s730_s18  }
 0x207   : > { %p12_p4 = scmp.ge.s32.totalorder %s15_s18, 4  }
 0x209   :  { %14 = sbr.rel (!%p12_p4) target bundleno = 1 (0x1), region = 73 }

// kernel: aligned_module_forward.10
= control target key start
LH: loop header
LB: loop body
LE: loop exit
PB: predicated region body
PF: predicated region fallthrough
CT: control target
= control target key end

     0   :  { %s669_s21 = smov 0   ;;  %s753_s0 = inlined_call_operand.vmem [shape: f32[2,4,256], index: 0, kind: input, shape index: {}]   ;;  %s754_s1 = inlined_call_operand.vmem [shape: f32[4,36], index: 1, kind: input, shape index: {}]   ;;  %s755_s2 = inlined_call_operand.vmem [shape: f32[4,1], index: 2, kind: input, shape index: {}]   ;;  %s756_s3 = inlined_call_operand.vmem [shape: f32[4,1], index: 3, kind: input, shape index: {}]   ;;  %s757_s4 = inlined_call_operand.vmem [shape: f32[1,256], index: 4, kind: input, shape index: {}]   ;;  %s758_s5 = inlined_call_operand.vmem [shape: f32[1,256], index: 5, kind: input, shape index: {}]   ;;  %s759_s6 = inlined_call_operand.vmem [shape: f32[2,4,256], index: 6, kind: output, shape index: {}]  }
   0x1 LB: > { %s580_s22 = sadd.s32 4294967295, %s622_s21   ;;  %p584_p0 = scmp.ge.s32.totalorder %s622_s21, 1  ;;  %s622_s21 = sphi %s669_s21, %s16_s21  }
   0x2   : > { %p212_p1 = scmp.lt.s32.totalorder %s622_s21, 3 }
   0x4   : > { %p213_p2 = pnand %p584_p0, %p212_p1 }
   0x5   : > { %p242_p3 = scmp.lt.s32.totalorder (!%p213_p2), %s580_s22, 1  ;;  %s624_s28 = smov (!%p213_p2), 17  }
   0x6   : > { %216 = sbr.rel (%p213_p2) target bundleno = 500 (0x1f4), region = 44  ;;  %s625_s29 = smov (!%p213_p2), 15  }
   0x7   : > { %s626_s9 = smov (!%p213_p2), 1   ;;  %s627_s10 = smov (!%p213_p2), 111  }
   0x8   : > { %s628_s11 = smov (!%p213_p2), 113   ;;  %s629_s12 = smov (!%p213_p2), 127  }
   0x9   : > { %s630_s13 = smov (!%p213_p2), 112   ;;  %s631_s14 = smov (!%p213_p2), 16  }
   0xb   : > { %v267_v0 = vlaneseq  ;;  %v265_v2 = vld [vmem:[%s758_s5] sm:$0x3]  ;;  %s761_s22 = smov (!%p242_p3, %s580_s22), 1  ;;  %v632_v14 = vmov 0.0   ;;  %vm289_vm0 = vcmask 138240   ;;  %vm332_vm1 = vcmask 121856  }
   0xc   : > { %v264_v3 = vld [vmem:[%s757_s4] sm:$0x3]  ;;  %s593_s27 = sshll.u32 %s761_s22, 3  ;;  %259 = vst [vmem:[#allocation2 + $0x30] sm:$0xff] %v632_v14  ;;  %260 = vst [vmem:[#allocation2 + $0x38] sm:$0xff] %v632_v14  ;;  %vm352_vm2 = vcmask 7168  }
   0xd   : > { %v268_v1 = vshrl.u32 %v267_v0, 7  ;;  %s246_s8 = scalar_lea.vmem %s753_s0, %s593_s27  ;;  %253 = vst [vmem:[#allocation2] sm:$0xff] %v632_v14  ;;  %254 = vst [vmem:[#allocation2 + $0x8] sm:$0xff] %v632_v14  ;;  %vm279_vm3 = vcmask 908288   ;;  %vm322_vm4 = vcmask 924672   ;;  %vm403_vm5 = vcmask 916480   ;;  %s251_s25 = scalar_lea.vmem %s759_s6, %s593_s27 }
   0xe   : > { %v695_v12 = vld [vmem:[%s246_s8] sm:$0xff]  ;;  %255 = vst [vmem:[#allocation2 + $0x10] sm:$0xff] %v632_v14  ;;  %256 = vst [vmem:[#allocation2 + $0x18] sm:$0xff] %v632_v14  ;;  %vm408_vm6 = vcmask 916484   ;;  %vm342_vm7 = vcmask 1039360   ;;  %vm306_vm8 = vcmask 1047684  }
   0xf   : > { %v269_v4 = vsub.s32 0, %v268_v1  ;;  %v273_v5 = vsub.s32 1, %v268_v1  ;;  %v297_v13 = vcombine.low %v695_v12, %v695_v12  ;;  %257 = vst [vmem:[#allocation2 + $0x20] sm:$0xff] %v632_v14  ;;  %258 = vst [vmem:[#allocation2 + $0x28] sm:$0xff] %v632_v14  ;;  %v359_v15 = vcombine.high %v695_v12, %v695_v12  ;;  %v498_v53 = vld [vmem:[%s755_s2] sm:$0xf] }
  0x10   : > { %261 = vst [vmem:[#allocation2 + $0x40] sm:$0xf] %v632_v14  ;;  %262 = vst [vmem:[#allocation2 + $0x48] sm:$0xf] %v632_v14  ;;  %vm302_vm9 = vcmask 130048   ;;  %v633_v52 = vmov 0  }
  0x11   : > { %v313_v6 = vrot.slane %v265_v2, %v269_v4  ;;  %v317_v7 = vrot.slane %v265_v2, %v273_v5  ;;  %v270_v8 = vrot.slane %v264_v3, %v269_v4  ;;  %v274_v9 = vrot.slane %v264_v3, %v273_v5  ;;  %361 = vst [vmem:[#allocation2 + $0x20] sm:$0xf] %v695_v12  ;;  %v506_v54 = vld [vmem:[%s756_s3] sm:$0xf] }
  0x12   : > { %362 = vst [vmem:[#allocation2 + $0x28] sm:$0xf] %v359_v15  ;;  %489 = vmatprep.mubr.bf16.mxu0 %v633_v52  ;;  %613 = vset.pattern.permute.xlu0 %v633_v52  ;;  %vm379_vm10 = vcmask 1039364   ;;  %vm426_vm11 = vcmask 904192   ;;  %vm293_vm12 = vcmask 1043592   ;;  %vm397_vm13 = vcmask 920576  }
  0x13   : > { %v318_v10 = vcombine.low %v313_v6, %v317_v7  ;;  %v275_v11 = vcombine.low %v270_v8, %v274_v9  ;;  %614 = vset.pattern.permute.xlu1 %v633_v52  ;;  %vm336_vm14 = vcmask 1043576   ;;  %vm450_vm15 = vcmask 1041408  }
  0x15   : > { %410 = vrot.lane.b32.xlu0 %v318_v10, %s624_s28  ;;  %381 = vrot.lane.b32.xlu1 %v275_v11, %s625_s29 }
  0x19   : > { %363 = vrot.lane.b32.xlu0 %v318_v10, %s626_s9  ;;  %276 = vrot.lane.b32.xlu1 %v275_v11, %s627_s10 }
  0x1d   : > { %319 = vrot.lane.b32.xlu0 %v318_v10, %s628_s11  ;;  %339 = vrot.lane.b32.xlu1 %v275_v11, %s629_s12 }
  0x21   : > { %399 = vrot.lane.b32.xlu0 %v297_v13, %s630_s13  ;;  %401 = vrot.lane.b32.xlu1 %v695_v12, %s630_s13 }
  0x25   : > { %298 = vrot.lane.b32.xlu0 %v297_v13, %s631_s14  ;;  %300 = vrot.lane.b32.xlu1 %v695_v12, %s631_s14 }
  0x87   : > { %v411_v16 = vpop.permute.xlu0 %410  ;;  %v382_v17 = vpop.permute.xlu1 %381 }
  0x88   : > { %v412_v18 = vrot.slane %v411_v16, 4  ;;  %v383_v19 = vrot.slane %v382_v17, 4 }
  0x8a   : > { %v413_v20 = vsel %vm289_vm0, %v412_v18, %v411_v16  ;;  %v384_v21 = vsel %vm332_vm1, %v383_v19, %v382_v17 }
  0x8b   : > { %v415_v22 = vmul.f32 %v413_v20, %v695_v12  ;;  %v364_v23 = vpop.permute.xlu0 %363  ;;  %v277_v24 = vpop.permute.xlu1 %276  ;;  %v386_v27 = vmul.f32 %v384_v21, %v695_v12 }
  0x8c   : > { %v365_v25 = vrot.slane %v364_v23, 4  ;;  %v278_v26 = vrot.slane %v277_v24, 4 }
  0x8d   : > { %418 = vrot.lane.b32.xlu0 %v415_v22, %s627_s10  ;;  %v417_v37 = vcombine.high %v415_v22, %v415_v22  ;;  %v388_v43 = vcombine.high %v386_v27, %v386_v27 }
  0x8e   : > { %v366_v28 = vsel %vm352_vm2, %v365_v25, %v364_v23  ;;  %v280_v29 = vsel %vm279_vm3, %v277_v24, %v278_v26  ;;  %v428_v23 = vld [vmem:[%s754_s1] sm:$0xf] }
  0x8f   : > { %v368_v30 = vmul.f32 %v366_v28, %v695_v12  ;;  %v320_v31 = vpop.permute.xlu0 %319  ;;  %v340_v32 = vpop.permute.xlu1 %339  ;;  %v282_v34 = vmul.f32 %v280_v29, %v695_v12 }
  0x90   : > { %v321_v33 = vrot.slane %v320_v31, 4  ;;  %v341_v36 = vrot.slane %v340_v32, 4 }
  0x91   : > { %373 = vrot.lane.b32.xlu1 %v368_v30, %s629_s12  ;;  %389 = vrot.lane.b32.xlu0 %v386_v27, %s628_s11  ;;  %v370_v48 = vcombine.low %v368_v30, %v368_v30  ;;  %v284_v49 = vcombine.high %v282_v34, %v282_v34  ;;  %v429_v27 = vpack.c.bf16 %v428_v23, %v428_v23 }
  0x92   : > { %v323_v35 = vsel %vm322_vm4, %v320_v31, %v321_v33  ;;  %v343_v42 = vsel %vm342_vm7, %v340_v32, %v341_v36 }
  0x93   : > { %v400_v38 = vpop.permute.xlu0 %399  ;;  %v402_v39 = vpop.permute.xlu1 %401  ;;  %v325_v41 = vmul.f32 %v323_v35, %v695_v12  ;;  %v345_v47 = vmul.f32 %v343_v42, %v695_v12 }
  0x94   : > { %v404_v40 = vsel %vm403_vm5, %v400_v38, %v402_v39  ;;  %409 = vst.msk [vmem:[#allocation2 + $0x38] sm:$0xf0] %vm408_vm6, %v402_v39 }
  0x95   : > { %420 = vrot.lane.b32.xlu1 %v417_v37, %s627_s10  ;;  %285 = vrot.lane.b32.xlu0 %v282_v34, %s624_s28  ;;  %407 = vst [vmem:[#allocation2 + $0x30] sm:$0xf0] %v404_v40  ;;  %v347_v50 = vcombine.low %v345_v47, %v345_v47  ;;  %v327_v51 = vcombine.high %v325_v41, %v325_v41 }
  0x97   : > { %v299_v44 = vpop.permute.xlu0 %298  ;;  %v301_v45 = vpop.permute.xlu1 %300 }
  0x98   : > { %307 = vst.msk [vmem:[#allocation2] sm:$0xf0] %vm306_vm8, %v299_v44  ;;  %v303_v46 = vsel %vm302_vm9, %v299_v44, %v301_v45 }
  0x99   : > { %391 = vrot.lane.b32.xlu1 %v388_v43, %s628_s11  ;;  %328 = vrot.lane.b32.xlu0 %v325_v41, %s625_s29  ;;  %308 = vst [vmem:[#allocation2 + $0x8] sm:$0xf0] %v303_v46 }
  0x9d   : > { %371 = vrot.lane.b32.xlu0 %v370_v48, %s629_s12  ;;  %287 = vrot.lane.b32.xlu1 %v284_v49, %s624_s28 }
  0xa1   : > { %348 = vrot.lane.b32.xlu0 %v347_v50, %s626_s9  ;;  %330 = vrot.lane.b32.xlu1 %v327_v51, %s625_s29 }
  0xa5   : > { %350 = vrot.lane.b32.xlu1 %v345_v47, %s626_s9  ;;  %501 = vperm.xlu0 %613, %v498_v53  }
  0xa9   : > { %509 = vperm.xlu1 %614, %v506_v54  }
  0xff   : > { %v419_v55 = vpop.permute.xlu0 %418 }
 0x103   : > { %v374_v56 = vpop.permute.xlu1 %373  ;;  %v390_v57 = vpop.permute.xlu0 %389 }
 0x104   : > { %380 = vst.msk [vmem:[#allocation2 + $0x28] sm:$0xf0] %vm379_vm10, %v374_v56 }
 0x107   : > { %v421_v58 = vpop.permute.xlu1 %420  ;;  %v286_v59 = vpop.permute.xlu0 %285 }
 0x108   : > { %v422_v60 = vsel %vm279_vm3, %v419_v55, %v421_v58  ;;  %427 = vst.msk [vmem:[#allocation2 + $0x48] sm:$0xf] %vm426_vm11, %v421_v58  ;;  %vm356_vm3 = vcmask 1047564  }
 0x109   : > { %294 = vst.msk [vmem:[#allocation2] sm:$0xf] %vm293_vm12, %v286_v59  ;;  %425 = vst [vmem:[#allocation2 + $0x40] sm:$0xf] %v422_v60 }
 0x10b   : > { %v392_v61 = vpop.permute.xlu1 %391  ;;  %v329_v62 = vpop.permute.xlu0 %328  ;;  %v435_v11 = vld [vmem:[#allocation2 + $0x28] sm:$0xff] }
 0x10c   : > { %v393_v63 = vsel %vm322_vm4, %v390_v57, %v392_v61  ;;  %398 = vst.msk [vmem:[#allocation2 + $0x38] sm:$0xf] %vm397_vm13, %v392_v61 }
 0x10d   : > { %337 = vst.msk [vmem:[#allocation2 + $0x10] sm:$0xf] %vm336_vm14, %v329_v62  ;;  %396 = vst [vmem:[#allocation2 + $0x30] sm:$0xf] %v393_v63 }
 0x10f   : > { %v372_v0 = vpop.permute.xlu0 %371  ;;  %v288_v1 = vpop.permute.xlu1 %287  ;;  %v439_v2 = vld [vmem:[#allocation2 + $0x48] sm:$0xf] }
 0x110   : > { %v375_v3 = vsel %vm342_vm7, %v372_v0, %v374_v56  ;;  %v290_v4 = vsel %vm289_vm0, %v286_v59, %v288_v1  ;;  %v445_v5 = vpack.c.bf16 %v439_v2, %v439_v2  ;;  %v438_v6 = vld [vmem:[#allocation2 + $0x40] sm:$0xf]  ;;  %vm446_vm0 = vcmask 293888  }
 0x111   : > { %378 = vst [vmem:[#allocation2 + $0x20] sm:$0xf0] %v375_v3  ;;  %295 = vst [vmem:[#allocation2 + $0x8] sm:$0xf] %v290_v4  ;;  %v444_v7 = vpack.c.bf16 %v438_v6, %v438_v6  ;;  %v430_v25 = vld [vmem:[#allocation2] sm:$0xff] }
 0x112   : > { %589 = vmatprep.subr.msk.bf16.mxu0 %vm450_vm15, %v445_v5 }
 0x113   : > { %v349_v8 = vpop.permute.xlu0 %348  ;;  %v331_v9 = vpop.permute.xlu1 %330  ;;  %v452_v10 = vsel %vm450_vm15, %v444_v7, 0  ;;  %v437_v12 = vld [vmem:[#allocation2 + $0x38] sm:$0xff] }
 0x114   : > { %357 = vst.msk [vmem:[#allocation2 + $0x10] sm:$0xf0] %vm356_vm3, %v349_v8  ;;  %v333_v13 = vsel %vm332_vm1, %v329_v62, %v331_v9  ;;  %468 = vmatpush1.bf16.msra.mxu0 %v452_v10  ;;  %v443_v14 = vpack.c.bf16 %v437_v12, %v435_v11  ;;  %v436_v18 = vld [vmem:[#allocation2 + $0x30] sm:$0xff] }
 0x115   : > { %338 = vst [vmem:[#allocation2 + $0x18] sm:$0xf] %v333_v13 }
 0x116   : > { %469 = vmatprep.subr.bf16.mxu0 %v443_v14 }
 0x117   : > { %v351_v15 = vpop.permute.xlu1 %350 }
 0x118   : > { %v353_v16 = vsel %vm352_vm2, %v349_v8, %v351_v15  ;;  %v434_v17 = vld [vmem:[#allocation2 + $0x20] sm:$0xff]  ;;  %v431_v21 = vld [vmem:[#allocation2 + $0x8] sm:$0xff] }
 0x119   : > { %358 = vst [vmem:[#allocation2 + $0x18] sm:$0xf0] %v353_v16  ;;  %v442_v19 = vpack.c.bf16 %v436_v18, %v434_v17 }
 0x11b   : > { %470 = vmatpush1.bf16.msra.mxu0 %v442_v19  ;;  %v432_v20 = vld [vmem:[#allocation2 + $0x10] sm:$0xff] }
 0x11c   : > { %v440_v26 = vpack.c.bf16 %v432_v20, %v430_v25 }
 0x120   : > { %v433_v22 = vld [vmem:[#allocation2 + $0x18] sm:$0xff]  ;;  %v502_v28 = vpop.permute.xlu0 %501 }
 0x121   : > { %v441_v24 = vpack.c.bf16 %v433_v22, %v431_v21 }
 0x123   : > { %471 = vmatprep.subr.bf16.mxu0 %v441_v24 }
 0x124   : > { %472 = vmatpush1.bf16.msra.mxu0 %v440_v26  ;;  %v510_v30 = vpop.permute.xlu1 %509 }
 0x127   : > { %590 = vmatmul.mubr.msk.bf16.vlgmr.msra.gmra.mxu0 %vm446_vm0, %v429_v27 }
 0x1e7   : > { %v491_v29 = vpop.f32.mrf.mxu0 }
 0x1e8   : > { %v504_v31 = vmul.f32 %v502_v28, %v491_v29 }
 0x1e9   : > { %v493_v32 = vpop.f32.mrf.mxu0 }
 0x1ea   : > { %v505_v33 = vmul.f32 %v502_v28, %v493_v32  ;;  %v512_v34 = vadd.f32 %v510_v30, %v504_v31 }
 0x1eb   : > { %v495_v35 = vpop.f32.mrf.mxu0 }
 0x1ec   : > { %v513_v36 = vadd.f32 %v510_v30, %v505_v33  ;;  %v516_v37 = vmul.f32 0.01, %v512_v34  ;;  %vm514_vm1 = vcmp.ge.f32.partialorder %v512_v34, 0.0 }
 0x1ed   : > { %v496_v38 = vpop.f32.mrf.mxu0 }
 0x1ee   : > { %vm515_vm2 = vcmp.ge.f32.partialorder %v513_v36, 0.0  ;;  %v517_v39 = vmul.f32 0.01, %v513_v36  ;;  %v518_v40 = vsel %vm514_vm1, %v512_v34, %v516_v37 }
 0x1f0   : > { %v519_v41 = vsel %vm515_vm2, %v513_v36, %v517_v39 }
 0x1f1   : > { %v522_v42 = vcombine.low %v518_v40, %v519_v41 }
 0x1f3   : > { %524 = vst [vmem:[%s251_s25] sm:$0xff] %v522_v42 }
 0x1f4 PF: > { %s16_s21 = sadd.s32 1, %s622_s21  }
 0x1f5   : > { %p13_p4 = scmp.ge.s32.totalorder %s16_s21, 4  }
 0x1f7   :  { %15 = sbr.rel (!%p13_p4) target bundleno = 1 (0x1), region = 74 }

// kernel: aligned_module_forward.9
= control target key start
LH: loop header
LB: loop body
LE: loop exit
PB: predicated region body
PF: predicated region fallthrough
CT: control target
= control target key end

     0   :  { %s1779_s24 = smov 0   ;;  %s1781_s25 = smov 0   ;;  %s2206_s0 = inlined_call_operand.vmem [shape: f32[2,4,256], index: 0, kind: input, shape index: {}]   ;;  %s2207_s1 = inlined_call_operand.vmem [shape: f32[1,256], index: 1, kind: input, shape index: {}]   ;;  %s2208_s2 = inlined_call_operand.vmem [shape: f32[1,256], index: 2, kind: input, shape index: {}]   ;;  %s2209_s3 = inlined_call_operand.vmem [shape: f32[2,4,64], index: 3, kind: input, shape index: {}]   ;;  %s2210_s4 = inlined_call_operand.vmem [shape: f32[2,4,256], index: 4, kind: input, shape index: {}]   ;;  %s2211_s5 = inlined_call_operand.vmem [shape: f32[2,4,256], index: 5, kind: output, shape index: {0}]   ;;  %s2212_s6 = inlined_call_operand.vmem [shape: f32[2,4,256], index: 6, kind: output, shape index: {1}]   ;;  %s2213_s7 = inlined_call_operand.vmem [shape: f32[2,4,256], index: 7, kind: output, shape index: {2}]  }
   0x1   :  { %s1783_s26 = smov 0  }
   0x2 LB: > { %s30_s27 = sadd.s32 1, %s1722_s25  ;;  %p1465_p0 = scmp.ge.s32.totalorder %s1726_s26, 1  ;;  %s1726_s26 = sphi %s1783_s26, %s18_s26   ;;  %s1722_s25 = sphi %s1781_s25, %s2237_s25   ;;  %s1718_s24 = sphi %s1779_s24, %s2236_s24  }
   0x3   : > { %p32_p1 = scmp.ge.s32.totalorder %s30_s27, 2  ;;  %p306_p2 = scmp.lt.s32.totalorder %s1726_s26, 3 }
   0x5   : > { %s2239_s27 = smov (%p32_p1, %s30_s27), 0  ;;  %p307_p3 = pnand %p1465_p0, %p306_p2 }
   0x6   : > { %p382_p4 = scmp.lt.s32.totalorder (!%p307_p3), %s1718_s24, 1  ;;  %s1729_s16 = smov (!%p307_p3), 119  }
   0x7   : > { %310 = sbr.rel (%p307_p3) target bundleno = 364 (0x16c), region = 40  ;;  %s1730_s17 = smov (!%p307_p3), 127  }
   0x8   : > { %s1731_s18 = smov (!%p307_p3), 63   ;;  %s1732_s23 = smov (!%p307_p3), 55  }
   0x9   : > { %s1736_s30 = smov (!%p307_p3), 112   ;;  %s1737_s8 = smov (!%p307_p3), 56  }
   0xc   : > { %v450_v0 = vlaneseq  ;;  %s2241_s24 = smov (!%p382_p4, %s1718_s24), 1  ;;  %v1728_v1 = vmov 1966171168   ;;  %v442_v15 = vld [vmem:[%s2207_s1] sm:$0x3]  ;;  %v1735_v32 = vmov 0  }
   0xd   : > { %v448_v2 = vunpack.c.l.s4 %v1728_v1  ;;  %s1468_s28 = sshll.u32 %s2241_s24, 2  ;;  %s1799_s29 = sshll.u32 %s2241_s24, 3  ;;  %v443_v19 = vld [vmem:[%s2208_s2] sm:$0x3]  ;;  %660 = vmatprep.mubr.bf16.mxu0 %v1735_v32  ;;  %v2216_v48 = vmov 0  ;;  %v2218_v52 = vmov 0 }
   0xe   : > { %v1797_v3 = vshrl.u32 %v450_v0, 7  ;;  %s404_s9 = scalar_lea.vmem %s2209_s3, %s1468_s28  ;;  %s389_s12 = scalar_lea.vmem %s2206_s0, %s1799_s29 }
   0xf   : > { %v449_v4 = vunpack.c.0.s8 %v448_v2  ;;  %v1808_v5 = vld [vmem:[%s404_s9] sm:$0xf]  ;;  %s409_s15 = scalar_lea.vmem %s2210_s4, %s1799_s29  ;;  %s1733_s24 = smov 111  }
  0x10   : > { %v441_v7 = vld [vmem:[%s389_s12] sm:$0xff]  ;;  %606 = vrot.lane.b32.xlu0 %v1808_v5, %s1729_s16  ;;  %590 = vrot.lane.b32.xlu1 %v1808_v5, %s1730_s17  ;;  %s1734_s28 = smov 120   ;;  %v1879_v58 = vsub.s32 0, %v1797_v3  ;;  %v1888_v62 = vsub.s32 1, %v1797_v3  ;;  %v797_v63 = vadd.s32 112, %v1797_v3  ;;  %v798_v0 = vadd.s32 120, %v1797_v3  ;;  %s428_s11 = scalar_lea.vmem %s2212_s6, %s1799_s29 }
  0x11   : > { %v452_v6 = vsub.s32 %v449_v4, %v1797_v3  ;;  %v445_v8 = vmul.f32 0.0625, %v441_v7  ;;  %v1817_v9 = vld [vmem:[%s409_s15] sm:$0xff]  ;;  %v795_v4 = vadd.s32 96, %v1797_v3  ;;  %v1896_v7 = vadd.s32 48, %v1797_v3  ;;  %s418_s14 = scalar_lea.vmem %s2211_s5, %s1799_s29 }
  0x12   : > { %v1821_v10 = vcombine.high %v1817_v9, %v1817_v9  ;;  %v811_v32 = vadd.s32 224, %v1797_v3  ;;  %v802_v53 = vadd.s32 152, %v1797_v3 }
  0x13   : > { %v453_v11 = vrot.slane %v445_v8, %v452_v6  ;;  %v1899_v8 = vadd.s32 56, %v1797_v3 }
  0x14   : > { %v1688_v12 = vpack.i.bf16 %v1821_v10, %v1817_v9  ;;  %593 = vrot.lane.b32.xlu1 %v1808_v5, %s1731_s18 }
  0x15   : > { %v460_v13 = vrot.slane %v453_v11, %v452_v6  ;;  %v463_v14 = vcombine.high %v453_v11, %v453_v11 }
  0x16   : > { %1689 = vrot.lane.b32.xlu0 %v1688_v12, %s1730_s17  ;;  %s438_s17 = scalar_lea.vmem %s2213_s7, %s1799_s29 }
  0x17   : > { %v462_v16 = vadd.f32 %v460_v13, %v442_v15  ;;  %v470_v17 = vrot.slane %v463_v14, %v452_v6  ;;  %v742_v18 = vcombine.high %v460_v13, %v460_v13  ;;  %v796_v14 = vadd.s32 104, %v1797_v3 }
  0x18   : > { %609 = vrot.lane.b32.xlu1 %v1808_v5, %s1732_s23 }
  0x19   : > { %v472_v20 = vadd.f32 %v470_v17, %v443_v19  ;;  %v473_v21 = vadd.f32 1.0, %v462_v16  ;;  %v744_v22 = vadd.f32 %v742_v18, %v442_v15  ;;  %v745_v23 = vcombine.high %v470_v17, %v470_v17 }
  0x1a   : > { %1694 = vrot.lane.b32.xlu0 %v1688_v12, %s1733_s24  ;;  %v793_v15 = vadd.s32 80, %v1797_v3  ;;  %v794_v16 = vadd.s32 88, %v1797_v3 }
  0x1b   : > { %v1833_v24 = vmul.f32 3.5, %v473_v21  ;;  %v475_v25 = vadd.f32 1.0, %v472_v20  ;;  %v747_v26 = vadd.f32 %v745_v23, %v443_v19  ;;  %v748_v27 = vadd.f32 1.0, %v744_v22 }
  0x1c   : > { %598 = vrot.lane.b32.xlu1 %v1808_v5, %s1734_s28  ;;  %v1738_v19 = vmov 1.0|1.0   ;;  %v791_v20 = vadd.s32 64, %v1797_v3  ;;  %v792_v21 = vadd.s32 72, %v1797_v3  ;;  %v521_v22 = vadd.s32 32, %v1797_v3 }
  0x1d   : > { %v1835_v28 = vmul.f32 3.5, %v475_v25  ;;  %v1838_v29 = vfloor.f32 %v1833_v24  ;;  %v749_v30 = vmul.f32 7.5, %v748_v27  ;;  %v750_v31 = vadd.f32 1.0, %v747_v26 }
  0x1e   : > { %1699 = vrot.lane.b32.xlu0 %v1688_v12, %s1736_s30  ;;  %v522_v23 = vadd.s32 40, %v1797_v3  ;;  %v1964_v25 = vadd.s32 16, %v1797_v3  ;;  %v1967_v26 = vadd.s32 24, %v1797_v3  ;;  %v1978_v27 = vadd.s32 8, %v1797_v3 }
  0x1f   : > { %v1842_v33 = vfloor.f32 %v1835_v28  ;;  %v751_v34 = vmul.f32 7.5, %v750_v31  ;;  %v752_v35 = vfloor.f32 %v749_v30  ;;  %v1647_v36 = vtrunc.f32 %v1838_v29 }
  0x20   : > { %v814_v31 = vadd.s32 248, %v1797_v3 }
  0x21   : > { %v1845_v37 = vfloor.f32 %v751_v34  ;;  %v1651_v38 = vtrunc.f32 %v752_v35  ;;  %v1645_v39 = vtrunc.f32 %v1842_v33  ;;  %v1648_v40 = vcvt.f32.s32 %v1647_v36 }
  0x22   : > { %601 = vrot.lane.b32.xlu0 %v1808_v5, %s1737_s8  ;;  %v754_v41 = vadd.f32 1.0, %v752_v35  ;;  %v1849_v42 = vsub.f32 %v749_v30, %v752_v35  ;;  %vm760_vm0 = vcmp.ge.f32.partialorder %v752_v35, 0.0  ;;  %vm761_vm1 = vcmp.le.f32.partialorder %v752_v35, 15.0 }
  0x23   : > { %v1649_v43 = vtrunc.f32 %v1845_v37  ;;  %v1652_v44 = vcvt.f32.s32 %v1651_v38  ;;  %v1646_v45 = vcvt.f32.s32 %v1645_v39  ;;  %v1853_v46 = vsub.f32 %v751_v34, %v1845_v37  ;;  %vm1856_vm2 = vmand %vm760_vm0, %vm761_vm1 }
  0x24   : > { %v757_v47 = vsub.f32 1.0, %v1849_v42  ;;  %v2217_v48 = vsel %vm1856_vm2, 4294967295, %v2216_v48  ;;  %vm763_vm3 = vcmp.ge.f32.partialorder %v754_v41, 0.0  ;;  %vm764_vm4 = vcmp.le.f32.partialorder %v754_v41, 15.0 }
  0x25   : > { %vm766_vm5 = vcmp.ge.f32.partialorder %v1845_v37, 0.0  ;;  %v1650_v49 = vcvt.f32.s32 %v1649_v43  ;;  %v510_v50 = vmul.u32 8, %v1646_v45  ;;  %v759_v51 = vsub.f32 1.0, %v1853_v46  ;;  %vm1862_vm6 = vmand %vm763_vm3, %vm764_vm4 }
  0x26   : > { %v2219_v52 = vsel %vm1862_vm6, 4294967295, %v2218_v52  ;;  %vm767_vm7 = vcmp.le.f32.partialorder %v1845_v37, 15.0  ;;  %v813_v30 = vadd.s32 240, %v1797_v3  ;;  %v812_v34 = vadd.s32 232, %v1797_v3 }
  0x27   : > { %vm1867_vm8 = vmand %vm766_vm5, %vm767_vm7  ;;  %v785_v54 = vmul.u32 16, %v1650_v49  ;;  %v512_v55 = vadd.s32 %v1648_v40, %v510_v50  ;;  %v773_v56 = vmul.f32 %v759_v51, %v757_v47  ;;  %v776_v57 = vmul.f32 %v759_v51, %v1849_v42 }
  0x28   : > { %vm772_vm9 = vmand %vm1867_vm8, %vm1856_vm2  ;;  %v809_v36 = vadd.s32 208, %v1797_v3  ;;  %v810_v38 = vadd.s32 216, %v1797_v3  ;;  %v807_v40 = vadd.s32 192, %v1797_v3  ;;  %v808_v41 = vadd.s32 200, %v1797_v3 }
  0x29   : > { %vm775_vm10 = vmand %vm1867_vm8, %vm1862_vm6  ;;  %v787_v59 = vadd.s32 %v1652_v44, %v785_v54  ;;  %vm513_vm11 = vcmp.lt.s32.totalorder %v512_v55, 0  ;;  %v514_v60 = vadd.s32 64, %v512_v55  ;;  %v1885_v61 = vsel %vm772_vm9, %v773_v56, 0.0 }
  0x2a   : > { %v1892_v1 = vsel %vm775_vm10, %v776_v57, 0.0  ;;  %v805_v44 = vadd.s32 176, %v1797_v3  ;;  %v806_v45 = vadd.s32 184, %v1797_v3  ;;  %v803_v49 = vadd.s32 160, %v1797_v3 }
  0x2b   : > { %vm788_vm12 = vcmp.lt.s32.totalorder %v787_v59, 0  ;;  %v789_v2 = vadd.s32 256, %v787_v59  ;;  %v515_v6 = vsel %vm513_vm11, %v514_v60, %v512_v55  ;;  %v804_v50 = vadd.s32 168, %v1797_v3 }
  0x2c   : > { %v1902_v11 = vrot.slane %v515_v6, %v1888_v62  ;;  %v1905_v12 = vrot.slane %v515_v6, %v1879_v58  ;;  %v801_v51 = vadd.s32 144, %v1797_v3  ;;  %v799_v54 = vadd.s32 128, %v1797_v3 }
  0x2d   : > { %v790_v13 = vsel %vm788_vm12, %v789_v2, %v787_v59  ;;  %v800_v55 = vadd.s32 136, %v1797_v3 }
  0x2e   : > { %v1911_v17 = vrot.slane %v790_v13, %v1879_v58  ;;  %v1914_v18 = vrot.slane %v790_v13, %v1888_v62  ;;  %vm546_vm13 = vcmp.eq.s32.totalorder %v1896_v7, %v1902_v11  ;;  %vm548_vm14 = vcmp.eq.s32.totalorder %v1899_v8, %v1902_v11 }
  0x2f   : > { %vm1493_vm15 = vmpackc.low %vm548_vm14, %vm546_vm13  ;;  %vm545_vm0 = vcmp.eq.s32.totalorder %v1896_v7, %v1905_v12  ;;  %vm547_vm1 = vcmp.eq.s32.totalorder %v1899_v8, %v1905_v12 }
  0x30   : > { %vm852_vm3 = vcmp.eq.s32.totalorder %v797_v63, %v1914_v18  ;;  %vm854_vm4 = vcmp.eq.s32.totalorder %v798_v0, %v1914_v18  ;;  %vm851_vm5 = vcmp.eq.s32.totalorder %v797_v63, %v1911_v17  ;;  %vm853_vm7 = vcmp.eq.s32.totalorder %v798_v0, %v1911_v17  ;;  %1494 = vmatprep.subr.msk.bf16.mxu0 %vm1493_vm15, %v1738_v19  ;;  %vm1495_vm8 = vmpackc.low %vm547_vm1, %vm545_vm0 }
  0x31   : > { %vm1574_vm9 = vmpackc.low %vm854_vm4, %vm852_vm3  ;;  %vm848_vm10 = vcmp.eq.s32.totalorder %v795_v4, %v1914_v18  ;;  %vm850_vm11 = vcmp.eq.s32.totalorder %v796_v14, %v1914_v18  ;;  %vm847_vm12 = vcmp.eq.s32.totalorder %v795_v4, %v1911_v17  ;;  %vm849_vm13 = vcmp.eq.s32.totalorder %v796_v14, %v1911_v17  ;;  %1496 = vmatpush1.bf16.msk.msra.mxu0 %vm1495_vm8, %v1738_v19 }
  0x32   : > { %1575 = vmatprep.subr.msk.bf16.mxu1 %vm1574_vm9, %v1738_v19  ;;  %vm1576_vm14 = vmpackc.low %vm853_vm7, %vm851_vm5  ;;  %vm844_vm6 = vcmp.eq.s32.totalorder %v793_v15, %v1914_v18  ;;  %vm846_vm2 = vcmp.eq.s32.totalorder %v794_v16, %v1914_v18  ;;  %vm843_vm3 = vcmp.eq.s32.totalorder %v793_v15, %v1911_v17  ;;  %vm845_vm4 = vcmp.eq.s32.totalorder %v794_v16, %v1911_v17 }
  0x33   : > { %1577 = vmatpush1.bf16.msk.msra.mxu1 %vm1576_vm14, %v1738_v19  ;;  %vm1578_vm15 = vmpackc.low %vm850_vm11, %vm848_vm10  ;;  %vm840_vm5 = vcmp.eq.s32.totalorder %v791_v20, %v1914_v18  ;;  %vm842_vm7 = vcmp.eq.s32.totalorder %v792_v21, %v1914_v18  ;;  %vm839_vm10 = vcmp.eq.s32.totalorder %v791_v20, %v1911_v17  ;;  %vm841_vm11 = vcmp.eq.s32.totalorder %v792_v21, %v1911_v17 }
  0x34   : > { %1579 = vmatprep.subr.msk.bf16.mxu1 %vm1578_vm15, %v1738_v19  ;;  %vm1580_vm0 = vmpackc.low %vm849_vm13, %vm847_vm12  ;;  %vm835_vm14 = vcmp.eq.s32.totalorder %v1896_v7, %v1911_v17  ;;  %vm837_vm15 = vcmp.eq.s32.totalorder %v1899_v8, %v1911_v17 }
  0x35   : > { %vm1582_vm1 = vmpackc.low %vm846_vm2, %vm844_vm6  ;;  %vm836_vm2 = vcmp.eq.s32.totalorder %v1896_v7, %v1914_v18  ;;  %vm838_vm6 = vcmp.eq.s32.totalorder %v1899_v8, %v1914_v18 }
  0x36   : > { %vm1584_vm8 = vmpackc.low %vm845_vm4, %vm843_vm3 }
  0x37   : > { %1581 = vmatpush1.bf16.msk.msra.mxu1 %vm1580_vm0, %v1738_v19  ;;  %vm1586_vm9 = vmpackc.low %vm842_vm7, %vm840_vm5  ;;  %vm832_vm0 = vcmp.eq.s32.totalorder %v521_v22, %v1914_v18  ;;  %vm831_vm5 = vcmp.eq.s32.totalorder %v521_v22, %v1911_v17  ;;  %vm833_vm7 = vcmp.eq.s32.totalorder %v522_v23, %v1911_v17 }
  0x38   : > { %1583 = vmatprep.subr.msk.bf16.mxu1 %vm1582_vm1, %v1738_v19  ;;  %vm1588_vm12 = vmpackc.low %vm841_vm11, %vm839_vm10  ;;  %vm834_vm1 = vcmp.eq.s32.totalorder %v522_v23, %v1914_v18 }
  0x39   : > { %vm1590_vm13 = vmpackc.low %vm838_vm6, %vm836_vm2  ;;  %vm827_vm2 = vcmp.eq.s32.totalorder %v1964_v25, %v1911_v17  ;;  %vm829_vm6 = vcmp.eq.s32.totalorder %v1967_v26, %v1911_v17 }
  0x3a   : > { %vm1592_vm3 = vmpackc.low %vm837_vm15, %vm835_vm14  ;;  %vm823_vm15 = vcmp.eq.s32.totalorder %v1797_v3, %v1911_v17 }
  0x3b   : > { %1585 = vmatpush1.bf16.msk.msra.mxu1 %vm1584_vm8, %v1738_v19  ;;  %vm1594_vm4 = vmpackc.low %vm834_vm1, %vm832_vm0  ;;  %vm828_vm8 = vcmp.eq.s32.totalorder %v1964_v25, %v1914_v18  ;;  %vm825_vm0 = vcmp.eq.s32.totalorder %v1978_v27, %v1911_v17 }
  0x3c   : > { %1587 = vmatprep.subr.msk.bf16.mxu1 %vm1586_vm9, %v1738_v19  ;;  %vm830_vm9 = vcmp.eq.s32.totalorder %v1967_v26, %v1914_v18  ;;  %vm1596_vm10 = vmpackc.low %vm833_vm7, %vm831_vm5  ;;  %vm884_vm5 = vcmp.eq.s32.totalorder %v813_v30, %v1914_v18  ;;  %vm886_vm7 = vcmp.eq.s32.totalorder %v814_v31, %v1914_v18 }
  0x3d   : > { %vm1598_vm11 = vmpackc.low %vm830_vm9, %vm828_vm8  ;;  %vm541_vm9 = vcmp.eq.s32.totalorder %v521_v22, %v1905_v12 }
  0x3e   : > { %vm1600_vm14 = vmpackc.low %vm829_vm6, %vm827_vm2  ;;  %vm885_vm2 = vcmp.eq.s32.totalorder %v814_v31, %v1911_v17 }
  0x3f   : > { %1589 = vmatpush1.bf16.msk.msra.mxu1 %vm1588_vm12, %v1738_v19  ;;  %vm824_vm12 = vcmp.eq.s32.totalorder %v1797_v3, %v1914_v18  ;;  %vm2005_vm8 = vmpackc.low %vm825_vm0, %vm823_vm15  ;;  %vm880_vm15 = vcmp.eq.s32.totalorder %v811_v32, %v1914_v18  ;;  %vm882_vm0 = vcmp.eq.s32.totalorder %v812_v34, %v1914_v18 }
  0x40   : > { %1591 = vmatprep.subr.msk.bf16.mxu1 %vm1590_vm13, %v1738_v19  ;;  %vm826_vm13 = vcmp.eq.s32.totalorder %v1978_v27, %v1914_v18 }
  0x41   : > { %vm1602_vm1 = vmpackc.low %vm826_vm13, %vm824_vm12  ;;  %vm538_vm13 = vcmp.eq.s32.totalorder %v1964_v25, %v1902_v11 }
  0x42   : > { %vm1606_vm12 = vmpackc.low %vm886_vm7, %vm884_vm5  ;;  %vm539_vm5 = vcmp.eq.s32.totalorder %v1967_v26, %v1905_v12  ;;  %vm879_vm7 = vcmp.eq.s32.totalorder %v811_v32, %v1911_v17 }
  0x43   : > { %1593 = vmatpush1.bf16.msk.msra.mxu1 %vm1592_vm3, %v1738_v19  ;;  %vm542_vm3 = vcmp.eq.s32.totalorder %v521_v22, %v1902_v11 }
  0x44   : > { %1595 = vmatprep.subr.msk.bf16.mxu1 %vm1594_vm4, %v1738_v19  ;;  %vm544_vm4 = vcmp.eq.s32.totalorder %v522_v23, %v1902_v11 }
  0x45   : > { %vm1497_vm6 = vmpackc.low %vm544_vm4, %vm542_vm3  ;;  %vm537_vm4 = vcmp.eq.s32.totalorder %v1964_v25, %v1905_v12 }
  0x46   : > { %1498 = vmatprep.subr.msk.bf16.mxu0 %vm1497_vm6, %v1738_v19  ;;  %vm876_vm6 = vcmp.eq.s32.totalorder %v809_v36, %v1914_v18 }
  0x47   : > { %1597 = vmatpush1.bf16.msk.msra.mxu1 %vm1596_vm10, %v1738_v19  ;;  %vm543_vm10 = vcmp.eq.s32.totalorder %v522_v23, %v1905_v12 }
  0x48   : > { %1599 = vmatprep.subr.msk.bf16.mxu1 %vm1598_vm11, %v1738_v19  ;;  %vm883_vm11 = vcmp.eq.s32.totalorder %v813_v30, %v1911_v17 }
  0x49   : > { %vm2026_vm3 = vmpackc.low %vm885_vm2, %vm883_vm11  ;;  %vm534_vm11 = vcmp.eq.s32.totalorder %v1797_v3, %v1902_v11  ;;  %vm536_vm2 = vcmp.eq.s32.totalorder %v1978_v27, %v1902_v11 }
  0x4b   : > { %1601 = vmatpush1.bf16.msk.msra.mxu1 %vm1600_vm14, %v1738_v19  ;;  %vm540_vm14 = vcmp.eq.s32.totalorder %v1967_v26, %v1902_v11 }
  0x4c   : > { %1603 = vmatprep.subr.msk.bf16.mxu1 %vm1602_vm1, %v1738_v19  ;;  %vm1499_vm1 = vmpackc.low %vm543_vm10, %vm541_vm9  ;;  %vm881_vm9 = vcmp.eq.s32.totalorder %v812_v34, %v1911_v17 }
  0x4d   : > { %1500 = vmatpush1.bf16.msk.msra.mxu0 %vm1499_vm1, %v1738_v19  ;;  %vm1610_vm10 = vmpackc.low %vm882_vm0, %vm880_vm15  ;;  %vm535_vm15 = vcmp.eq.s32.totalorder %v1978_v27, %v1905_v12 }
  0x4e   : > { %vm1503_vm1 = vmpackc.low %vm539_vm5, %vm537_vm4  ;;  %vm875_vm5 = vcmp.eq.s32.totalorder %v809_v36, %v1911_v17 }
  0x4f   : > { %1605 = vmatpush1.bf16.msk.msra.mxu1 %vm2005_vm8, %v1738_v19  ;;  %vm1501_vm8 = vmpackc.low %vm540_vm14, %vm538_vm13  ;;  %vm533_vm14 = vcmp.eq.s32.totalorder %v1797_v3, %v1905_v12 }
  0x50   : > { %1607 = vmatprep.subr.msk.bf16.mxu1 %vm1606_vm12, %v1738_v19  ;;  %1502 = vmatprep.subr.msk.bf16.mxu0 %vm1501_vm8, %v1738_v19  ;;  %vm878_vm12 = vcmp.eq.s32.totalorder %v810_v38, %v1914_v18  ;;  %vm2053_vm13 = vmpackc.low %vm881_vm9, %vm879_vm7  ;;  %vm872_vm7 = vcmp.eq.s32.totalorder %v807_v40, %v1914_v18  ;;  %vm874_vm9 = vcmp.eq.s32.totalorder %v808_v41, %v1914_v18 }
  0x51   : > { %1504 = vmatpush1.bf16.msk.msra.mxu0 %vm1503_vm1, %v1738_v19  ;;  %vm1505_vm0 = vmpackc.low %vm536_vm2, %vm534_vm11  ;;  %vm871_vm2 = vcmp.eq.s32.totalorder %v807_v40, %v1911_v17  ;;  %vm870_vm1 = vcmp.eq.s32.totalorder %v806_v45, %v1914_v18 }
  0x52   : > { %vm1614_vm4 = vmpackc.low %vm878_vm12, %vm876_vm6  ;;  %1506 = vmatprep.subr.msk.bf16.mxu0 %vm1505_vm0, %v1738_v19  ;;  %vm873_vm6 = vcmp.eq.s32.totalorder %v808_v41, %v1911_v17  ;;  %vm868_vm12 = vcmp.eq.s32.totalorder %v805_v44, %v1914_v18  ;;  %vm869_vm0 = vcmp.eq.s32.totalorder %v806_v45, %v1911_v17 }
  0x53   : > { %1609 = vmatpush2.bf16.msk.msra.mxu1 %vm2026_vm3, %v1738_v19  ;;  %vm877_vm3 = vcmp.eq.s32.totalorder %v810_v38, %v1911_v17  ;;  %vm1507_vm8 = vmpackc.low %vm535_vm15, %vm533_vm14  ;;  %vm867_vm15 = vcmp.eq.s32.totalorder %v805_v44, %v1911_v17  ;;  %v755_v44 = vadd.f32 1.0, %v1845_v37  ;;  %v479_v37 = vadd.f32 1.0, %v1838_v29 }
  0x54   : > { %1611 = vmatprep.subr.msk.bf16.mxu1 %vm1610_vm10, %v1738_v19  ;;  %vm1616_vm10 = vmpackc.low %vm877_vm3, %vm875_vm5  ;;  %vm866_vm5 = vcmp.eq.s32.totalorder %v804_v50, %v1914_v18 }
  0x55   : > { %1508 = vmatpush1.bf16.msk.msra.mxu0 %vm1507_vm8, %v1738_v19  ;;  %vm1618_vm11 = vmpackc.low %vm874_vm9, %vm872_vm7  ;;  %vm863_vm9 = vcmp.eq.s32.totalorder %v803_v49, %v1911_v17  ;;  %vm865_vm8 = vcmp.eq.s32.totalorder %v804_v50, %v1911_v17 }
  0x56   : > { %vm1622_vm14 = vmpackc.low %vm870_vm1, %vm868_vm12  ;;  %vm859_vm12 = vcmp.eq.s32.totalorder %v801_v51, %v1911_v17  ;;  %vm861_vm1 = vcmp.eq.s32.totalorder %v802_v53, %v1911_v17 }
  0x57   : > { %1613 = vmatpush2.bf16.msk.msra.mxu1 %vm2053_vm13, %v1738_v19  ;;  %vm1620_vm13 = vmpackc.low %vm873_vm6, %vm871_vm2 }
  0x58   : > { %1615 = vmatprep.subr.msk.bf16.mxu1 %vm1614_vm4, %v1738_v19  ;;  %vm864_vm4 = vcmp.eq.s32.totalorder %v803_v49, %v1914_v18  ;;  %vm1624_vm3 = vmpackc.low %vm869_vm0, %vm867_vm15  ;;  %v483_v49 = vsub.f32 %v1835_v28, %v1842_v33 }
  0x59   : > { %vm1626_vm7 = vmpackc.low %vm866_vm5, %vm864_vm4  ;;  %vm855_vm4 = vcmp.eq.s32.totalorder %v799_v54, %v1911_v17  ;;  %vm857_vm5 = vcmp.eq.s32.totalorder %v800_v55, %v1911_v17 }
  0x5a   : > { %vm1628_vm2 = vmpackc.low %vm865_vm8, %vm863_vm9  ;;  %vm596_vm9 = vcmask 515072   ;;  %vm612_vm8 = vcmask 449536  }
  0x5b   : > { %1617 = vmatpush2.bf16.msk.msra.mxu1 %vm1616_vm10, %v1738_v19  ;;  %vm860_vm10 = vcmp.eq.s32.totalorder %v801_v51, %v1914_v18  ;;  %vm1632_vm15 = vmpackc.low %vm861_vm1, %vm859_vm12  ;;  %vm624_vm12 = vcmask 523264   ;;  %vm769_vm1 = vcmp.ge.f32.partialorder %v755_v44, 0.0 }
  0x5c   : > { %1619 = vmatprep.subr.msk.bf16.mxu1 %vm1618_vm11, %v1738_v19  ;;  %vm862_vm11 = vcmp.eq.s32.totalorder %v802_v53, %v1914_v18 }
  0x5d   : > { %vm1630_vm6 = vmpackc.low %vm862_vm11, %vm860_vm10  ;;  %vm1072_vm10 = vcmask 908288   ;;  %vm1062_vm11 = vcmask 916480  }
  0x5f   : > { %1621 = vmatpush2.bf16.msk.msra.mxu1 %vm1620_vm13, %v1738_v19  ;;  %vm856_vm13 = vcmp.eq.s32.totalorder %v799_v54, %v1914_v18 }
  0x60   : > { %1623 = vmatprep.subr.msk.bf16.mxu1 %vm1622_vm14, %v1738_v19  ;;  %vm858_vm14 = vcmp.eq.s32.totalorder %v800_v55, %v1914_v18  ;;  %v1154_v55 = vrot.slane %v1892_v1, %v1879_v58 }
  0x61   : > { %vm1634_vm0 = vmpackc.low %vm858_vm14, %vm856_vm13  ;;  %vm770_vm13 = vcmp.le.f32.partialorder %v755_v44, 15.0 }
  0x62   : > { %vm771_vm14 = vmand %vm769_vm1, %vm770_vm13 }
  0x63   : > { %1625 = vmatpush2.bf16.msk.msra.mxu1 %vm1624_vm3, %v1738_v19  ;;  %vm1636_vm3 = vmpackc.low %vm857_vm5, %vm855_vm4  ;;  %vm2229_vm4 = vnez %v2219_v52 }
  0x64   : > { %1627 = vmatprep.subr.msk.bf16.mxu1 %vm1626_vm7, %v1738_v19  ;;  %vm1053_vm7 = vcmask 1039360   ;;  %vm781_vm5 = vmand %vm771_vm14, %vm2229_vm4 }
  0x67   : > { %1629 = vmatpush2.bf16.msk.msra.mxu1 %vm1628_vm2, %v1738_v19  ;;  %vm604_vm2 = vcmask 457728  }
  0x68   : > { %1631 = vmatprep.subr.msk.bf16.mxu1 %vm1630_vm6, %v1738_v19  ;;  %vm620_vm6 = vcmask 1043456  }
  0x6b   : > { %1633 = vmatpush2.bf16.msk.msra.mxu1 %vm1632_vm15, %v1738_v19  ;;  %vm2228_vm15 = vnez %v2217_v48 }
  0x6c   : > { %1635 = vmatprep.subr.msk.bf16.mxu1 %vm1634_vm0, %v1738_v19  ;;  %vm778_vm0 = vmand %vm771_vm14, %vm2228_vm15 }
  0x6f   : > { %1637 = vmatpush2.bf16.msk.msra.mxu1 %vm1636_vm3, %v1738_v19  ;;  %vm488_vm3 = vcmp.ge.f32.partialorder %v479_v37, 0.0 }
  0x82   : > { %v607_v3 = vpop.permute.xlu0 %606  ;;  %v591_v56 = vpop.permute.xlu1 %590 }
  0x86   : > { %v594_v57 = vpop.permute.xlu1 %593 }
  0x87   : > { %v597_v11 = vsel %vm596_vm9, %v591_v56, %v594_v57  ;;  %vm491_vm9 = vcmp.ge.f32.partialorder %v1842_v33, 0.0 }
  0x88   : > { %v1690_v59 = vpop.permute.xlu0 %1689  ;;  %v615_v20 = vrot.slane %v597_v11, 4 }
  0x89   : > { %v1692_v60 = vunpack.i.h.bf16 %v1690_v59  ;;  %v1691_v63 = vunpack.i.l.bf16 %v1690_v59 }
  0x8a   : > { %v610_v4 = vpop.permute.xlu1 %609  ;;  %v621_v40 = vsel %vm620_vm6, %v1808_v5, %v615_v20 }
  0x8b   : > { %v1054_v2 = vsel %vm1053_vm7, %v1691_v63, %v1692_v60  ;;  %v1057_v8 = vsel %vm1053_vm7, %v1692_v60, %v1691_v63  ;;  %v613_v15 = vsel %vm612_vm8, %v607_v3, %v610_v4  ;;  %vm489_vm7 = vcmp.le.f32.partialorder %v479_v37, 7.0 }
  0x8c   : > { %v1695_v0 = vpop.permute.xlu0 %1694  ;;  %v1079_v14 = vrot.slane %v1054_v2, 4  ;;  %v1080_v17 = vrot.slane %v1057_v8, 4  ;;  %v618_v25 = vrot.slane %v613_v15, 4  ;;  %vm492_vm8 = vcmp.le.f32.partialorder %v1842_v33, 7.0 }
  0x8d   : > { %v1697_v6 = vunpack.i.h.bf16 %v1695_v0  ;;  %v1696_v7 = vunpack.i.l.bf16 %v1695_v0  ;;  %v1141_v3 = vrot.slane %v1885_v61, %v1879_v58  ;;  %v1145_v60 = vrot.slane %v1885_v61, %v1888_v62 }
  0x8e   : > { %v599_v22 = vpop.permute.xlu1 %598  ;;  %v1089_v31 = vsel %vm620_vm6, %v1821_v10, %v1080_v17  ;;  %v1088_v34 = vsel %vm620_vm6, %v1817_v9, %v1079_v14  ;;  %v779_v9 = vmul.f32 %v1853_v46, %v757_v47  ;;  %v782_v10 = vmul.f32 %v1853_v46, %v1849_v42 }
  0x8f   : > { %v1073_v12 = vsel %vm1072_vm10, %v1696_v7, %v1697_v6  ;;  %v1076_v13 = vsel %vm1072_vm10, %v1697_v6, %v1696_v7  ;;  %v481_v47 = vsub.f32 %v1833_v24, %v1838_v29  ;;  %v480_v42 = vadd.f32 1.0, %v1842_v33 }
  0x90   : > { %v1700_v16 = vpop.permute.xlu0 %1699  ;;  %v1084_v21 = vrot.slane %v1073_v12, 4  ;;  %v1085_v23 = vrot.slane %v1076_v13, 4  ;;  %v2121_v5 = vsel %vm778_vm0, %v779_v9, 0.0  ;;  %v2125_v45 = vsel %vm781_vm5, %v782_v10, 0.0 }
  0x91   : > { %v1702_v18 = vunpack.i.h.bf16 %v1700_v16  ;;  %v1701_v19 = vunpack.i.l.bf16 %v1700_v16  ;;  %v484_v46 = vsub.f32 1.0, %v483_v49  ;;  %vm485_vm10 = vcmp.ge.f32.partialorder %v1838_v29, 0.0 }
  0x92   : > { %v482_v28 = vsub.f32 1.0, %v481_v47  ;;  %vm495_vm1 = vcmp.le.f32.partialorder %v480_v42, 7.0  ;;  %v507_v53 = vmul.f32 %v483_v49, %v481_v47  ;;  %v1158_v63 = vrot.slane %v1892_v1, %v1888_v62 }
  0x93   : > { %v1067_v26 = vsel %vm1062_vm11, %v1702_v18, %v1701_v19  ;;  %v1063_v27 = vsel %vm1062_vm11, %v1701_v19, %v1702_v18  ;;  %vm486_vm11 = vcmp.le.f32.partialorder %v1838_v29, 7.0  ;;  %v501_v33 = vmul.f32 %v484_v46, %v481_v47 }
  0x94   : > { %v602_v30 = vpop.permute.xlu0 %601  ;;  %v1091_v32 = vsel %vm620_vm6, %v1067_v26, %v1085_v23  ;;  %v1090_v35 = vsel %vm620_vm6, %v1063_v27, %v1084_v21  ;;  %vm2141_vm13 = vmand %vm485_vm10, %vm486_vm11  ;;  %v498_v52 = vmul.f32 %v484_v46, %v482_v28  ;;  %v504_v29 = vmul.f32 %v483_v49, %v482_v28 }
  0x95   : > { %v605_v36 = vsel %vm604_vm2, %v599_v22, %v602_v30  ;;  %v1093_v38 = vpack.c.bf16 %v1091_v32, %v1089_v31  ;;  %v1092_v39 = vpack.c.bf16 %v1090_v35, %v1088_v34  ;;  %vm2137_vm2 = vmand %vm488_vm3, %vm489_vm7  ;;  %v1175_v7 = vrot.slane %v2121_v5, %v1879_v58 }
  0x96   : > { %v622_v41 = vsel %vm620_vm6, %v605_v36, %v618_v25  ;;  %vm493_vm6 = vmand %vm491_vm9, %vm492_vm8  ;;  %v1179_v8 = vrot.slane %v2121_v5, %v1888_v62  ;;  %v1190_v61 = vrot.slane %v2125_v45, %v1879_v58  ;;  %v1194_v1 = vrot.slane %v2125_v45, %v1888_v62 }
  0x97   : > { %v623_v43 = vpack.c.bf16 %v622_v41, %v621_v40  ;;  %1126 = vmatprep.mubr.bf16.mxu1 %v1093_v38  ;;  %vm500_vm14 = vmand %vm493_vm6, %vm2137_vm2 }
  0x98   : > { %1127 = vmatmul.mubr.bf16.vlgmr.msra.gmra.mxu1 %v1092_v39  ;;  %vm497_vm0 = vmand %vm493_vm6, %vm2141_vm13  ;;  %v502_v51 = vsel %vm500_vm14, %v501_v33, 0.0 }
  0x99   : > { %1509 = vmatmul.mubr.msk.bf16.vlgmr.msra.gmra.mxu0 %vm624_vm12, %v623_v43  ;;  %vm494_vm12 = vcmp.ge.f32.partialorder %v480_v42, 0.0  ;;  %v499_v54 = vsel %vm497_vm0, %v498_v52, 0.0  ;;  %v688_v56 = vrot.slane %v502_v51, %v1879_v58  ;;  %v692_v6 = vrot.slane %v502_v51, %v1888_v62 }
  0x9a   : > { %vm2147_vm15 = vmand %vm494_vm12, %vm495_vm1  ;;  %v675_v59 = vrot.slane %v499_v54, %v1879_v58  ;;  %v679_v4 = vrot.slane %v499_v54, %v1888_v62 }
  0x9b   : > { %vm503_vm4 = vmand %vm2147_vm15, %vm2141_vm13 }
  0x9c   : > { %vm506_vm5 = vmand %vm2147_vm15, %vm2137_vm2  ;;  %v505_v57 = vsel %vm503_vm4, %v504_v29, 0.0 }
  0x9d   : > { %v508_v0 = vsel %vm506_vm5, %v507_v53, 0.0  ;;  %v709_v13 = vrot.slane %v505_v57, %v1879_v58  ;;  %v713_v17 = vrot.slane %v505_v57, %v1888_v62 }
  0x9e   : > { %v724_v16 = vrot.slane %v508_v0, %v1879_v58  ;;  %v728_v18 = vrot.slane %v508_v0, %v1888_v62 }
 0x158   : > { %v1128_v2 = vpop.f32.mrf.mxu1 }
 0x159   : > { %v1161_v11 = vmul.f32 %v1154_v55, %v1128_v2  ;;  %v662_v12 = vpop.f32.mrf.mxu0  ;;  %v1148_v19 = vmul.f32 %v1141_v3, %v1128_v2 }
 0x15a   : > { %v695_v14 = vmul.f32 %v688_v56, %v662_v12  ;;  %v1130_v15 = vpop.f32.mrf.mxu1  ;;  %v682_v21 = vmul.f32 %v675_v59, %v662_v12 }
 0x15b   : > { %v1165_v20 = vrot.slane %v1161_v11, 4  ;;  %v1162_v22 = vmul.f32 %v1158_v63, %v1130_v15  ;;  %v664_v23 = vpop.f32.mrf.mxu0  ;;  %v1149_v26 = vmul.f32 %v1145_v60, %v1130_v15 }
 0x15c   : > { %v699_v25 = vrot.slane %v695_v14, 4  ;;  %v683_v27 = vmul.f32 %v679_v4, %v664_v23  ;;  %v696_v30 = vmul.f32 %v692_v6, %v664_v23  ;;  %v1132_v31 = vpop.f32.mrf.mxu1 }
 0x15d   : > { %v1169_v32 = vadd.f32 %v1165_v20, %v1148_v19  ;;  %v1166_v34 = vrot.slane %v1162_v22, 4  ;;  %v1182_v35 = vmul.f32 %v1175_v7, %v1132_v31  ;;  %v1197_v36 = vmul.f32 %v1190_v61, %v1132_v31  ;;  %v666_v38 = vpop.f32.mrf.mxu0 }
 0x15e   : > { %v703_v58 = vadd.f32 %v699_v25, %v682_v21  ;;  %v700_v39 = vrot.slane %v696_v30, 4  ;;  %v716_v40 = vmul.f32 %v709_v13, %v666_v38  ;;  %v731_v41 = vmul.f32 %v724_v16, %v666_v38  ;;  %v1134_v62 = vpop.f32.mrf.mxu1 }
 0x15f   : > { %v1170_v43 = vadd.f32 %v1166_v34, %v1149_v26  ;;  %v1184_v44 = vadd.f32 %v1182_v35, %v1169_v32  ;;  %v1201_v9 = vrot.slane %v1197_v36, 4  ;;  %v1183_v10 = vmul.f32 %v1179_v8, %v1134_v62  ;;  %v668_v5 = vpop.f32.mrf.mxu0 }
 0x160   : > { %v704_v45 = vadd.f32 %v700_v39, %v683_v27  ;;  %v718_v37 = vadd.f32 %v716_v40, %v703_v58  ;;  %v735_v49 = vrot.slane %v731_v41, 4  ;;  %v1198_v47 = vmul.f32 %v1194_v1, %v1134_v62 }
 0x161   : > { %v1205_v42 = vadd.f32 %v1201_v9, %v1184_v44  ;;  %v1185_v46 = vadd.f32 %v1183_v10, %v1170_v43  ;;  %v717_v48 = vmul.f32 %v713_v17, %v668_v5  ;;  %v732_v28 = vmul.f32 %v728_v18, %v668_v5 }
 0x162   : > { %v1202_v24 = vrot.slane %v1198_v47, 4  ;;  %v739_v33 = vadd.f32 %v735_v49, %v718_v37 }
 0x163   : > { %v719_v52 = vadd.f32 %v717_v48, %v704_v45  ;;  %v736_v50 = vrot.slane %v732_v28, 4 }
 0x164   : > { %v1206_v29 = vadd.f32 %v1202_v24, %v1185_v46  ;;  %v1217_v54 = vsub.f32 %v739_v33, %v1205_v42 }
 0x165   : > { %v740_v51 = vadd.f32 %v736_v50, %v719_v52 }
 0x166   : > { %v1214_v53 = vcombine.low %v1205_v42, %v1206_v29 }
 0x167   : > { %v1209_v55 = vcombine.low %v739_v33, %v740_v51  ;;  %v1218_v3 = vsub.f32 %v740_v51, %v1206_v29 }
 0x168   : > { %1216 = vst [vmem:[%s428_s11] sm:$0xff] %v1214_v53 }
 0x169   : > { %1211 = vst [vmem:[%s418_s14] sm:$0xff] %v1209_v55  ;;  %v1221_v56 = vcombine.low %v1217_v54, %v1218_v3 }
 0x16b   : > { %1223 = vst [vmem:[%s438_s17] sm:$0xff] %v1221_v56 }
 0x16c PF: > { %s18_s26 = sadd.s32 1, %s1726_s26   ;;  %s2236_s24 = smov %s1722_s25 }
 0x16d   : > { %p15_p5 = scmp.ge.s32.totalorder %s18_s26, 4   ;;  %s2237_s25 = smov %s2239_s27 }
 0x16f   :  { %17 = sbr.rel (!%p15_p5) target bundleno = 2 (0x2), region = 106 }

// kernel: aligned_module_forward.11
= control target key start
LH: loop header
LB: loop body
LE: loop exit
PB: predicated region body
PF: predicated region fallthrough
CT: control target
= control target key end

     0   :  { %s766_s21 = smov 0   ;;  %s857_s0 = inlined_call_operand.vmem [shape: f32[2,4,256], index: 0, kind: input, shape index: {}]   ;;  %s858_s1 = inlined_call_operand.vmem [shape: f32[2,4,256], index: 1, kind: input, shape index: {}]   ;;  %s859_s2 = inlined_call_operand.vmem [shape: f32[2,4,256], index: 2, kind: input, shape index: {}]   ;;  %s860_s3 = inlined_call_operand.vmem [shape: f32[1,36], index: 3, kind: input, shape index: {}]   ;;  %s861_s4 = inlined_call_operand.vmem [shape: f32[1,256], index: 4, kind: input, shape index: {}]   ;;  %s862_s5 = inlined_call_operand.vmem [shape: f32[1,256], index: 5, kind: input, shape index: {}]   ;;  %s863_s6 = inlined_call_operand.vmem [shape: f32[2,4,256], index: 6, kind: output, shape index: {}]  }
   0x1 LB: > { %s663_s22 = sadd.s32 4294967295, %s719_s21   ;;  %p667_p0 = scmp.ge.s32.totalorder %s719_s21, 1  ;;  %s719_s21 = sphi %s766_s21, %s16_s21  }
   0x2   : > { %p232_p1 = scmp.lt.s32.totalorder %s719_s21, 3 }
   0x4   : > { %p233_p2 = pnand %p667_p0, %p232_p1 }
   0x5   : > { %p272_p3 = scmp.lt.s32.totalorder (!%p233_p2), %s663_s22, 1  ;;  %s721_s28 = smov (!%p233_p2), 17  }
   0x6   : > { %236 = sbr.rel (%p233_p2) target bundleno = 533 (0x215), region = 44  ;;  %s722_s29 = smov (!%p233_p2), 15  }
   0x7   : > { %s723_s9 = smov (!%p233_p2), 1   ;;  %s724_s10 = smov (!%p233_p2), 111  }
   0x8   : > { %s725_s11 = smov (!%p233_p2), 113   ;;  %s726_s12 = smov (!%p233_p2), 127  }
   0x9   : > { %s727_s13 = smov (!%p233_p2), 112   ;;  %s728_s14 = smov (!%p233_p2), 16  }
   0xb   : > { %v307_v0 = vlaneseq  ;;  %v305_v2 = vld [vmem:[%s862_s5] sm:$0x3]  ;;  %s865_s22 = smov (!%p272_p3, %s663_s22), 1  ;;  %v729_v14 = vmov 0.0   ;;  %vm329_vm0 = vcmask 138240   ;;  %vm372_vm1 = vcmask 121856  }
   0xc   : > { %v304_v3 = vld [vmem:[%s861_s4] sm:$0x3]  ;;  %s784_s27 = sshll.u32 %s865_s22, 3  ;;  %299 = vst [vmem:[#allocation2 + $0x30] sm:$0xff] %v729_v14  ;;  %300 = vst [vmem:[#allocation2 + $0x38] sm:$0xff] %v729_v14  ;;  %vm392_vm2 = vcmask 7168  }
   0xd   : > { %v308_v1 = vshrl.u32 %v307_v0, 7  ;;  %s276_s8 = scalar_lea.vmem %s857_s0, %s784_s27  ;;  %293 = vst [vmem:[#allocation2] sm:$0xff] %v729_v14  ;;  %294 = vst [vmem:[#allocation2 + $0x8] sm:$0xff] %v729_v14  ;;  %vm319_vm3 = vcmask 908288   ;;  %vm362_vm4 = vcmask 924672   ;;  %vm443_vm5 = vcmask 916480   ;;  %s281_s19 = scalar_lea.vmem %s858_s1, %s784_s27 }
   0xe   : > { %v794_v12 = vld [vmem:[%s276_s8] sm:$0xff]  ;;  %295 = vst [vmem:[#allocation2 + $0x10] sm:$0xff] %v729_v14  ;;  %296 = vst [vmem:[#allocation2 + $0x18] sm:$0xff] %v729_v14  ;;  %vm448_vm6 = vcmask 916484   ;;  %vm382_vm7 = vcmask 1039360   ;;  %vm346_vm8 = vcmask 1047684   ;;  %s286_s23 = scalar_lea.vmem %s859_s2, %s784_s27  ;;  %s291_s26 = scalar_lea.vmem %s863_s6, %s784_s27 }
   0xf   : > { %v780_v4 = vsub.s32 0, %v308_v1  ;;  %v313_v5 = vsub.s32 1, %v308_v1  ;;  %v337_v13 = vcombine.low %v794_v12, %v794_v12  ;;  %297 = vst [vmem:[#allocation2 + $0x20] sm:$0xff] %v729_v14  ;;  %298 = vst [vmem:[#allocation2 + $0x28] sm:$0xff] %v729_v14  ;;  %v399_v15 = vcombine.high %v794_v12, %v794_v12 }
  0x10   : > { %301 = vst [vmem:[#allocation2 + $0x40] sm:$0xf] %v729_v14  ;;  %302 = vst [vmem:[#allocation2 + $0x48] sm:$0xf] %v729_v14  ;;  %vm342_vm9 = vcmask 130048   ;;  %v730_v52 = vmov 0  }
  0x11   : > { %v353_v6 = vrot.slane %v305_v2, %v780_v4  ;;  %v357_v7 = vrot.slane %v305_v2, %v313_v5  ;;  %v310_v8 = vrot.slane %v304_v3, %v780_v4  ;;  %v314_v9 = vrot.slane %v304_v3, %v313_v5  ;;  %401 = vst [vmem:[#allocation2 + $0x20] sm:$0xf] %v794_v12 }
  0x12   : > { %402 = vst [vmem:[#allocation2 + $0x28] sm:$0xf] %v399_v15  ;;  %529 = vmatprep.mubr.bf16.mxu0 %v730_v52  ;;  %vm419_vm10 = vcmask 1039364   ;;  %vm466_vm11 = vcmask 904192   ;;  %vm333_vm12 = vcmask 1043592   ;;  %vm437_vm13 = vcmask 920576  }
  0x13   : > { %v358_v10 = vcombine.low %v353_v6, %v357_v7  ;;  %v315_v11 = vcombine.low %v310_v8, %v314_v9  ;;  %vm376_vm14 = vcmask 1043576   ;;  %vm490_vm15 = vcmask 1041408  }
  0x15   : > { %450 = vrot.lane.b32.xlu0 %v358_v10, %s721_s28  ;;  %421 = vrot.lane.b32.xlu1 %v315_v11, %s722_s29 }
  0x19   : > { %403 = vrot.lane.b32.xlu0 %v358_v10, %s723_s9  ;;  %316 = vrot.lane.b32.xlu1 %v315_v11, %s724_s10 }
  0x1d   : > { %359 = vrot.lane.b32.xlu0 %v358_v10, %s725_s11  ;;  %379 = vrot.lane.b32.xlu1 %v315_v11, %s726_s12 }
  0x21   : > { %439 = vrot.lane.b32.xlu0 %v337_v13, %s727_s13  ;;  %441 = vrot.lane.b32.xlu1 %v794_v12, %s727_s13 }
  0x25   : > { %338 = vrot.lane.b32.xlu0 %v337_v13, %s728_s14  ;;  %340 = vrot.lane.b32.xlu1 %v794_v12, %s728_s14 }
  0x87   : > { %v451_v16 = vpop.permute.xlu0 %450  ;;  %v422_v17 = vpop.permute.xlu1 %421 }
  0x88   : > { %v452_v18 = vrot.slane %v451_v16, 4  ;;  %v423_v19 = vrot.slane %v422_v17, 4 }
  0x8a   : > { %v453_v20 = vsel %vm329_vm0, %v452_v18, %v451_v16  ;;  %v424_v21 = vsel %vm372_vm1, %v423_v19, %v422_v17 }
  0x8b   : > { %v455_v22 = vmul.f32 %v453_v20, %v794_v12  ;;  %v404_v23 = vpop.permute.xlu0 %403  ;;  %v317_v24 = vpop.permute.xlu1 %316  ;;  %v426_v27 = vmul.f32 %v424_v21, %v794_v12 }
  0x8c   : > { %v405_v25 = vrot.slane %v404_v23, 4  ;;  %v318_v26 = vrot.slane %v317_v24, 4 }
  0x8d   : > { %458 = vrot.lane.b32.xlu0 %v455_v22, %s724_s10  ;;  %v457_v37 = vcombine.high %v455_v22, %v455_v22  ;;  %v428_v43 = vcombine.high %v426_v27, %v426_v27  ;;  %v468_v22 = vld [vmem:[%s860_s3] sm:$0x1] }
  0x8e   : > { %v406_v28 = vsel %vm392_vm2, %v405_v25, %v404_v23  ;;  %v320_v29 = vsel %vm319_vm3, %v317_v24, %v318_v26  ;;  %v469_v26 = vpack.c.bf16 %v468_v22, %v468_v22 }
  0x8f   : > { %v408_v30 = vmul.f32 %v406_v28, %v794_v12  ;;  %v360_v31 = vpop.permute.xlu0 %359  ;;  %v380_v32 = vpop.permute.xlu1 %379  ;;  %v322_v34 = vmul.f32 %v320_v29, %v794_v12 }
  0x90   : > { %v361_v33 = vrot.slane %v360_v31, 4  ;;  %v381_v36 = vrot.slane %v380_v32, 4 }
  0x91   : > { %413 = vrot.lane.b32.xlu1 %v408_v30, %s726_s12  ;;  %429 = vrot.lane.b32.xlu0 %v426_v27, %s725_s11  ;;  %v410_v48 = vcombine.low %v408_v30, %v408_v30  ;;  %v324_v49 = vcombine.high %v322_v34, %v322_v34 }
  0x92   : > { %v363_v35 = vsel %vm362_vm4, %v360_v31, %v361_v33  ;;  %v383_v42 = vsel %vm382_vm7, %v380_v32, %v381_v36 }
  0x93   : > { %v440_v38 = vpop.permute.xlu0 %439  ;;  %v442_v39 = vpop.permute.xlu1 %441  ;;  %v365_v41 = vmul.f32 %v363_v35, %v794_v12  ;;  %v385_v47 = vmul.f32 %v383_v42, %v794_v12 }
  0x94   : > { %v444_v40 = vsel %vm443_vm5, %v440_v38, %v442_v39  ;;  %449 = vst.msk [vmem:[#allocation2 + $0x38] sm:$0xf0] %vm448_vm6, %v442_v39 }
  0x95   : > { %460 = vrot.lane.b32.xlu1 %v457_v37, %s724_s10  ;;  %325 = vrot.lane.b32.xlu0 %v322_v34, %s721_s28  ;;  %447 = vst [vmem:[#allocation2 + $0x30] sm:$0xf0] %v444_v40  ;;  %v387_v50 = vcombine.low %v385_v47, %v385_v47  ;;  %v367_v51 = vcombine.high %v365_v41, %v365_v41 }
  0x97   : > { %v339_v44 = vpop.permute.xlu0 %338  ;;  %v341_v45 = vpop.permute.xlu1 %340 }
  0x98   : > { %347 = vst.msk [vmem:[#allocation2] sm:$0xf0] %vm346_vm8, %v339_v44  ;;  %v343_v46 = vsel %vm342_vm9, %v339_v44, %v341_v45 }
  0x99   : > { %431 = vrot.lane.b32.xlu1 %v428_v43, %s725_s11  ;;  %368 = vrot.lane.b32.xlu0 %v365_v41, %s722_s29  ;;  %348 = vst [vmem:[#allocation2 + $0x8] sm:$0xf0] %v343_v46 }
  0x9d   : > { %411 = vrot.lane.b32.xlu0 %v410_v48, %s726_s12  ;;  %327 = vrot.lane.b32.xlu1 %v324_v49, %s721_s28  ;;  %v566_v48 = vld [vmem:[%s286_s23] sm:$0xff] }
  0xa1   : > { %388 = vrot.lane.b32.xlu0 %v387_v50, %s723_s9  ;;  %370 = vrot.lane.b32.xlu1 %v367_v51, %s722_s29 }
  0xa5   : > { %390 = vrot.lane.b32.xlu1 %v385_v47, %s723_s9  ;;  %v550_v47 = vld [vmem:[%s281_s19] sm:$0xff] }
  0xff   : > { %v459_v53 = vpop.permute.xlu0 %458 }
 0x103   : > { %v414_v54 = vpop.permute.xlu1 %413  ;;  %v430_v55 = vpop.permute.xlu0 %429 }
 0x104   : > { %420 = vst.msk [vmem:[#allocation2 + $0x28] sm:$0xf0] %vm419_vm10, %v414_v54 }
 0x107   : > { %v461_v56 = vpop.permute.xlu1 %460  ;;  %v326_v57 = vpop.permute.xlu0 %325 }
 0x108   : > { %v462_v58 = vsel %vm319_vm3, %v459_v53, %v461_v56  ;;  %467 = vst.msk [vmem:[#allocation2 + $0x48] sm:$0xf] %vm466_vm11, %v461_v56  ;;  %vm396_vm3 = vcmask 1047564  }
 0x109   : > { %334 = vst.msk [vmem:[#allocation2] sm:$0xf] %vm333_vm12, %v326_v57  ;;  %465 = vst [vmem:[#allocation2 + $0x40] sm:$0xf] %v462_v58 }
 0x10b   : > { %v432_v59 = vpop.permute.xlu1 %431  ;;  %v369_v60 = vpop.permute.xlu0 %368  ;;  %v475_v10 = vld [vmem:[#allocation2 + $0x28] sm:$0xff] }
 0x10c   : > { %v433_v61 = vsel %vm362_vm4, %v430_v55, %v432_v59  ;;  %438 = vst.msk [vmem:[#allocation2 + $0x38] sm:$0xf] %vm437_vm13, %v432_v59 }
 0x10d   : > { %377 = vst.msk [vmem:[#allocation2 + $0x10] sm:$0xf] %vm376_vm14, %v369_v60  ;;  %436 = vst [vmem:[#allocation2 + $0x30] sm:$0xf] %v433_v61 }
 0x10f   : > { %v412_v62 = vpop.permute.xlu0 %411  ;;  %v328_v63 = vpop.permute.xlu1 %327  ;;  %v479_v0 = vld [vmem:[#allocation2 + $0x48] sm:$0xf] }
 0x110   : > { %v415_v1 = vsel %vm382_vm7, %v412_v62, %v414_v54  ;;  %v330_v2 = vsel %vm329_vm0, %v326_v57, %v328_v63  ;;  %v485_v3 = vpack.c.bf16 %v479_v0, %v479_v0  ;;  %v478_v5 = vld [vmem:[#allocation2 + $0x40] sm:$0xf]  ;;  %vm486_vm0 = vcmask 293888  }
 0x111   : > { %418 = vst [vmem:[#allocation2 + $0x20] sm:$0xf0] %v415_v1  ;;  %335 = vst [vmem:[#allocation2 + $0x8] sm:$0xf] %v330_v2  ;;  %v484_v6 = vpack.c.bf16 %v478_v5, %v478_v5  ;;  %v470_v24 = vld [vmem:[#allocation2] sm:$0xff] }
 0x112   : > { %676 = vmatprep.subr.msk.bf16.mxu0 %vm490_vm15, %v485_v3 }
 0x113   : > { %v389_v7 = vpop.permute.xlu0 %388  ;;  %v371_v8 = vpop.permute.xlu1 %370  ;;  %v492_v9 = vsel %vm490_vm15, %v484_v6, 0  ;;  %v477_v11 = vld [vmem:[#allocation2 + $0x38] sm:$0xff] }
 0x114   : > { %397 = vst.msk [vmem:[#allocation2 + $0x10] sm:$0xf0] %vm396_vm3, %v389_v7  ;;  %v373_v12 = vsel %vm372_vm1, %v369_v60, %v371_v8  ;;  %508 = vmatpush1.bf16.msra.mxu0 %v492_v9  ;;  %v483_v13 = vpack.c.bf16 %v477_v11, %v475_v10  ;;  %v476_v17 = vld [vmem:[#allocation2 + $0x30] sm:$0xff] }
 0x115   : > { %378 = vst [vmem:[#allocation2 + $0x18] sm:$0xf] %v373_v12 }
 0x116   : > { %509 = vmatprep.subr.bf16.mxu0 %v483_v13 }
 0x117   : > { %v391_v14 = vpop.permute.xlu1 %390 }
 0x118   : > { %v393_v15 = vsel %vm392_vm2, %v389_v7, %v391_v14  ;;  %v474_v16 = vld [vmem:[#allocation2 + $0x20] sm:$0xff]  ;;  %v471_v20 = vld [vmem:[#allocation2 + $0x8] sm:$0xff] }
 0x119   : > { %398 = vst [vmem:[#allocation2 + $0x18] sm:$0xf0] %v393_v15  ;;  %v482_v18 = vpack.c.bf16 %v476_v17, %v474_v16 }
 0x11b   : > { %510 = vmatpush1.bf16.msra.mxu0 %v482_v18  ;;  %v472_v19 = vld [vmem:[#allocation2 + $0x10] sm:$0xff] }
 0x11c   : > { %v480_v25 = vpack.c.bf16 %v472_v19, %v470_v24 }
 0x120   : > { %v473_v21 = vld [vmem:[#allocation2 + $0x18] sm:$0xff] }
 0x121   : > { %v481_v23 = vpack.c.bf16 %v473_v21, %v471_v20 }
 0x123   : > { %511 = vmatprep.subr.bf16.mxu0 %v481_v23 }
 0x124   : > { %512 = vmatpush1.bf16.msra.mxu0 %v480_v25 }
 0x127   : > { %677 = vmatmul.mubr.msk.bf16.vlgmr.msra.gmra.mxu0 %vm486_vm0, %v469_v26 }
 0x1e7   : > { %v531_v27 = vpop.f32.mrf.mxu0 }
 0x1e8   : > { %v678_v28 = vmul.f32 -1.442695, %v531_v27 }
 0x1e9   : > { %v533_v29 = vpop.f32.mrf.mxu0 }
 0x1ea   : > { %705 = vpow2.f32 %v678_v28  ;;  %v679_v30 = vmul.f32 -1.442695, %v533_v29 }
 0x1eb   : > { %v535_v31 = vpop.f32.mrf.mxu0 }
 0x1ec   : > { %707 = vpow2.f32 %v679_v30 }
 0x1ed   : > { %v536_v32 = vpop.f32.mrf.mxu0 }
 0x1f7   : > { %v706_v33 = vpop.eup %705 }
 0x1f8   : > { %v544_v34 = vadd.f32 1.0, %v706_v33 }
 0x1f9   : > { %v708_v35 = vpop.eup %707 }
 0x1fa   : > { %709 = vrcp.f32 %v544_v34  ;;  %v545_v36 = vadd.f32 1.0, %v708_v35 }
 0x1fc   : > { %711 = vrcp.f32 %v545_v36 }
 0x207   : > { %v710_v37 = vpop.eup %709 }
 0x208   : > { %v551_v38 = vadd.f32 1.0, %v710_v37  ;;  %v567_v39 = vsub.f32 2.0, %v710_v37 }
 0x209   : > { %v712_v40 = vpop.eup %711 }
 0x20a   : > { %v552_v41 = vadd.f32 1.0, %v712_v40  ;;  %v568_v42 = vsub.f32 2.0, %v712_v40  ;;  %v556_v43 = vrot.slane %v551_v38, %v780_v4  ;;  %v572_v44 = vrot.slane %v567_v39, %v780_v4 }
 0x20c   : > { %v560_v45 = vrot.slane %v552_v41, %v780_v4  ;;  %v576_v46 = vrot.slane %v568_v42, %v780_v4 }
 0x20e   : > { %v563_v49 = vcombine.low %v556_v43, %v560_v45  ;;  %v579_v50 = vcombine.low %v572_v44, %v576_v46 }
 0x210   : > { %v565_v51 = vmul.f32 %v563_v49, %v550_v47  ;;  %v581_v52 = vmul.f32 %v579_v50, %v566_v48 }
 0x212   : > { %v582_v53 = vadd.f32 %v581_v52, %v565_v51 }
 0x214   : > { %583 = vst [vmem:[%s291_s26] sm:$0xff] %v582_v53 }
 0x215 PF: > { %s16_s21 = sadd.s32 1, %s719_s21  }
 0x216   : > { %p13_p4 = scmp.ge.s32.totalorder %s16_s21, 4  }
 0x218   :  { %15 = sbr.rel (!%p13_p4) target bundleno = 1 (0x1), region = 80 }

</bundles_post_ra>
